<compile_context>
chip_gen: v7x
topology: tpu7x:2x2x1
jax: 0.10.0
libtpu: 0.0.40
codegen_flags: <defaults>
</compile_context>

<pallas_src>
import math

import jax
import jax.numpy as jnp
from jax.experimental import pallas as pl
from jax.experimental.pallas import tpu as pltpu

BN_EPS = 1e-5


# ----------------------------------------------------------------------------
# Sizing helpers (padding-aware: last dim -> 128 lanes, 2nd-to-last -> 8 rows).
# ----------------------------------------------------------------------------
def _round_up(x, m):
    return (x + m - 1) // m * m


def _padded_bytes(block_shape, itemsize):
    dims = list(block_shape)
    if len(dims) >= 1:
        dims[-1] = _round_up(dims[-1], 128)
    if len(dims) >= 2:
        dims[-2] = _round_up(dims[-2], 8)
    size = itemsize
    for d in dims:
        size *= d
    return size


def _vmem_capacity_bytes():
    try:
        return int(pltpu.get_tpu_info().vmem_capacity_bytes)
    except Exception:
        return 64 << 20                      # conservative: v7x per-TC VMEM


def _vmem_limit(block_padded_bytes, cap):
    # Double-buffered pipeline blocks + compiler scratch headroom, capped well
    # below physical VMEM (v7x: <=48 of 64 MiB; v5e/v6e: <=96 of 128 MiB).
    want = 2 * sum(block_padded_bytes) + (8 << 20)
    return int(max(16 << 20, min(cap, want)))


def _pick_c_tile(c, h, w, n, itemsize, target_bytes):
    """Channels per pooling block (Kernel A)."""
    padded_chan = _round_up(h, 8) * _round_up(w, 128) * itemsize
    tc = max(1, target_bytes // padded_chan)
    # Prefer >= ~8 total grid steps (pipeline depth / 2 TCs on v7x) as long as
    # blocks stay reasonably large.
    min_blocks = max(1, -(-8 // n))
    tc_split = -(-c // min_blocks)
    if tc_split * padded_chan >= (512 << 10):
        tc = min(tc, tc_split)
    if tc >= c or c <= 8:
        return c
    # p_h / p_w output blocks are (1, tc, H) / (1, tc, W): tc sits on sublanes
    # and must be a multiple of 8 (or the full C).
    return max(8, (tc // 8) * 8)


def _pick_h_tile(h, w, c, n, itemsize, target_bytes):
    """H rows per gating block (Kernel C) so that th*W is a multiple of 128."""
    q = 128 // math.gcd(w, 128)              # smallest th with lane-dense th*W
    if h <= q:
        return h
    per_row = _round_up(c, 8) * w * itemsize
    th_cap = max(q, (target_bytes // per_row) // q * q)      # VMEM target
    min_blocks = max(1, -(-8 // n))                           # >= ~8 grid steps
    th_split = max(q, (h // min_blocks) // q * q)
    row_cap = q * max(1, 64 // q)             # bounds in-kernel gate concat
    th = min(th_cap, th_split, row_cap)
    return max(q, min(th, h))


# ----------------------------------------------------------------------------
# Kernel A: coordinate pooling over a (1, TC, H, W) block.
#   p_h[n, c, h] = mean_w x   (lane reduce)     p_w[n, c, w] = mean_h x
# ----------------------------------------------------------------------------
def coord_pool_kernel(x_ref, p_h_ref, p_w_ref):
    x = x_ref[...].astype(jnp.float32)
    p_h_ref[...] = jnp.mean(x, axis=3)
    p_w_ref[...] = jnp.mean(x, axis=2)


# ----------------------------------------------------------------------------
# Kernel B: conv1 + BN (training batch stats) + h_swish + conv_h/conv_w +
# sigmoid on the pooled tensors. Weights arrive in torch layout:
#   w1: (mip, c)  b1/gamma/beta: (mip, 1)  wh/ww: (c, mip)  bh/bw: (c, 1)
# ----------------------------------------------------------------------------
def coord_mlp_kernel(p_h_ref, p_w_ref, w1_ref, b1_ref, gamma_ref, beta_ref,
                     wh_ref, bh_ref, ww_ref, bw_ref, a_h_ref, a_w_ref):
    n, c, h = p_h_ref.shape
    w = p_w_ref.shape[2]
    use_mxu = c >= 64                         # trace-time layout/unit choice

    def conv(wt, bias, z):                    # wt: (o, i), z: (n, i, s) -> (n, o, s)
        if use_mxu:
            # Per-sample 2-D MXU matmuls: avoids the (n, o, i, s) VPU blow-up.
            return jnp.stack(
                [jnp.dot(wt, z[i], preferred_element_type=jnp.float32)
                 for i in range(n)], axis=0) + bias
        return jnp.sum(z[:, None, :, :] * wt[None, :, :, None], axis=2) + bias

    p_h = p_h_ref[...]                        # (n, c, h)
    p_w = p_w_ref[...]                        # (n, c, w)
    w1 = w1_ref[...]
    b1 = b1_ref[...]

    zh = conv(w1, b1, p_h)                    # (n, mip, h)
    zw = conv(w1, b1, p_w)                    # (n, mip, w)

    # BatchNorm2d (training mode): biased per-channel stats over n*(h+w) rows,
    # combined across the two branches without concatenating them.
    count = float(n * (h + w))

    def _rsum(z):                             # -> (1, mip, 1)
        return jnp.sum(jnp.sum(z, axis=2, keepdims=True), axis=0, keepdims=True)

    mu = (_rsum(zh) + _rsum(zw)) / count
    var = (_rsum((zh - mu) ** 2) + _rsum((zw - mu) ** 2)) / count
    scale = gamma_ref[...][None, :, :] * jax.lax.rsqrt(var + BN_EPS)
    shift = beta_ref[...][None, :, :]
    zh = (zh - mu) * scale + shift
    zw = (zw - mu) * scale + shift

    # h_swish: x * relu6(x + 3) / 6
    zh = zh * (jnp.clip(zh + 3.0, 0.0, 6.0) * (1.0 / 6.0))
    zw = zw * (jnp.clip(zw + 3.0, 0.0, 6.0) * (1.0 / 6.0))

    a_h_ref[...] = jax.nn.sigmoid(conv(wh_ref[...], bh_ref[...], zh))   # (n, c, h)
    a_w_ref[...] = jax.nn.sigmoid(conv(ww_ref[...], bw_ref[...], zw))   # (n, c, w)


# ----------------------------------------------------------------------------
# Kernel C: out = x * a_w * a_h on LANE-DENSE (1, C, TH*W) blocks.
#   x/out block: (1, C, TH*W)   a_h block: (1, 1, C, TH)   a_w block: (1, C, W)
# The gate is rebuilt per block as a lane concat of per-H-row outer products,
# keeping stores unmasked and avoiding any trailing-1 (128x-padded) gate dims.
# ----------------------------------------------------------------------------
def coord_gate_kernel(x_ref, a_h_ref, a_w_ref, out_ref):
    a_h = a_h_ref[...][:, 0]                  # (1, C, TH)
    a_w = a_w_ref[...]                        # (1, C, W)
    th = a_h.shape[2]
    rows = [a_h[:, :, r:r + 1] * a_w for r in range(th)]
    gate = rows[0] if th == 1 else jnp.concatenate(rows, axis=2)   # (1, C, TH*W)
    out_ref[...] = (x_ref[...] * gate).astype(out_ref.dtype)


# ----------------------------------------------------------------------------
# Wrapper: NCHW in, NCHW out.
# ----------------------------------------------------------------------------
def coord_att_forward(x_nchw, params):
    n, c, h, w = x_nchw.shape
    dtype = x_nchw.dtype
    itemsize = jnp.dtype(dtype).itemsize
    mip = params["w1"].shape[0]

    cap = _vmem_capacity_bytes()
    limit_cap = int(min(cap * 3 // 4, 96 << 20))          # 48 MiB on v7x
    target = (6 << 20) if cap >= (100 << 20) else (3 << 20)

    # ---- Kernel A: pooling, grid (N, C-tiles), single read of x. ----
    tc = _pick_c_tile(c, h, w, n, itemsize, target)
    a_blocks = [_padded_bytes((1, tc, h, w), itemsize),
                _padded_bytes((1, tc, h), 4),
                _padded_bytes((1, tc, w), 4)]
    p_h, p_w = pl.pallas_call(
        coord_pool_kernel,
        out_shape=(jax.ShapeDtypeStruct((n, c, h), jnp.float32),
                   jax.ShapeDtypeStruct((n, c, w), jnp.float32)),
        grid=(n, pl.cdiv(c, tc)),
        in_specs=[pl.BlockSpec((1, tc, h, w), lambda i, j: (i, j, 0, 0))],
        out_specs=(pl.BlockSpec((1, tc, h), lambda i, j: (i, j, 0)),
                   pl.BlockSpec((1, tc, w), lambda i, j: (i, j, 0))),
        compiler_params=pltpu.CompilerParams(
            dimension_semantics=("parallel", "parallel"),
            vmem_limit_bytes=_vmem_limit(a_blocks, limit_cap)),
    )(x_nchw)

    # ---- Kernel B: tiny epilogue, everything resident in VMEM. ----
    vmem = pl.BlockSpec(memory_space=pltpu.MemorySpace.VMEM)
    a_h, a_w = pl.pallas_call(
        coord_mlp_kernel,
        out_shape=(jax.ShapeDtypeStruct((n, c, h), jnp.float32),
                   jax.ShapeDtypeStruct((n, c, w), jnp.float32)),
        in_specs=[vmem] * 10,
        out_specs=(vmem, vmem),
    )(p_h, p_w,
      params["w1"], params["b1"].reshape(mip, 1),
      params["gamma"].reshape(mip, 1), params["beta"].reshape(mip, 1),
      params["wh"], params["bh"].reshape(c, 1),
      params["ww"], params["bw"].reshape(c, 1))

    # ---- Kernel C: gating on lane-dense (N, C, H*W). ----
    th = _pick_h_tile(h, w, c, n, itemsize, target)
    n_hblk = pl.cdiv(h, th)
    hp = n_hblk * th
    if hp != h:
        a_h = jnp.pad(a_h, ((0, 0), (0, 0), (0, hp - h)))
    # (n, n_hblk, c, th): each grid step fetches its th-row gate slice as a
    # legal (1, 1, C, th) block. a_h is tiny, so this relayout is negligible.
    a_h_b = a_h.reshape(n, c, n_hblk, th).transpose(0, 2, 1, 3)

    x_flat = x_nchw.reshape(n, c, h * w)       # free view of contiguous NCHW
    t = th * w
    c_blocks = [_padded_bytes((1, c, t), itemsize),      # x block
                _padded_bytes((1, c, t), itemsize),      # out block
                _padded_bytes((1, 1, c, th), 4),
                _padded_bytes((1, c, w), 4)]
    out_flat = pl.pallas_call(
        coord_gate_kernel,
        out_shape=jax.ShapeDtypeStruct((n, c, h * w), dtype),
        grid=(n, n_hblk),
        in_specs=[pl.BlockSpec((1, c, t), lambda i, j: (i, 0, j)),
                  pl.BlockSpec((1, 1, c, th), lambda i, j: (i, j, 0, 0)),
                  pl.BlockSpec((1, c, w), lambda i, j: (i, 0, 0))],
        out_specs=pl.BlockSpec((1, c, t), lambda i, j: (i, 0, j)),
        compiler_params=pltpu.CompilerParams(
            dimension_semantics=("parallel", "parallel"),
            vmem_limit_bytes=_vmem_limit(c_blocks, limit_cap)),
    )(x_flat, a_h_b, a_w)
    return out_flat.reshape(n, c, h, w)


# ----------------------------------------------------------------------------
# Pure-JAX reference (mirrors the PyTorch forward in NCHW, torch weight layout).
# ----------------------------------------------------------------------------
def coord_att_reference(x, params):
    n, c, h, w = x.shape
    w1, b1 = params["w1"], params["b1"]           # (mip, c), (mip,)
    gamma, beta = params["gamma"], params["beta"]
    wh, bh = params["wh"], params["bh"]           # (c, mip), (c,)
    ww, bw = params["ww"], params["bw"]

    x_h = jnp.mean(x, axis=3)                               # (n, c, h)
    x_w = jnp.mean(x, axis=2)                               # (n, c, w)
    y = jnp.concatenate([x_h, x_w], axis=2)                 # (n, c, h+w)
    y = jnp.einsum("mc,ncs->nms", w1, y) + b1[None, :, None]
    mu = jnp.mean(y, axis=(0, 2), keepdims=True)
    var = jnp.mean((y - mu) ** 2, axis=(0, 2), keepdims=True)
    y = (y - mu) / jnp.sqrt(var + BN_EPS) * gamma[None, :, None] \
        + beta[None, :, None]
    y = y * jnp.clip(y + 3.0, 0.0, 6.0) / 6.0
    y_h, y_w = y[:, :, :h], y[:, :, h:]
    a_h = jax.nn.sigmoid(jnp.einsum("cm,nms->ncs", wh, y_h) + bh[None, :, None])
    a_w = jax.nn.sigmoid(jnp.einsum("cm,nms->ncs", ww, y_w) + bw[None, :, None])
    return x * a_w[:, :, None, :] * a_h[:, :, :, None]


if __name__ == "__main__":
    # Module config: CoordAtt(inp=4, reduction=32) -> mip = max(8, 4//32) = 8
    N, C, H, W = 2, 4, 16, 16
    MIP = max(8, C // 32)

    key = jax.random.PRNGKey(0)
    kx, k0, k1, k2, k3, k4, k5, k6, k7 = jax.random.split(key, 9)

    x = jax.random.normal(kx, (N, C, H, W), jnp.float32)

    # Deterministic synthetic parameters in torch layout: W[out, in].
    params = {
        "w1":    0.3 * jax.random.normal(k0, (MIP, C), jnp.float32),   # conv1
        "b1":    0.1 * jax.random.normal(k1, (MIP,), jnp.float32),
        "gamma": 1.0 + 0.1 * jax.random.normal(k2, (MIP,), jnp.float32),
        "beta":  0.1 * jax.random.normal(k3, (MIP,), jnp.float32),
        "wh":    0.3 * jax.random.normal(k4, (C, MIP), jnp.float32),   # conv_h
        "bh":    0.1 * jax.random.normal(k5, (C,), jnp.float32),
        "ww":    0.3 * jax.random.normal(k6, (C, MIP), jnp.float32),   # conv_w
        "bw":    0.1 * jax.random.normal(k7, (C,), jnp.float32),
    }

    fwd = jax.jit(coord_att_forward)
    out = jax.block_until_ready(fwd(x, params))

    ref = coord_att_reference(x, params)
    assert out.shape == (N, C, H, W)
    if not bool(jnp.allclose(out, ref, atol=2e-2, rtol=2e-2)):
        raise AssertionError("Pallas CoordAtt output does not match reference")

    print("KERNEL_OK")
</pallas_src>

<mosaic_0001>
module attributes {stable_mosaic.version = 11 : i64} {
  func.func @coord_pool_kernel(%arg0: i32, %arg1: i32, %arg2: memref<1x4x16x16xf32, #tpu.memory_space<vmem>>, %arg3: memref<1x4x16xf32, #tpu.memory_space<vmem>>, %arg4: memref<1x4x16xf32, #tpu.memory_space<vmem>>) attributes {dimension_semantics = [#tpu.dimension_semantics<parallel>, #tpu.dimension_semantics<parallel>], iteration_bounds = array<i64: 2, 1>, scalar_prefetch = 0 : i64, scratch_operands = 0 : i64, tpu.core_type = #tpu.core_type<tc>, window_params = [{transform_indices = @transform_0, window_bounds = array<i64: 1, 4, 16, 16>}, {transform_indices = @transform_1, window_bounds = array<i64: 1, 4, 16>}, {transform_indices = @transform_2, window_bounds = array<i64: 1, 4, 16>}]} {
    %c0 = arith.constant 0 : index
    %c0_0 = arith.constant 0 : index
    %c0_1 = arith.constant 0 : index
    %c0_2 = arith.constant 0 : index
    %0 = vector.load %arg2[%c0, %c0_0, %c0_1, %c0_2] : memref<1x4x16x16xf32, #tpu.memory_space<vmem>>, vector<1x4x16x16xf32>
    %cst = arith.constant dense<0.000000e+00> : vector<1x4x16xf32>
    %1 = vector.multi_reduction <add>, %0, %cst [3] : vector<1x4x16x16xf32> to vector<1x4x16xf32>
    %cst_3 = arith.constant 1.600000e+01 : f32
    %2 = vector.broadcast %cst_3 : f32 to vector<1x4x16xf32>
    %3 = arith.divf %1, %2 : vector<1x4x16xf32>
    %c0_4 = arith.constant 0 : index
    %c0_5 = arith.constant 0 : index
    %c0_6 = arith.constant 0 : index
    %4 = vector.load %arg3[%c0_4, %c0_5, %c0_6] : memref<1x4x16xf32, #tpu.memory_space<vmem>>, vector<1x4x16xf32>
    tpu.vector_store %arg3[%c0_4, %c0_5, %c0_6], %3 {strides = array<i32>} : memref<1x4x16xf32, #tpu.memory_space<vmem>>, vector<1x4x16xf32>,
    %cst_7 = arith.constant dense<0.000000e+00> : vector<1x4x16xf32>
    %5 = vector.multi_reduction <add>, %0, %cst_7 [2] : vector<1x4x16x16xf32> to vector<1x4x16xf32>
    %cst_8 = arith.constant 1.600000e+01 : f32
    %6 = vector.broadcast %cst_8 : f32 to vector<1x4x16xf32>
    %7 = arith.divf %5, %6 : vector<1x4x16xf32>
    %c0_9 = arith.constant 0 : index
    %c0_10 = arith.constant 0 : index
    %c0_11 = arith.constant 0 : index
    %8 = vector.load %arg4[%c0_9, %c0_10, %c0_11] : memref<1x4x16xf32, #tpu.memory_space<vmem>>, vector<1x4x16xf32>
    tpu.vector_store %arg4[%c0_9, %c0_10, %c0_11], %7 {strides = array<i32>} : memref<1x4x16xf32, #tpu.memory_space<vmem>>, vector<1x4x16xf32>,
    return
  }
  func.func @transform_0(%arg0: i32, %arg1: i32) -> (i32, i32, i32, i32) {
    %c0_i32 = arith.constant 0 : i32
    %c0_i32_0 = arith.constant 0 : i32
    %c0_i32_1 = arith.constant 0 : i32
    return %arg0, %arg1, %c0_i32, %c0_i32_0 : i32, i32, i32, i32
  }
  func.func @transform_1(%arg0: i32, %arg1: i32) -> (i32, i32, i32) {
    %c0_i32 = arith.constant 0 : i32
    %c0_i32_0 = arith.constant 0 : i32
    return %arg0, %arg1, %c0_i32 : i32, i32, i32
  }
  func.func @transform_2(%arg0: i32, %arg1: i32) -> (i32, i32, i32) {
    %c0_i32 = arith.constant 0 : i32
    %c0_i32_0 = arith.constant 0 : i32
    return %arg0, %arg1, %c0_i32 : i32, i32, i32
  }
}

module attributes {stable_mosaic.version = 11 : i64} {
  func.func @coord_gate_kernel(%arg0: i32, %arg1: i32, %arg2: memref<1x4x128xf32, #tpu.memory_space<vmem>>, %arg3: memref<1x1x4x8xf32, #tpu.memory_space<vmem>>, %arg4: memref<1x4x16xf32, #tpu.memory_space<vmem>>, %arg5: memref<1x4x128xf32, #tpu.memory_space<vmem>>) attributes {dimension_semantics = [#tpu.dimension_semantics<parallel>, #tpu.dimension_semantics<parallel>], iteration_bounds = array<i64: 2, 2>, scalar_prefetch = 0 : i64, scratch_operands = 0 : i64, tpu.core_type = #tpu.core_type<tc>, window_params = [{transform_indices = @transform_0, window_bounds = array<i64: 1, 4, 128>}, {transform_indices = @transform_1, window_bounds = array<i64: 1, 1, 4, 8>}, {transform_indices = @transform_2, window_bounds = array<i64: 1, 4, 16>}, {transform_indices = @transform_3, window_bounds = array<i64: 1, 4, 128>}]} {
    %c0 = arith.constant 0 : index
    %c0_0 = arith.constant 0 : index
    %c0_1 = arith.constant 0 : index
    %c0_2 = arith.constant 0 : index
    %0 = vector.load %arg3[%c0, %c0_0, %c0_1, %c0_2] : memref<1x1x4x8xf32, #tpu.memory_space<vmem>>, vector<1x1x4x8xf32>
    %1 = vector.shape_cast %0 : vector<1x1x4x8xf32> to vector<1x4x8xf32>
    %c0_3 = arith.constant 0 : index
    %c0_4 = arith.constant 0 : index
    %c0_5 = arith.constant 0 : index
    %2 = vector.load %arg4[%c0_3, %c0_4, %c0_5] : memref<1x4x16xf32, #tpu.memory_space<vmem>>, vector<1x4x16xf32>
    %3 = vector.extract_strided_slice %1 {offsets = [0, 0, 0], sizes = [1, 4, 1], strides = [1, 1, 1]} : vector<1x4x8xf32> to vector<1x4x1xf32>
    %4 = vector.broadcast %3 : vector<1x4x1xf32> to vector<1x4x16xf32>
    %5 = arith.mulf %4, %2 : vector<1x4x16xf32>
    %6 = vector.extract_strided_slice %1 {offsets = [0, 0, 1], sizes = [1, 4, 1], strides = [1, 1, 1]} : vector<1x4x8xf32> to vector<1x4x1xf32>
    %7 = vector.broadcast %6 : vector<1x4x1xf32> to vector<1x4x16xf32>
    %8 = arith.mulf %7, %2 : vector<1x4x16xf32>
    %9 = vector.extract_strided_slice %1 {offsets = [0, 0, 2], sizes = [1, 4, 1], strides = [1, 1, 1]} : vector<1x4x8xf32> to vector<1x4x1xf32>
    %10 = vector.broadcast %9 : vector<1x4x1xf32> to vector<1x4x16xf32>
    %11 = arith.mulf %10, %2 : vector<1x4x16xf32>
    %12 = vector.extract_strided_slice %1 {offsets = [0, 0, 3], sizes = [1, 4, 1], strides = [1, 1, 1]} : vector<1x4x8xf32> to vector<1x4x1xf32>
    %13 = vector.broadcast %12 : vector<1x4x1xf32> to vector<1x4x16xf32>
    %14 = arith.mulf %13, %2 : vector<1x4x16xf32>
    %15 = vector.extract_strided_slice %1 {offsets = [0, 0, 4], sizes = [1, 4, 1], strides = [1, 1, 1]} : vector<1x4x8xf32> to vector<1x4x1xf32>
    %16 = vector.broadcast %15 : vector<1x4x1xf32> to vector<1x4x16xf32>
    %17 = arith.mulf %16, %2 : vector<1x4x16xf32>
    %18 = vector.extract_strided_slice %1 {offsets = [0, 0, 5], sizes = [1, 4, 1], strides = [1, 1, 1]} : vector<1x4x8xf32> to vector<1x4x1xf32>
    %19 = vector.broadcast %18 : vector<1x4x1xf32> to vector<1x4x16xf32>
    %20 = arith.mulf %19, %2 : vector<1x4x16xf32>
    %21 = vector.extract_strided_slice %1 {offsets = [0, 0, 6], sizes = [1, 4, 1], strides = [1, 1, 1]} : vector<1x4x8xf32> to vector<1x4x1xf32>
    %22 = vector.broadcast %21 : vector<1x4x1xf32> to vector<1x4x16xf32>
    %23 = arith.mulf %22, %2 : vector<1x4x16xf32>
    %24 = vector.extract_strided_slice %1 {offsets = [0, 0, 7], sizes = [1, 4, 1], strides = [1, 1, 1]} : vector<1x4x8xf32> to vector<1x4x1xf32>
    %25 = vector.broadcast %24 : vector<1x4x1xf32> to vector<1x4x16xf32>
    %26 = arith.mulf %25, %2 : vector<1x4x16xf32>
    %27 = tpu.concatenate %5, %8, %11, %14, %17, %20, %23, %26 in 2 : vector<1x4x16xf32>, vector<1x4x16xf32>, vector<1x4x16xf32>, vector<1x4x16xf32>, vector<1x4x16xf32>, vector<1x4x16xf32>, vector<1x4x16xf32>, vector<1x4x16xf32> -> vector<1x4x128xf32>
    %c0_6 = arith.constant 0 : index
    %c0_7 = arith.constant 0 : index
    %c0_8 = arith.constant 0 : index
    %28 = vector.load %arg2[%c0_6, %c0_7, %c0_8] : memref<1x4x128xf32, #tpu.memory_space<vmem>>, vector<1x4x128xf32>
    %29 = arith.mulf %28, %27 : vector<1x4x128xf32>
    %c0_9 = arith.constant 0 : index
    %c0_10 = arith.constant 0 : index
    %c0_11 = arith.constant 0 : index
    %30 = vector.load %arg5[%c0_9, %c0_10, %c0_11] : memref<1x4x128xf32, #tpu.memory_space<vmem>>, vector<1x4x128xf32>
    tpu.vector_store %arg5[%c0_9, %c0_10, %c0_11], %29 {strides = array<i32>} : memref<1x4x128xf32, #tpu.memory_space<vmem>>, vector<1x4x128xf32>,
    return
  }
  func.func @transform_0(%arg0: i32, %arg1: i32) -> (i32, i32, i32) {
    %c0_i32 = arith.constant 0 : i32
    %c0_i32_0 = arith.constant 0 : i32
    return %arg0, %c0_i32, %arg1 : i32, i32, i32
  }
  func.func @transform_1(%arg0: i32, %arg1: i32) -> (i32, i32, i32, i32) {
    %c0_i32 = arith.constant 0 : i32
    %c0_i32_0 = arith.constant 0 : i32
    %c0_i32_1 = arith.constant 0 : i32
    return %arg0, %arg1, %c0_i32, %c0_i32_0 : i32, i32, i32, i32
  }
  func.func @transform_2(%arg0: i32, %arg1: i32) -> (i32, i32, i32) {
    %c0_i32 = arith.constant 0 : i32
    %c0_i32_0 = arith.constant 0 : i32
    %c0_i32_1 = arith.constant 0 : i32
    return %arg0, %c0_i32, %c0_i32_0 : i32, i32, i32
  }
  func.func @transform_3(%arg0: i32, %arg1: i32) -> (i32, i32, i32) {
    %c0_i32 = arith.constant 0 : i32
    %c0_i32_0 = arith.constant 0 : i32
    return %arg0, %c0_i32, %arg1 : i32, i32, i32
  }
}

module attributes {stable_mosaic.version = 11 : i64} {
  func.func @coord_mlp_kernel(%arg0: memref<2x4x16xf32, #tpu.memory_space<vmem>>, %arg1: memref<2x4x16xf32, #tpu.memory_space<vmem>>, %arg2: memref<8x4xf32, #tpu.memory_space<vmem>>, %arg3: memref<8x1xf32, #tpu.memory_space<vmem>>, %arg4: memref<8x1xf32, #tpu.memory_space<vmem>>, %arg5: memref<8x1xf32, #tpu.memory_space<vmem>>, %arg6: memref<4x8xf32, #tpu.memory_space<vmem>>, %arg7: memref<4x1xf32, #tpu.memory_space<vmem>>, %arg8: memref<4x8xf32, #tpu.memory_space<vmem>>, %arg9: memref<4x1xf32, #tpu.memory_space<vmem>>, %arg10: memref<2x4x16xf32, #tpu.memory_space<vmem>>, %arg11: memref<2x4x16xf32, #tpu.memory_space<vmem>>) attributes {dimension_semantics = [], scalar_prefetch = 0 : i64, scratch_operands = 0 : i64, tpu.core_type = #tpu.core_type<tc>} {
    %c0 = arith.constant 0 : index
    %c0_0 = arith.constant 0 : index
    %c0_1 = arith.constant 0 : index
    %0 = vector.load %arg0[%c0, %c0_0, %c0_1] : memref<2x4x16xf32, #tpu.memory_space<vmem>>, vector<2x4x16xf32>
    %c0_2 = arith.constant 0 : index
    %c0_3 = arith.constant 0 : index
    %c0_4 = arith.constant 0 : index
    %1 = vector.load %arg1[%c0_2, %c0_3, %c0_4] : memref<2x4x16xf32, #tpu.memory_space<vmem>>, vector<2x4x16xf32>
    %c0_5 = arith.constant 0 : index
    %c0_6 = arith.constant 0 : index
    %2 = vector.load %arg2[%c0_5, %c0_6] : memref<8x4xf32, #tpu.memory_space<vmem>>, vector<8x4xf32>
    %c0_7 = arith.constant 0 : index
    %c0_8 = arith.constant 0 : index
    %3 = vector.load %arg3[%c0_7, %c0_8] : memref<8x1xf32, #tpu.memory_space<vmem>>, vector<8x1xf32>
    %4 = vector.shape_cast %0 : vector<2x4x16xf32> to vector<2x1x4x16xf32>
    %5 = vector.shape_cast %2 : vector<8x4xf32> to vector<1x8x4x1xf32>
    %6 = vector.broadcast %4 : vector<2x1x4x16xf32> to vector<2x8x4x16xf32>
    %7 = vector.broadcast %5 : vector<1x8x4x1xf32> to vector<2x8x4x16xf32>
    %8 = arith.mulf %6, %7 : vector<2x8x4x16xf32>
    %cst = arith.constant dense<0.000000e+00> : vector<2x8x16xf32>
    %9 = vector.multi_reduction <add>, %8, %cst [2] : vector<2x8x4x16xf32> to vector<2x8x16xf32>
    %10 = vector.shape_cast %3 : vector<8x1xf32> to vector<1x8x1xf32>
    %11 = vector.broadcast %10 : vector<1x8x1xf32> to vector<2x8x16xf32>
    %12 = arith.addf %9, %11 : vector<2x8x16xf32>
    %13 = vector.shape_cast %1 : vector<2x4x16xf32> to vector<2x1x4x16xf32>
    %14 = vector.shape_cast %2 : vector<8x4xf32> to vector<1x8x4x1xf32>
    %15 = vector.broadcast %13 : vector<2x1x4x16xf32> to vector<2x8x4x16xf32>
    %16 = vector.broadcast %14 : vector<1x8x4x1xf32> to vector<2x8x4x16xf32>
    %17 = arith.mulf %15, %16 : vector<2x8x4x16xf32>
    %cst_9 = arith.constant dense<0.000000e+00> : vector<2x8x16xf32>
    %18 = vector.multi_reduction <add>, %17, %cst_9 [2] : vector<2x8x4x16xf32> to vector<2x8x16xf32>
    %19 = vector.shape_cast %3 : vector<8x1xf32> to vector<1x8x1xf32>
    %20 = vector.broadcast %19 : vector<1x8x1xf32> to vector<2x8x16xf32>
    %21 = arith.addf %18, %20 : vector<2x8x16xf32>
    %cst_10 = arith.constant dense<0.000000e+00> : vector<2x8xf32>
    %22 = vector.multi_reduction <add>, %12, %cst_10 [2] : vector<2x8x16xf32> to vector<2x8xf32>
    %23 = vector.shape_cast %22 : vector<2x8xf32> to vector<2x8x1xf32>
    %cst_11 = arith.constant dense<0.000000e+00> : vector<8x1xf32>
    %24 = vector.multi_reduction <add>, %23, %cst_11 [0] : vector<2x8x1xf32> to vector<8x1xf32>
    %25 = vector.shape_cast %24 : vector<8x1xf32> to vector<1x8x1xf32>
    %cst_12 = arith.constant dense<0.000000e+00> : vector<2x8xf32>
    %26 = vector.multi_reduction <add>, %21, %cst_12 [2] : vector<2x8x16xf32> to vector<2x8xf32>
    %27 = vector.shape_cast %26 : vector<2x8xf32> to vector<2x8x1xf32>
    %cst_13 = arith.constant dense<0.000000e+00> : vector<8x1xf32>
    %28 = vector.multi_reduction <add>, %27, %cst_13 [0] : vector<2x8x1xf32> to vector<8x1xf32>
    %29 = vector.shape_cast %28 : vector<8x1xf32> to vector<1x8x1xf32>
    %30 = arith.addf %25, %29 : vector<1x8x1xf32>
    %cst_14 = arith.constant 6.400000e+01 : f32
    %31 = vector.broadcast %cst_14 : f32 to vector<1x8x1xf32>
    %32 = arith.divf %30, %31 : vector<1x8x1xf32>
    %33 = vector.broadcast %32 : vector<1x8x1xf32> to vector<2x8x16xf32>
    %34 = arith.subf %12, %33 : vector<2x8x16xf32>
    %35 = arith.mulf %34, %34 : vector<2x8x16xf32>
    %cst_15 = arith.constant dense<0.000000e+00> : vector<2x8xf32>
    %36 = vector.multi_reduction <add>, %35, %cst_15 [2] : vector<2x8x16xf32> to vector<2x8xf32>
    %37 = vector.shape_cast %36 : vector<2x8xf32> to vector<2x8x1xf32>
    %cst_16 = arith.constant dense<0.000000e+00> : vector<8x1xf32>
    %38 = vector.multi_reduction <add>, %37, %cst_16 [0] : vector<2x8x1xf32> to vector<8x1xf32>
    %39 = vector.shape_cast %38 : vector<8x1xf32> to vector<1x8x1xf32>
    %40 = vector.broadcast %32 : vector<1x8x1xf32> to vector<2x8x16xf32>
    %41 = arith.subf %21, %40 : vector<2x8x16xf32>
    %42 = arith.mulf %41, %41 : vector<2x8x16xf32>
    %cst_17 = arith.constant dense<0.000000e+00> : vector<2x8xf32>
    %43 = vector.multi_reduction <add>, %42, %cst_17 [2] : vector<2x8x16xf32> to vector<2x8xf32>
    %44 = vector.shape_cast %43 : vector<2x8xf32> to vector<2x8x1xf32>
    %cst_18 = arith.constant dense<0.000000e+00> : vector<8x1xf32>
    %45 = vector.multi_reduction <add>, %44, %cst_18 [0] : vector<2x8x1xf32> to vector<8x1xf32>
    %46 = vector.shape_cast %45 : vector<8x1xf32> to vector<1x8x1xf32>
    %47 = arith.addf %39, %46 : vector<1x8x1xf32>
    %cst_19 = arith.constant 6.400000e+01 : f32
    %48 = vector.broadcast %cst_19 : f32 to vector<1x8x1xf32>
    %49 = arith.divf %47, %48 : vector<1x8x1xf32>
    %c0_20 = arith.constant 0 : index
    %c0_21 = arith.constant 0 : index
    %50 = vector.load %arg4[%c0_20, %c0_21] : memref<8x1xf32, #tpu.memory_space<vmem>>, vector<8x1xf32>
    %51 = vector.shape_cast %50 : vector<8x1xf32> to vector<1x8x1xf32>
    %cst_22 = arith.constant 9.99999974E-6 : f32
    %52 = vector.broadcast %cst_22 : f32 to vector<1x8x1xf32>
    %53 = arith.addf %49, %52 : vector<1x8x1xf32>
    %54 = math.rsqrt %53 : vector<1x8x1xf32>
    %55 = arith.mulf %51, %54 : vector<1x8x1xf32>
    %c0_23 = arith.constant 0 : index
    %c0_24 = arith.constant 0 : index
    %56 = vector.load %arg5[%c0_23, %c0_24] : memref<8x1xf32, #tpu.memory_space<vmem>>, vector<8x1xf32>
    %57 = vector.shape_cast %56 : vector<8x1xf32> to vector<1x8x1xf32>
    %58 = vector.broadcast %32 : vector<1x8x1xf32> to vector<2x8x16xf32>
    %59 = arith.subf %12, %58 : vector<2x8x16xf32>
    %60 = vector.broadcast %55 : vector<1x8x1xf32> to vector<2x8x16xf32>
    %61 = arith.mulf %59, %60 : vector<2x8x16xf32>
    %62 = vector.broadcast %57 : vector<1x8x1xf32> to vector<2x8x16xf32>
    %63 = arith.addf %61, %62 : vector<2x8x16xf32>
    %64 = vector.broadcast %32 : vector<1x8x1xf32> to vector<2x8x16xf32>
    %65 = arith.subf %21, %64 : vector<2x8x16xf32>
    %66 = vector.broadcast %55 : vector<1x8x1xf32> to vector<2x8x16xf32>
    %67 = arith.mulf %65, %66 : vector<2x8x16xf32>
    %68 = vector.broadcast %57 : vector<1x8x1xf32> to vector<2x8x16xf32>
    %69 = arith.addf %67, %68 : vector<2x8x16xf32>
    %cst_25 = arith.constant 3.000000e+00 : f32
    %70 = vector.broadcast %cst_25 : f32 to vector<2x8x16xf32>
    %71 = arith.addf %63, %70 : vector<2x8x16xf32>
    %cst_26 = arith.constant 0.000000e+00 : f32
    %cst_27 = arith.constant 6.000000e+00 : f32
    %72 = vector.broadcast %cst_26 : f32 to vector<2x8x16xf32>
    %73 = arith.maximumf %72, %71 : vector<2x8x16xf32>
    %74 = vector.broadcast %cst_27 : f32 to vector<2x8x16xf32>
    %75 = arith.minimumf %74, %73 : vector<2x8x16xf32>
    %cst_28 = arith.constant 0.166666672 : f32
    %76 = vector.broadcast %cst_28 : f32 to vector<2x8x16xf32>
    %77 = arith.mulf %75, %76 : vector<2x8x16xf32>
    %78 = arith.mulf %63, %77 : vector<2x8x16xf32>
    %cst_29 = arith.constant 3.000000e+00 : f32
    %79 = vector.broadcast %cst_29 : f32 to vector<2x8x16xf32>
    %80 = arith.addf %69, %79 : vector<2x8x16xf32>
    %cst_30 = arith.constant 0.000000e+00 : f32
    %cst_31 = arith.constant 6.000000e+00 : f32
    %81 = vector.broadcast %cst_30 : f32 to vector<2x8x16xf32>
    %82 = arith.maximumf %81, %80 : vector<2x8x16xf32>
    %83 = vector.broadcast %cst_31 : f32 to vector<2x8x16xf32>
    %84 = arith.minimumf %83, %82 : vector<2x8x16xf32>
    %cst_32 = arith.constant 0.166666672 : f32
    %85 = vector.broadcast %cst_32 : f32 to vector<2x8x16xf32>
    %86 = arith.mulf %84, %85 : vector<2x8x16xf32>
    %87 = arith.mulf %69, %86 : vector<2x8x16xf32>
    %c0_33 = arith.constant 0 : index
    %c0_34 = arith.constant 0 : index
    %88 = vector.load %arg6[%c0_33, %c0_34] : memref<4x8xf32, #tpu.memory_space<vmem>>, vector<4x8xf32>
    %c0_35 = arith.constant 0 : index
    %c0_36 = arith.constant 0 : index
    %89 = vector.load %arg7[%c0_35, %c0_36] : memref<4x1xf32, #tpu.memory_space<vmem>>, vector<4x1xf32>
    %90 = vector.shape_cast %78 : vector<2x8x16xf32> to vector<2x1x8x16xf32>
    %91 = vector.shape_cast %88 : vector<4x8xf32> to vector<1x4x8x1xf32>
    %92 = vector.broadcast %90 : vector<2x1x8x16xf32> to vector<2x4x8x16xf32>
    %93 = vector.broadcast %91 : vector<1x4x8x1xf32> to vector<2x4x8x16xf32>
    %94 = arith.mulf %92, %93 : vector<2x4x8x16xf32>
    %cst_37 = arith.constant dense<0.000000e+00> : vector<2x4x16xf32>
    %95 = vector.multi_reduction <add>, %94, %cst_37 [2] : vector<2x4x8x16xf32> to vector<2x4x16xf32>
    %96 = vector.shape_cast %89 : vector<4x1xf32> to vector<1x4x1xf32>
    %97 = vector.broadcast %96 : vector<1x4x1xf32> to vector<2x4x16xf32>
    %98 = arith.addf %95, %97 : vector<2x4x16xf32>
    %99 = arith.negf %98 : vector<2x4x16xf32>
    %100 = math.exp %99 : vector<2x4x16xf32>
    %cst_38 = arith.constant 1.000000e+00 : f32
    %101 = vector.broadcast %cst_38 : f32 to vector<2x4x16xf32>
    %102 = arith.addf %101, %100 : vector<2x4x16xf32>
    %103 = arith.divf %101, %102 : vector<2x4x16xf32>
    %c0_39 = arith.constant 0 : index
    %c0_40 = arith.constant 0 : index
    %c0_41 = arith.constant 0 : index
    %104 = vector.load %arg10[%c0_39, %c0_40, %c0_41] : memref<2x4x16xf32, #tpu.memory_space<vmem>>, vector<2x4x16xf32>
    tpu.vector_store %arg10[%c0_39, %c0_40, %c0_41], %103 {strides = array<i32>} : memref<2x4x16xf32, #tpu.memory_space<vmem>>, vector<2x4x16xf32>,
    %c0_42 = arith.constant 0 : index
    %c0_43 = arith.constant 0 : index
    %105 = vector.load %arg8[%c0_42, %c0_43] : memref<4x8xf32, #tpu.memory_space<vmem>>, vector<4x8xf32>
    %c0_44 = arith.constant 0 : index
    %c0_45 = arith.constant 0 : index
    %106 = vector.load %arg9[%c0_44, %c0_45] : memref<4x1xf32, #tpu.memory_space<vmem>>, vector<4x1xf32>
    %107 = vector.shape_cast %87 : vector<2x8x16xf32> to vector<2x1x8x16xf32>
    %108 = vector.shape_cast %105 : vector<4x8xf32> to vector<1x4x8x1xf32>
    %109 = vector.broadcast %107 : vector<2x1x8x16xf32> to vector<2x4x8x16xf32>
    %110 = vector.broadcast %108 : vector<1x4x8x1xf32> to vector<2x4x8x16xf32>
    %111 = arith.mulf %109, %110 : vector<2x4x8x16xf32>
    %cst_46 = arith.constant dense<0.000000e+00> : vector<2x4x16xf32>
    %112 = vector.multi_reduction <add>, %111, %cst_46 [2] : vector<2x4x8x16xf32> to vector<2x4x16xf32>
    %113 = vector.shape_cast %106 : vector<4x1xf32> to vector<1x4x1xf32>
    %114 = vector.broadcast %113 : vector<1x4x1xf32> to vector<2x4x16xf32>
    %115 = arith.addf %112, %114 : vector<2x4x16xf32>
    %116 = arith.negf %115 : vector<2x4x16xf32>
    %117 = math.exp %116 : vector<2x4x16xf32>
    %cst_47 = arith.constant 1.000000e+00 : f32
    %118 = vector.broadcast %cst_47 : f32 to vector<2x4x16xf32>
    %119 = arith.addf %118, %117 : vector<2x4x16xf32>
    %120 = arith.divf %118, %119 : vector<2x4x16xf32>
    %c0_48 = arith.constant 0 : index
    %c0_49 = arith.constant 0 : index
    %c0_50 = arith.constant 0 : index
    %121 = vector.load %arg11[%c0_48, %c0_49, %c0_50] : memref<2x4x16xf32, #tpu.memory_space<vmem>>, vector<2x4x16xf32>
    tpu.vector_store %arg11[%c0_48, %c0_49, %c0_50], %120 {strides = array<i32>} : memref<2x4x16xf32, #tpu.memory_space<vmem>>, vector<2x4x16xf32>,
    return
  }
}

</mosaic_0001>

<bundles_post_ra>
// kernel: coord_att_forward.5
= control target key start
LH: loop header
LB: loop body
LE: loop exit
PB: predicated region body
PF: predicated region fallthrough
CT: control target
= control target key end

     0   :  { %s607_s12 = smov 0   ;;  %s609_s13 = smov 0   ;;  %s673_s0 = inlined_call_operand.vmem [shape: f32[2,4,256], index: 0, kind: input, shape index: {}]   ;;  %s674_s1 = inlined_call_operand.vmem [shape: f32[2,2,4,8], index: 1, kind: input, shape index: {}]   ;;  %s675_s2 = inlined_call_operand.vmem [shape: f32[2,4,16], index: 2, kind: input, shape index: {}]   ;;  %s676_s3 = inlined_call_operand.vmem [shape: f32[2,4,256], index: 3, kind: output, shape index: {}]  }
   0x1   :  { %s611_s14 = smov 0   ;;  %s613_s15 = smov 0  }
   0x2   :  { %s615_s16 = smov 0  }
   0x3 LB: > { %s22_s17 = sadd.s32 1, %s562_s14  ;;  %s25_s18 = sadd.s32 1, %s566_s15  ;;  %s570_s16 = sphi %s615_s16, %s13_s16   ;;  %s566_s15 = sphi %s613_s15, %s680_s15   ;;  %s562_s14 = sphi %s611_s14, %s679_s14   ;;  %s558_s13 = sphi %s609_s13, %s678_s13   ;;  %s554_s12 = sphi %s607_s12, %s677_s12  }
   0x4   : > { %p23_p0 = scmp.ge.s32.totalorder %s22_s17, 2  ;;  %p458_p1 = scmp.ge.s32.totalorder %s570_s16, 1 }
   0x5   : > { %p180_p2 = scmp.lt.s32.totalorder %s570_s16, 5 }
   0x6   : > { %s682_s17 = smov (%p23_p0, %s22_s17), 0  ;;  %s684_s18 = smov (!%p23_p0, %s25_s18), %s566_s15 }
   0x7   : > { %p181_p3 = pnand %p458_p1, %p180_p2  ;;  %p27_p4 = scmp.ge.s32.totalorder %s684_s18, 2 }
   0x8   : > { %p222_p5 = scmp.lt.s32.totalorder (!%p181_p3), %s558_s13, 1  ;;  %p224_p6 = scmp.lt.s32.totalorder (!%p181_p3), %s554_s12, 1  ;;  %v572_v0 = vmov (!%p181_p3), 3   ;;  %v573_v1 = vmov (!%p181_p3), 1   ;;  %v574_v3 = vmov (!%p181_p3), 4   ;;  %v575_v4 = vmov (!%p181_p3), 2  }
   0x9   : > { %s686_s18 = smov (%p27_p4, %s684_s18), 0  ;;  %184 = sbr.rel (%p181_p3) target bundleno = 286 (0x11e), region = 32 }
   0xa   : > { %525 = vset.pattern.permute.xlu1 (!%p181_p3), %v572_v0  ;;  %523 = vset.pattern.permute.xlu0 (!%p181_p3), %v573_v1  ;;  %v576_v5 = vmov (!%p181_p3), 5   ;;  %v577_v6 = vmov (!%p181_p3), 6   ;;  %v578_v7 = vmov (!%p181_p3), 7   ;;  %v579_v8 = vmov (!%p181_p3), 0   ;;  %s580_s29 = smov (!%p181_p3), 16   ;;  %s581_s30 = smov (!%p181_p3), 48  }
   0xb   : > { %s582_s4 = smov (!%p181_p3), 32   ;;  %s583_s5 = smov (!%p181_p3), 64   ;;  %vm321_vm0 = vcmask (!%p181_p3), 130048   ;;  %vm323_vm1 = vcmask (!%p181_p3), 261120   ;;  %vm325_vm2 = vcmask (!%p181_p3), 392192   ;;  %vm327_vm3 = vcmask (!%p181_p3), 523264  }
   0xc   : > { %s584_s6 = smov (!%p181_p3), 80   ;;  %s585_s7 = smov (!%p181_p3), 96   ;;  %vm329_vm4 = vcmask (!%p181_p3), 654336   ;;  %vm331_vm5 = vcmask (!%p181_p3), 785408   ;;  %vm333_vm6 = vcmask (!%p181_p3), 916480  }
   0xd   : > { %s586_s8 = smov (!%p181_p3), 112  }
  0x10   : > { %s688_s13 = smov (!%p222_p5, %s558_s13), 1  ;;  %s690_s12 = smov (!%p224_p6, %s554_s12), 1 }
  0x11   : > { %s459_s19 = sshll.u32 %s688_s13, 1  ;;  %s463_s25 = sshll.u32 %s688_s13, 2 }
  0x12   : > { %s227_s20 = sadd.s32 %s459_s19, %s690_s12  ;;  %s241_s28 = scalar_lea.vmem %s675_s2, %s463_s25 }
  0x13   : > { %s640_s21 = sshll.u32 %s227_s20, 2  ;;  %v251_v9 = vld [vmem:[%s241_s28] sm:$0xf] }
  0x14   : > { %s237_s24 = scalar_lea.vmem %s674_s1, %s640_s21  ;;  %s229_s11 = scalar_lea.vmem %s673_s0, %s640_s21 }
  0x15   : > { %v250_v2 = vld [vmem:[%s237_s24] sm:$0xf]  ;;  %s249_s19 = scalar_lea.vmem %s676_s3, %s640_s21 }
  0x16   : > { %269 = vperm.xlu1 %525, %v250_v2   ;;  %259 = vperm.xlu0 %523, %v250_v2   ;;  %v335_v38 = vld [vmem:[%s229_s11] sm:$0xf] }
  0x1a   : > { %526 = vset.pattern.permute.xlu1 %v574_v3  ;;  %524 = vset.pattern.permute.xlu0 %v575_v4 }
  0x1b   : > { %274 = vperm.xlu1 %526, %v250_v2   ;;  %264 = vperm.xlu0 %524, %v250_v2  }
  0x1f   : > { %527 = vset.pattern.permute.xlu1 %v576_v5  ;;  %528 = vset.pattern.permute.xlu0 %v577_v6 }
  0x20   : > { %279 = vperm.xlu1 %527, %v250_v2   ;;  %284 = vperm.xlu0 %528, %v250_v2  }
  0x24   : > { %529 = vset.pattern.permute.xlu1 %v578_v7  ;;  %531 = vset.pattern.permute.xlu0 %v578_v7 }
  0x25   : > { %289 = vperm.xlu1 %529, %v250_v2  }
  0x29   : > { %530 = vset.pattern.permute.xlu1 %v579_v8 }
  0x2a   : > { %254 = vperm.xlu1 %530, %v250_v2  }
  0x95   : > { %v270_v10 = vpop.permute.xlu1 %269  ;;  %v260_v11 = vpop.permute.xlu0 %259 }
  0x96   : > { %v262_v12 = vmul.f32 %v260_v11, %v251_v9  ;;  %v272_v13 = vmul.f32 %v270_v10, %v251_v9 }
  0x98   : > { %294 = vrot.lane.b32.xlu0 %v262_v12, %s580_s29 }
  0x9a   : > { %v275_v14 = vpop.permute.xlu1 %274  ;;  %v265_v15 = vpop.permute.xlu0 %264 }
  0x9b   : > { %v267_v16 = vmul.f32 %v265_v15, %v251_v9  ;;  %v277_v17 = vmul.f32 %v275_v14, %v251_v9 }
  0x9c   : > { %302 = vrot.lane.b32.xlu0 %v272_v13, %s581_s30 }
  0x9d   : > { %298 = vrot.lane.b32.xlu1 %v267_v16, %s582_s4 }
  0x9f   : > { %v280_v18 = vpop.permute.xlu1 %279  ;;  %v285_v19 = vpop.permute.xlu0 %284 }
  0xa0   : > { %v282_v20 = vmul.f32 %v280_v18, %v251_v9  ;;  %v287_v21 = vmul.f32 %v285_v19, %v251_v9 }
  0xa1   : > { %306 = vrot.lane.b32.xlu1 %v277_v17, %s583_s5 }
  0xa2   : > { %310 = vrot.lane.b32.xlu0 %v282_v20, %s584_s6 }
  0xa4   : > { %v290_v22 = vpop.permute.xlu1 %289 }
  0xa5   : > { %v292_v23 = vmul.f32 %v290_v22, %v251_v9  ;;  %314 = vrot.lane.b32.xlu1 %v287_v21, %s585_s7 }
  0xa7   : > { %318 = vrot.lane.b32.xlu0 %v292_v23, %s586_s8 }
  0xa9   : > { %v255_v24 = vpop.permute.xlu1 %254 }
  0xaa   : > { %v257_v26 = vmul.f32 %v255_v24, %v251_v9 }
 0x10a   : > { %v295_v25 = vpop.permute.xlu0 %294 }
 0x10b   : > { %v322_v27 = vsel %vm321_vm0, %v257_v26, %v295_v25 }
 0x10e   : > { %v303_v29 = vpop.permute.xlu0 %302 }
 0x10f   : > { %v299_v28 = vpop.permute.xlu1 %298 }
 0x110   : > { %v324_v30 = vsel %vm323_vm1, %v322_v27, %v299_v28 }
 0x111   : > { %v326_v32 = vsel %vm325_vm2, %v324_v30, %v303_v29 }
 0x113   : > { %v307_v31 = vpop.permute.xlu1 %306 }
 0x114   : > { %v328_v33 = vsel %vm327_vm3, %v326_v32, %v307_v31  ;;  %v311_v34 = vpop.permute.xlu0 %310 }
 0x115   : > { %v330_v35 = vsel %vm329_vm4, %v328_v33, %v311_v34 }
 0x117   : > { %v315_v36 = vpop.permute.xlu1 %314 }
 0x118   : > { %v332_v37 = vsel %vm331_vm5, %v330_v35, %v315_v36 }
 0x119   : > { %v319_v39 = vpop.permute.xlu0 %318 }
 0x11a   : > { %v334_v40 = vsel %vm333_vm6, %v332_v37, %v319_v39 }
 0x11b   : > { %v336_v41 = vmul.f32 %v335_v38, %v334_v40 }
 0x11d   : > { %337 = vst [vmem:[%s249_s19] sm:$0xf] %v336_v41 }
 0x11e PF: > { %s13_s16 = sadd.s32 1, %s570_s16   ;;  %s677_s12 = smov %s562_s14 }
 0x11f   : > { %p10_p7 = scmp.ge.s32.totalorder %s13_s16, 6   ;;  %s678_s13 = smov %s566_s15 }
 0x120   : > { %s679_s14 = smov %s682_s17  ;;  %s680_s15 = smov %s686_s18 }
 0x121   :  { %12 = sbr.rel (!%p10_p7) target bundleno = 3 (0x3), region = 68 }

// kernel: coord_att_forward.3
= control target key start
LH: loop header
LB: loop body
LE: loop exit
PB: predicated region body
PF: predicated region fallthrough
CT: control target
= control target key end

     0   :  { %s536_s9 = smov 0   ;;  %s538_s10 = smov 0   ;;  %s600_s0 = inlined_call_operand.vmem [shape: f32[2,4,16,16], index: 0, kind: input, shape index: {}]   ;;  %s601_s1 = inlined_call_operand.vmem [shape: f32[2,4,16], index: 1, kind: output, shape index: {0}]   ;;  %s602_s2 = inlined_call_operand.vmem [shape: f32[2,4,16], index: 2, kind: output, shape index: {1}]  }
   0x1   :  { %s540_s11 = smov 0  }
   0x2 LB: > { %s25_s12 = sadd.s32 1, %s515_s10  ;;  %p465_p0 = scmp.ge.s32.totalorder %s519_s11, 1  ;;  %s519_s11 = sphi %s540_s11, %s13_s11   ;;  %s515_s10 = sphi %s538_s10, %s604_s10   ;;  %s511_s9 = sphi %s536_s9, %s603_s9  }
   0x3   : > { %p27_p1 = scmp.ge.s32.totalorder %s25_s12, 2  ;;  %p139_p2 = scmp.lt.s32.totalorder %s519_s11, 3 }
   0x5   : > { %s606_s12 = smov (%p27_p1, %s25_s12), 0  ;;  %p140_p3 = pnand %p465_p0, %p139_p2 }
   0x6   : > { %p176_p4 = scmp.lt.s32.totalorder (!%p140_p3), %s511_s9, 1  ;;  %vm208_vm0 = vcmask (!%p140_p3), 130048   ;;  %vm290_vm1 = vcmask (!%p140_p3), 1041409   ;;  %vm292_vm2 = vcmask (!%p140_p3), 1042434   ;;  %vm294_vm3 = vcmask (!%p140_p3), 1043459  }
   0x7   : > { %143 = sbr.rel (%p140_p3) target bundleno = 180 (0xb4), region = 24  ;;  %vm297_vm4 = vcmask (!%p140_p3), 125952   ;;  %v250_v51 = vlaneseq (!%p140_p3)  ;;  %vm261_vm5 = vcmask (!%p140_p3), 130112  }
   0x9   : > { %v251_v52 = vand.u32 (!%p140_p3), 127, %v250_v51  ;;  %v253_v56 = vshrl.u32 (!%p140_p3), %v250_v51, 7 }
   0xb   : > { %v256_v55 = vadd.s32 (!%p140_p3), 4294967288, %v251_v52  ;;  %v254_v62 = vsub.s32 (!%p140_p3), %v251_v52, %v253_v56 }
   0xd   : > { %v259_v59 = vsub.s32 (!%p140_p3), %v256_v55, %v253_v56 }
   0xe   : > { %s608_s9 = smov (!%p176_p4, %s511_s9), 1 }
   0xf   : > { %s472_s13 = sshll.u32 %s608_s9, 6  ;;  %s468_s17 = sshll.u32 %s608_s9, 2 }
  0x10   : > { %s184_s16 = scalar_lea.vmem %s600_s0, %s472_s13  ;;  %s199_s20 = scalar_lea.vmem %s602_s2, %s468_s17 }
  0x11   : > { %v202_v0 = vld [vmem:[%s184_s16 + $0x10] sm:$0xff]  ;;  %v200_v1 = vld [vmem:[%s184_s16] sm:$0xff]  ;;  %v203_v2 = vld [vmem:[%s184_s16 + $0x18] sm:$0xff]  ;;  %s192_s23 = scalar_lea.vmem %s601_s1, %s468_s17 }
  0x12   : > { %v215_v3 = vsel %vm208_vm0, %v202_v0, 0.0  ;;  %v209_v4 = vsel %vm208_vm0, %v200_v1, 0.0  ;;  %v218_v5 = vsel %vm208_vm0, %v203_v2, 0.0  ;;  %v201_v6 = vld [vmem:[%s184_s16 + $0x8] sm:$0xff]  ;;  %v204_v8 = vld [vmem:[%s184_s16 + $0x20] sm:$0xff]  ;;  %v207_v13 = vld [vmem:[%s184_s16 + $0x38] sm:$0xff] }
  0x13   : > { %v205_v7 = vld [vmem:[%s184_s16 + $0x28] sm:$0xff]  ;;  %216 = vadd.xlane.f32.xlu1 %v215_v3  ;;  %210 = vadd.xlane.f32.xlu0 %v209_v4  ;;  %v306_v9 = vadd.f32 %v218_v5, %v215_v3  ;;  %v212_v10 = vsel %vm208_vm0, %v201_v6, 0.0  ;;  %v221_v12 = vsel %vm208_vm0, %v204_v8, 0.0  ;;  %v206_v14 = vld [vmem:[%s184_s16 + $0x30] sm:$0xff]  ;;  %v230_v17 = vsel %vm208_vm0, %v207_v13, 0.0 }
  0x14   : > { %v224_v11 = vsel %vm208_vm0, %v205_v7, 0.0  ;;  %v299_v15 = vadd.f32 %v212_v10, %v209_v4  ;;  %v227_v18 = vsel %vm208_vm0, %v206_v14, 0.0 }
  0x15   : > { %v313_v16 = vadd.f32 %v224_v11, %v221_v12  ;;  %v307_v19 = vrot.slane %v306_v9, 4  ;;  %v320_v20 = vadd.f32 %v230_v17, %v227_v18 }
  0x16   : > { %v300_v21 = vrot.slane %v299_v15, 4 }
  0x17   : > { %v314_v22 = vrot.slane %v313_v16, 4  ;;  %219 = vadd.xlane.f32.xlu1 %v218_v5  ;;  %v308_v23 = vadd.f32 %v307_v19, %v306_v9  ;;  %213 = vadd.xlane.f32.xlu0 %v212_v10  ;;  %v321_v24 = vrot.slane %v320_v20, 4 }
  0x18   : > { %v301_v25 = vadd.f32 %v300_v21, %v299_v15 }
  0x19   : > { %v315_v26 = vadd.f32 %v314_v22, %v313_v16  ;;  %v309_v27 = vrot.slane %v308_v23, 2  ;;  %v322_v29 = vadd.f32 %v321_v24, %v320_v20 }
  0x1a   : > { %v302_v28 = vrot.slane %v301_v25, 2 }
  0x1b   : > { %225 = vadd.xlane.f32.xlu1 %v224_v11  ;;  %v316_v30 = vrot.slane %v315_v26, 2  ;;  %222 = vadd.xlane.f32.xlu0 %v221_v12  ;;  %v310_v31 = vadd.f32 %v309_v27, %v308_v23  ;;  %v323_v33 = vrot.slane %v322_v29, 2 }
  0x1c   : > { %v303_v32 = vadd.f32 %v302_v28, %v301_v25 }
  0x1d   : > { %v317_v34 = vadd.f32 %v316_v30, %v315_v26  ;;  %v311_v35 = vrot.slane %v310_v31, 1  ;;  %v324_v37 = vadd.f32 %v323_v33, %v322_v29 }
  0x1e   : > { %v304_v36 = vrot.slane %v303_v32, 1 }
  0x1f   : > { %231 = vadd.xlane.f32.xlu1 %v230_v17  ;;  %228 = vadd.xlane.f32.xlu0 %v227_v18  ;;  %v318_v38 = vrot.slane %v317_v34, 1  ;;  %v312_v39 = vadd.f32 %v311_v35, %v310_v31  ;;  %v325_v41 = vrot.slane %v324_v37, 1 }
  0x20   : > { %v305_v40 = vadd.f32 %v304_v36, %v303_v32 }
  0x21   : > { %v319_v42 = vadd.f32 %v318_v38, %v317_v34  ;;  %v328_v43 = vmul.f32 0.0625, %v312_v39  ;;  %v326_v45 = vadd.f32 %v325_v41, %v324_v37 }
  0x22   : > { %v327_v44 = vmul.f32 0.0625, %v305_v40 }
  0x23   : > { %v329_v46 = vmul.f32 0.0625, %v319_v42  ;;  %v330_v48 = vmul.f32 0.0625, %v326_v45 }
  0x24   : > { %v335_v47 = vsel %vm290_vm1, %v328_v43, %v327_v44 }
  0x25   : > { %v336_v49 = vsel %vm292_vm2, %v329_v46, %v335_v47 }
  0x26   : > { %v337_v50 = vsel %vm294_vm3, %v330_v48, %v336_v49 }
  0x27   : > { %339 = vst.msk [vmem:[%s199_s20] sm:$0xf] %vm297_vm4, %v337_v50 }
  0xa0   : > { %v217_v53 = vpop.xlane.xlu1 %216  ;;  %v211_v54 = vpop.xlane.xlu0 %210 }
  0xa1   : > { %v236_v63 = vmul.f32 0.0625, %v217_v53  ;;  %v234_v0 = vmul.f32 0.0625, %v211_v54 }
  0xa3   : > { %v266_v7 = vrot.slane %v236_v63, %v254_v62  ;;  %v255_v8 = vrot.slane %v234_v0, %v254_v62 }
  0xa4   : > { %v220_v57 = vpop.xlane.xlu1 %219  ;;  %v214_v58 = vpop.xlane.xlu0 %213 }
  0xa5   : > { %v237_v60 = vmul.f32 0.0625, %v220_v57  ;;  %v235_v61 = vmul.f32 0.0625, %v214_v58 }
  0xa7   : > { %v270_v3 = vrot.slane %v237_v60, %v259_v59  ;;  %v260_v4 = vrot.slane %v235_v61, %v259_v59 }
  0xa8   : > { %v226_v1 = vpop.xlane.xlu1 %225  ;;  %v223_v2 = vpop.xlane.xlu0 %222 }
  0xa9   : > { %v239_v5 = vmul.f32 0.0625, %v226_v1  ;;  %v238_v6 = vmul.f32 0.0625, %v223_v2  ;;  %v271_v13 = vsel %vm261_vm5, %v270_v3, %v266_v7  ;;  %v262_v14 = vsel %vm261_vm5, %v260_v4, %v255_v8 }
  0xaa   : > { %v291_v20 = vsel %vm290_vm1, %v271_v13, %v262_v14 }
  0xab   : > { %v279_v9 = vrot.slane %v239_v5, %v259_v59  ;;  %v275_v10 = vrot.slane %v238_v6, %v254_v62 }
  0xac   : > { %v232_v11 = vpop.xlane.xlu1 %231  ;;  %v229_v12 = vpop.xlane.xlu0 %228 }
  0xad   : > { %v241_v15 = vmul.f32 0.0625, %v232_v11  ;;  %v240_v16 = vmul.f32 0.0625, %v229_v12  ;;  %v280_v17 = vsel %vm261_vm5, %v279_v9, %v275_v10 }
  0xae   : > { %v293_v21 = vsel %vm292_vm2, %v280_v17, %v291_v20 }
  0xaf   : > { %v288_v18 = vrot.slane %v241_v15, %v259_v59  ;;  %v284_v19 = vrot.slane %v240_v16, %v254_v62 }
  0xb1   : > { %v289_v22 = vsel %vm261_vm5, %v288_v18, %v284_v19 }
  0xb2   : > { %v295_v23 = vsel %vm294_vm3, %v289_v22, %v293_v21 }
  0xb3   : > { %298 = vst.msk [vmem:[%s192_s23] sm:$0xf] %vm297_vm4, %v295_v23 }
  0xb4 PF: > { %s13_s11 = sadd.s32 1, %s519_s11   ;;  %s603_s9 = smov %s515_s10 }
  0xb5   : > { %p10_p5 = scmp.ge.s32.totalorder %s13_s11, 4   ;;  %s604_s10 = smov %s606_s12 }
  0xb7   :  { %12 = sbr.rel (!%p10_p5) target bundleno = 2 (0x2), region = 66 }

// kernel: coord_att_forward.4
= control target key start
LH: loop header
LB: loop body
LE: loop exit
PB: predicated region body
PF: predicated region fallthrough
CT: control target
= control target key end

     0   :  { %v43_v0 = vlaneseq  ;;  %v2050_v1 = vmov 0   ;;  %vm115_vm0 = vcmask 125952   ;;  %vm424_vm1 = vcmask 1041409   ;;  %s3732_s2 = inlined_call_operand.vmem [shape: f32[8,4], index: 2, kind: input, shape index: {}]   ;;  %s3733_s3 = inlined_call_operand.vmem [shape: f32[8,1], index: 3, kind: input, shape index: {}]   ;;  %s3734_s0 = inlined_call_operand.vmem [shape: f32[2,4,16], index: 0, kind: input, shape index: {}]   ;;  %s3735_s1 = inlined_call_operand.vmem [shape: f32[2,4,16], index: 1, kind: input, shape index: {}]   ;;  %s3736_s5 = inlined_call_operand.vmem [shape: f32[8,1], index: 5, kind: input, shape index: {}]   ;;  %s3737_s6 = inlined_call_operand.vmem [shape: f32[4,8], index: 6, kind: input, shape index: {}]   ;;  %s3738_s8 = inlined_call_operand.vmem [shape: f32[4,8], index: 8, kind: input, shape index: {}]   ;;  %s3739_s7 = inlined_call_operand.vmem [shape: f32[4,1], index: 7, kind: input, shape index: {}]   ;;  %s3740_s4 = inlined_call_operand.vmem [shape: f32[8,1], index: 4, kind: input, shape index: {}]   ;;  %s3741_s9 = inlined_call_operand.vmem [shape: f32[4,1], index: 9, kind: input, shape index: {}]   ;;  %s3742_s10 = inlined_call_operand.vmem [shape: f32[2,4,16], index: 10, kind: output, shape index: {0}]   ;;  %s3743_s11 = inlined_call_operand.vmem [shape: f32[2,4,16], index: 11, kind: output, shape index: {1}]  }
   0x1   :  { %1982 = vset.pattern.permute.xlu0 %v2050_v1  ;;  %1983 = vset.pattern.permute.xlu1 %v2050_v1  ;;  %v41_v3 = vld [vmem:[%s3732_s2] sm:$0xff]  ;;  %vm427_vm2 = vcmask 1042434   ;;  %vm430_vm3 = vcmask 1043459   ;;  %vm433_vm4 = vcmask 1044484   ;;  %vm436_vm5 = vcmask 1045509  }
   0x2   :  { %v44_v2 = vshrl.u32 %v43_v0, 7  ;;  %v42_v20 = vld [vmem:[%s3733_s3] sm:$0xff]  ;;  %vm439_vm6 = vcmask 1046534   ;;  %vm442_vm7 = vcmask 1047559   ;;  %vm460_vm8 = vcmask 130048  }
   0x3   :  { %v2132_v21 = vld [vmem:[%s3734_s0] sm:$0xf]  ;;  %v2137_v22 = vld [vmem:[%s3734_s0 + $0x4] sm:$0xf] }
   0x4   :  { %v2114_v4 = vsub.s32 1, %v44_v2  ;;  %v2116_v5 = vsub.s32 2, %v44_v2  ;;  %v2118_v6 = vsub.s32 0, %v44_v2  ;;  %v2120_v7 = vsub.s32 3, %v44_v2  ;;  %v2142_v23 = vld [vmem:[%s3735_s1] sm:$0xf] }
   0x5   :  { %v73_v11 = vsub.s32 4, %v44_v2  ;;  %v80_v13 = vsub.s32 5, %v44_v2  ;;  %v87_v15 = vsub.s32 6, %v44_v2  ;;  %v94_v17 = vsub.s32 7, %v44_v2  ;;  %v2147_v24 = vld [vmem:[%s3735_s1 + $0x4] sm:$0xf] }
   0x6   :  { %v53_v8 = vrot.slane %v41_v3, %v2114_v4  ;;  %v46_v9 = vrot.slane %v41_v3, %v2118_v6  ;;  %v60_v10 = vrot.slane %v41_v3, %v2116_v5  ;;  %v67_v12 = vrot.slane %v41_v3, %v2120_v7 }
   0x7   :  { %v74_v14 = vrot.slane %v41_v3, %v73_v11  ;;  %v81_v16 = vrot.slane %v41_v3, %v80_v13  ;;  %v88_v18 = vrot.slane %v41_v3, %v87_v15  ;;  %v95_v19 = vrot.slane %v41_v3, %v94_v17 }
   0x8   :  { %55 = vbcast.lane.b32.xlu0 %v53_v8, 256  ;;  %48 = vbcast.lane.b32.xlu1 %v46_v9, 256 }
   0xc   :  { %62 = vbcast.lane.b32.xlu0 %v60_v10, 256  ;;  %69 = vbcast.lane.b32.xlu1 %v67_v12, 256 }
  0x10   :  { %76 = vbcast.lane.b32.xlu0 %v74_v14, 256  ;;  %83 = vbcast.lane.b32.xlu1 %v81_v16, 256 }
  0x14   :  { %90 = vbcast.lane.b32.xlu0 %v88_v18, 256  ;;  %97 = vbcast.lane.b32.xlu1 %v95_v19, 256 }
  0x18   :  { %230 = vperm.xlu0 %1982, %v42_v20  }
  0x7a   :  { %v56_v25 = vpop.permute.xlu0 %55  ;;  %v49_v26 = vpop.permute.xlu1 %48 }
  0x7b   :  { %v100_v27 = vmul.f32 %v56_v25, %v2132_v21  ;;  %v108_v28 = vmul.f32 %v56_v25, %v2137_v22  ;;  %v264_v29 = vmul.f32 %v56_v25, %v2142_v23  ;;  %v272_v30 = vmul.f32 %v56_v25, %v2147_v24 }
  0x7c   :  { %v99_v31 = vmul.f32 %v49_v26, %v2132_v21  ;;  %v107_v32 = vmul.f32 %v49_v26, %v2137_v22  ;;  %v263_v33 = vmul.f32 %v49_v26, %v2142_v23  ;;  %v271_v34 = vmul.f32 %v49_v26, %v2147_v24 }
  0x7d   :  { %v123_v35 = vsel %vm115_vm0, %v100_v27, 0.0  ;;  %v179_v36 = vsel %vm115_vm0, %v108_v28, 0.0  ;;  %v286_v37 = vsel %vm115_vm0, %v264_v29, 0.0  ;;  %v342_v38 = vsel %vm115_vm0, %v272_v30, 0.0 }
  0x7e   :  { %v124_v39 = vrot.slane %v123_v35, 4  ;;  %v180_v40 = vrot.slane %v179_v36, 4  ;;  %v287_v41 = vrot.slane %v286_v37, 4  ;;  %v343_v42 = vrot.slane %v342_v38, 4  ;;  %v63_v43 = vpop.permute.xlu0 %62 }
  0x7f   :  { %v101_v44 = vmul.f32 %v63_v43, %v2132_v21  ;;  %v109_v45 = vmul.f32 %v63_v43, %v2137_v22  ;;  %v265_v46 = vmul.f32 %v63_v43, %v2142_v23  ;;  %v273_v47 = vmul.f32 %v63_v43, %v2147_v24 }
  0x80   :  { %v125_v48 = vadd.f32 %v124_v39, %v123_v35  ;;  %v181_v49 = vadd.f32 %v180_v40, %v179_v36  ;;  %v288_v50 = vadd.f32 %v287_v41, %v286_v37  ;;  %v344_v51 = vadd.f32 %v343_v42, %v342_v38 }
  0x81   :  { %v130_v52 = vsel %vm115_vm0, %v101_v44, 0.0  ;;  %v186_v53 = vsel %vm115_vm0, %v109_v45, 0.0  ;;  %v293_v54 = vsel %vm115_vm0, %v265_v46, 0.0  ;;  %v349_v55 = vsel %vm115_vm0, %v273_v47, 0.0 }
  0x82   :  { %v126_v56 = vrot.slane %v125_v48, 2  ;;  %v182_v57 = vrot.slane %v181_v49, 2  ;;  %v289_v58 = vrot.slane %v288_v50, 2  ;;  %v345_v59 = vrot.slane %v344_v51, 2  ;;  %v77_v46 = vpop.permute.xlu0 %76 }
  0x83   :  { %v131_v60 = vrot.slane %v130_v52, 4  ;;  %v187_v61 = vrot.slane %v186_v53, 4  ;;  %v294_v62 = vrot.slane %v293_v54, 4  ;;  %v350_v63 = vrot.slane %v349_v55, 4 }
  0x84   :  { %v127_v0 = vadd.f32 %v126_v56, %v125_v48  ;;  %v183_v1 = vadd.f32 %v182_v57, %v181_v49  ;;  %v290_v2 = vadd.f32 %v289_v58, %v288_v50  ;;  %v346_v3 = vadd.f32 %v345_v59, %v344_v51 }
  0x85   :  { %v132_v8 = vadd.f32 %v131_v60, %v130_v52  ;;  %v188_v9 = vadd.f32 %v187_v61, %v186_v53  ;;  %v295_v10 = vadd.f32 %v294_v62, %v293_v54  ;;  %v351_v11 = vadd.f32 %v350_v63, %v349_v55 }
  0x86   :  { %v128_v12 = vrot.slane %v127_v0, 1  ;;  %v184_v13 = vrot.slane %v183_v1, 1  ;;  %v291_v14 = vrot.slane %v290_v2, 1  ;;  %v347_v15 = vrot.slane %v346_v3, 1 }
  0x87   :  { %v133_v16 = vrot.slane %v132_v8, 2  ;;  %v189_v17 = vrot.slane %v188_v9, 2  ;;  %v296_v18 = vrot.slane %v295_v10, 2  ;;  %v352_v19 = vrot.slane %v351_v11, 2 }
  0x88   :  { %v2169_v20 = vadd.f32 %v128_v12, %v127_v0  ;;  %v2171_v25 = vadd.f32 %v184_v13, %v183_v1  ;;  %v116_v30 = vsel %vm115_vm0, %v99_v31, 0.0  ;;  %v172_v35 = vsel %vm115_vm0, %v107_v32, 0.0 }
  0x89   :  { %v134_v26 = vadd.f32 %v133_v16, %v132_v8  ;;  %v190_v27 = vadd.f32 %v189_v17, %v188_v9  ;;  %v297_v28 = vadd.f32 %v296_v18, %v295_v10  ;;  %v353_v29 = vadd.f32 %v352_v19, %v351_v11  ;;  %v70_v19 = vpop.permute.xlu1 %69 }
  0x8a   :  { %v279_v36 = vsel %vm115_vm0, %v263_v33, 0.0  ;;  %v335_v37 = vsel %vm115_vm0, %v271_v34, 0.0  ;;  %v2177_v38 = vadd.f32 %v291_v14, %v290_v2  ;;  %v2179_v39 = vadd.f32 %v347_v15, %v346_v3 }
  0x8b   :  { %v135_v40 = vrot.slane %v134_v26, 1  ;;  %v191_v41 = vrot.slane %v190_v27, 1  ;;  %v117_v42 = vrot.slane %v116_v30, 4  ;;  %v173_v43 = vrot.slane %v172_v35, 4 }
  0x8c   :  { %v280_v44 = vrot.slane %v279_v36, 4  ;;  %v336_v45 = vrot.slane %v335_v37, 4  ;;  %v298_v32 = vrot.slane %v297_v28, 1  ;;  %v354_v48 = vrot.slane %v353_v29, 1 }
  0x8d   :  { %v2181_v47 = vadd.f32 %v135_v40, %v134_v26  ;;  %v2183_v31 = vadd.f32 %v191_v41, %v190_v27  ;;  %v118_v33 = vadd.f32 %v117_v42, %v116_v30  ;;  %v174_v49 = vadd.f32 %v173_v43, %v172_v35 }
  0x8e   :  { %v281_v34 = vadd.f32 %v280_v44, %v279_v36  ;;  %v337_v50 = vadd.f32 %v336_v45, %v335_v37  ;;  %v103_v51 = vmul.f32 %v77_v46, %v2132_v21  ;;  %v111_v52 = vmul.f32 %v77_v46, %v2137_v22 }
  0x8f   :  { %v267_v53 = vmul.f32 %v77_v46, %v2142_v23  ;;  %v275_v54 = vmul.f32 %v77_v46, %v2147_v24  ;;  %v119_v55 = vrot.slane %v118_v33, 2  ;;  %v175_v56 = vrot.slane %v174_v49, 2 }
  0x90   :  { %v282_v57 = vrot.slane %v281_v34, 2  ;;  %v338_v58 = vrot.slane %v337_v50, 2  ;;  %v144_v59 = vsel %vm115_vm0, %v103_v51, 0.0  ;;  %v200_v60 = vsel %vm115_vm0, %v111_v52, 0.0 }
  0x91   :  { %v307_v61 = vsel %vm115_vm0, %v267_v53, 0.0  ;;  %v363_v62 = vsel %vm115_vm0, %v275_v54, 0.0  ;;  %v120_v63 = vadd.f32 %v119_v55, %v118_v33  ;;  %v176_v0 = vadd.f32 %v175_v56, %v174_v49 }
  0x92   :  { %v283_v1 = vadd.f32 %v282_v57, %v281_v34  ;;  %v339_v2 = vadd.f32 %v338_v58, %v337_v50  ;;  %v145_v3 = vrot.slane %v144_v59, 4  ;;  %v201_v8 = vrot.slane %v200_v60, 4  ;;  %v91_v58 = vpop.permute.xlu0 %90 }
  0x93   :  { %v308_v9 = vrot.slane %v307_v61, 4  ;;  %v364_v10 = vrot.slane %v363_v62, 4  ;;  %v2193_v11 = vadd.f32 %v298_v32, %v297_v28  ;;  %v2195_v12 = vadd.f32 %v354_v48, %v353_v29 }
  0x94   :  { %v121_v13 = vrot.slane %v120_v63, 1  ;;  %v177_v14 = vrot.slane %v176_v0, 1  ;;  %v146_v15 = vadd.f32 %v145_v3, %v144_v59  ;;  %v202_v16 = vadd.f32 %v201_v8, %v200_v60 }
  0x95   :  { %v309_v17 = vadd.f32 %v308_v9, %v307_v61  ;;  %v365_v18 = vadd.f32 %v364_v10, %v363_v62  ;;  %v284_v30 = vrot.slane %v283_v1, 1  ;;  %v340_v35 = vrot.slane %v339_v2, 1 }
  0x96   :  { %v2197_v26 = vadd.f32 %v121_v13, %v120_v63  ;;  %v2199_v27 = vadd.f32 %v177_v14, %v176_v0  ;;  %v147_v36 = vrot.slane %v146_v15, 2  ;;  %v203_v37 = vrot.slane %v202_v16, 2 }
  0x97   :  { %v310_v40 = vrot.slane %v309_v17, 2  ;;  %v366_v28 = vrot.slane %v365_v18, 2  ;;  %v102_v29 = vmul.f32 %v70_v19, %v2132_v21  ;;  %v110_v41 = vmul.f32 %v70_v19, %v2137_v22 }
  0x98   :  { %v266_v42 = vmul.f32 %v70_v19, %v2142_v23  ;;  %v274_v43 = vmul.f32 %v70_v19, %v2147_v24  ;;  %v148_v44 = vadd.f32 %v147_v36, %v146_v15  ;;  %v204_v45 = vadd.f32 %v203_v37, %v202_v16 }
  0x99   :  { %v311_v46 = vadd.f32 %v310_v40, %v309_v17  ;;  %v367_v32 = vadd.f32 %v366_v28, %v365_v18  ;;  %v137_v48 = vsel %vm115_vm0, %v102_v29, 0.0  ;;  %v193_v33 = vsel %vm115_vm0, %v110_v41, 0.0 }
  0x9a   :  { %v300_v49 = vsel %vm115_vm0, %v266_v42, 0.0  ;;  %v356_v34 = vsel %vm115_vm0, %v274_v43, 0.0  ;;  %v2209_v50 = vadd.f32 %v284_v30, %v283_v1  ;;  %v2211_v51 = vadd.f32 %v340_v35, %v339_v2 }
  0x9b   :  { %v149_v52 = vrot.slane %v148_v44, 1  ;;  %v205_v53 = vrot.slane %v204_v45, 1  ;;  %v138_v54 = vrot.slane %v137_v48, 4  ;;  %v194_v55 = vrot.slane %v193_v33, 4 }
  0x9c   :  { %v301_v56 = vrot.slane %v300_v49, 4  ;;  %v357_v57 = vrot.slane %v356_v34, 4  ;;  %v312_v61 = vrot.slane %v311_v46, 1  ;;  %v368_v62 = vrot.slane %v367_v32, 1 }
  0x9d   :  { %v2213_v59 = vadd.f32 %v149_v52, %v148_v44  ;;  %v2215_v60 = vadd.f32 %v205_v53, %v204_v45  ;;  %v139_v63 = vadd.f32 %v138_v54, %v137_v48  ;;  %v195_v0 = vadd.f32 %v194_v55, %v193_v33  ;;  %v84_v33 = vpop.permute.xlu1 %83 }
  0x9e   :  { %v302_v3 = vadd.f32 %v301_v56, %v300_v49  ;;  %v358_v1 = vadd.f32 %v357_v57, %v356_v34  ;;  %v105_v2 = vmul.f32 %v91_v58, %v2132_v21  ;;  %v113_v8 = vmul.f32 %v91_v58, %v2137_v22 }
  0x9f   :  { %v269_v9 = vmul.f32 %v91_v58, %v2142_v23  ;;  %v277_v10 = vmul.f32 %v91_v58, %v2147_v24  ;;  %v140_v13 = vrot.slane %v139_v63, 2  ;;  %v196_v14 = vrot.slane %v195_v0, 2 }
  0xa0   :  { %v303_v15 = vrot.slane %v302_v3, 2  ;;  %v359_v16 = vrot.slane %v358_v1, 2  ;;  %v158_v17 = vsel %vm115_vm0, %v105_v2, 0.0  ;;  %v214_v18 = vsel %vm115_vm0, %v113_v8, 0.0 }
  0xa1   :  { %v321_v19 = vsel %vm115_vm0, %v269_v9, 0.0  ;;  %v377_v30 = vsel %vm115_vm0, %v277_v10, 0.0  ;;  %v141_v35 = vadd.f32 %v140_v13, %v139_v63  ;;  %v197_v36 = vadd.f32 %v196_v14, %v195_v0 }
  0xa2   :  { %v304_v37 = vadd.f32 %v303_v15, %v302_v3  ;;  %v360_v40 = vadd.f32 %v359_v16, %v358_v1  ;;  %v159_v28 = vrot.slane %v158_v17, 4  ;;  %v215_v29 = vrot.slane %v214_v18, 4  ;;  %v98_v16 = vpop.permute.xlu1 %97 }
  0xa3   :  { %v322_v41 = vrot.slane %v321_v19, 4  ;;  %v378_v42 = vrot.slane %v377_v30, 4  ;;  %v142_v43 = vrot.slane %v141_v35, 1  ;;  %v198_v44 = vrot.slane %v197_v36, 1 }
  0xa4   :  { %v305_v45 = vrot.slane %v304_v37, 1  ;;  %v361_v48 = vrot.slane %v360_v40, 1  ;;  %v160_v49 = vadd.f32 %v159_v28, %v158_v17  ;;  %v216_v34 = vadd.f32 %v215_v29, %v214_v18 }
  0xa5   :  { %v323_v52 = vadd.f32 %v322_v41, %v321_v19  ;;  %v379_v53 = vadd.f32 %v378_v42, %v377_v30  ;;  %v2225_v54 = vadd.f32 %v312_v61, %v311_v46  ;;  %v2227_v55 = vadd.f32 %v368_v62, %v367_v32 }
  0xa6   :  { %v2229_v56 = vadd.f32 %v142_v43, %v141_v35  ;;  %v2231_v57 = vadd.f32 %v198_v44, %v197_v36  ;;  %v161_v58 = vrot.slane %v160_v49, 2  ;;  %v217_v63 = vrot.slane %v216_v34, 2 }
  0xa7   :  { %v324_v0 = vrot.slane %v323_v52, 2  ;;  %v380_v3 = vrot.slane %v379_v53, 2  ;;  %v104_v1 = vmul.f32 %v84_v33, %v2132_v21  ;;  %v112_v2 = vmul.f32 %v84_v33, %v2137_v22 }
  0xa8   :  { %v268_v8 = vmul.f32 %v84_v33, %v2142_v23  ;;  %v276_v9 = vmul.f32 %v84_v33, %v2147_v24  ;;  %v2237_v46 = vadd.f32 %v305_v45, %v304_v37  ;;  %v2239_v32 = vadd.f32 %v361_v48, %v360_v40 }
  0xa9   :  { %v2241_v61 = vadd.f32 %v161_v58, %v160_v49  ;;  %v2243_v62 = vadd.f32 %v217_v63, %v216_v34  ;;  %v151_v10 = vsel %vm115_vm0, %v104_v1, 0.0  ;;  %v207_v13 = vsel %vm115_vm0, %v112_v2, 0.0 }
  0xaa   :  { %v314_v14 = vsel %vm115_vm0, %v268_v8, 0.0  ;;  %v370_v15 = vsel %vm115_vm0, %v276_v9, 0.0  ;;  %v2251_v19 = vadd.f32 %v324_v0, %v323_v52  ;;  %v2253_v30 = vadd.f32 %v380_v3, %v379_v53 }
  0xab   :  { %v163_v17 = vrot.slane %v2241_v61, 1  ;;  %v219_v18 = vrot.slane %v2243_v62, 1  ;;  %v152_v35 = vrot.slane %v151_v10, 4  ;;  %v208_v36 = vrot.slane %v207_v13, 4 }
  0xac   :  { %v315_v37 = vrot.slane %v314_v14, 4  ;;  %v371_v40 = vrot.slane %v370_v15, 4  ;;  %v106_v28 = vmul.f32 %v98_v16, %v2132_v21  ;;  %v114_v29 = vmul.f32 %v98_v16, %v2137_v22 }
  0xad   :  { %v270_v41 = vmul.f32 %v98_v16, %v2142_v23  ;;  %v278_v42 = vmul.f32 %v98_v16, %v2147_v24  ;;  %v153_v43 = vadd.f32 %v152_v35, %v151_v10  ;;  %v209_v44 = vadd.f32 %v208_v36, %v207_v13 }
  0xae   :  { %v316_v45 = vadd.f32 %v315_v37, %v314_v14  ;;  %v372_v48 = vadd.f32 %v371_v40, %v370_v15  ;;  %v165_v33 = vsel %vm115_vm0, %v106_v28, 0.0  ;;  %v221_v49 = vsel %vm115_vm0, %v114_v29, 0.0 }
  0xaf   :  { %v328_v34 = vsel %vm115_vm0, %v270_v41, 0.0  ;;  %v384_v52 = vsel %vm115_vm0, %v278_v42, 0.0  ;;  %v154_v53 = vrot.slane %v153_v43, 2  ;;  %v210_v21 = vrot.slane %v209_v44, 2  ;;  %v2266_v41 = vpop.permute.xlu0 %230 }
  0xb0   :  { %v317_v58 = vrot.slane %v316_v45, 2  ;;  %v373_v22 = vrot.slane %v372_v48, 2  ;;  %v166_v63 = vrot.slane %v165_v33, 4  ;;  %v222_v23 = vrot.slane %v221_v49, 4 }
  0xb1   :  { %v329_v0 = vrot.slane %v328_v34, 4  ;;  %v385_v24 = vrot.slane %v384_v52, 4  ;;  %v155_v3 = vadd.f32 %v154_v53, %v153_v43  ;;  %v211_v1 = vadd.f32 %v210_v21, %v209_v44 }
  0xb2   :  { %v2263_v2 = vadd.f32 %v317_v58, %v316_v45  ;;  %v374_v8 = vadd.f32 %v373_v22, %v372_v48  ;;  %v167_v9 = vadd.f32 %v166_v63, %v165_v33  ;;  %v223_v10 = vadd.f32 %v222_v23, %v221_v49 }
  0xb3   :  { %v330_v13 = vadd.f32 %v329_v0, %v328_v34  ;;  %v386_v14 = vadd.f32 %v385_v24, %v384_v52  ;;  %v382_v15 = vrot.slane %v2253_v30, 1  ;;  %v156_v16 = vrot.slane %v155_v3, 1 }
  0xb4   :  { %v212_v35 = vrot.slane %v211_v1, 1  ;;  %v375_v36 = vrot.slane %v374_v8, 1  ;;  %v168_v37 = vrot.slane %v167_v9, 2  ;;  %v224_v40 = vrot.slane %v223_v10, 2 }
  0xb5   :  { %v331_v28 = vrot.slane %v330_v13, 2  ;;  %v387_v29 = vrot.slane %v386_v14, 2  ;;  %v157_v42 = vadd.f32 %v156_v16, %v155_v3  ;;  %v319_v44 = vrot.slane %v2263_v2, 1 }
  0xb6   :  { %v213_v43 = vadd.f32 %v212_v35, %v211_v1  ;;  %v2269_v45 = vadd.f32 %v375_v36, %v374_v8  ;;  %v169_v48 = vadd.f32 %v168_v37, %v167_v9  ;;  %v225_v33 = vadd.f32 %v224_v40, %v223_v10 }
  0xb7   :  { %v2271_v49 = vadd.f32 %v331_v28, %v330_v13  ;;  %v2273_v34 = vadd.f32 %v387_v29, %v386_v14  ;;  %v220_v52 = vadd.f32 %v219_v18, %v2243_v62  ;;  %v2277_v53 = vrot.slane %v2266_v41, 1 }
  0xb8   :  { %v2280_v21 = vrot.slane %v2266_v41, 2  ;;  %v2283_v58 = vrot.slane %v2266_v41, 3  ;;  %v226_v22 = vrot.slane %v225_v33, 1  ;;  %v2286_v63 = vrot.slane %v2266_v41, 4 }
  0xb9   :  { %v2289_v23 = vrot.slane %v2266_v41, 5  ;;  %v2292_v0 = vrot.slane %v2266_v41, 6  ;;  %v2295_v62 = vrot.slane %v2266_v41, 7  ;;  %v2299_v18 = vadd.f32 %v2266_v41, %v2199_v27 }
  0xba   :  { %v2303_v24 = vadd.f32 %v2277_v53, %v2171_v25  ;;  %v2307_v3 = vadd.f32 %v2280_v21, %v2183_v31  ;;  %v227_v1 = vadd.f32 %v226_v22, %v225_v33  ;;  %v2311_v8 = vadd.f32 %v2283_v58, %v2231_v57 }
  0xbb   :  { %v2315_v9 = vadd.f32 %v2286_v63, %v2215_v60  ;;  %v2318_v27 = vadd.f32 %v2289_v23, %v213_v43  ;;  %v2321_v25 = vadd.f32 %v2292_v0, %v220_v52  ;;  %v164_v13 = vadd.f32 %v163_v17, %v2241_v61 }
  0xbc   :  { %v444_v10 = vrot.slane %v2303_v24, 7  ;;  %v446_v31 = vrot.slane %v2307_v3, 6  ;;  %v2329_v57 = vadd.f32 %v2295_v62, %v227_v1  ;;  %v448_v60 = vrot.slane %v2311_v8, 5 }
  0xbd   :  { %v450_v14 = vrot.slane %v2315_v9, 4  ;;  %v452_v16 = vrot.slane %v2318_v27, 3  ;;  %v454_v36 = vrot.slane %v2321_v25, 2  ;;  %v170_v37 = vrot.slane %v169_v48, 1 }
  0xbe   :  { %v445_v35 = vsel %vm424_vm1, %v444_v10, %v2299_v18  ;;  %v2339_v40 = vadd.f32 %v2266_v41, %v2197_v26  ;;  %v456_v17 = vrot.slane %v2329_v57, 1  ;;  %v2345_v28 = vadd.f32 %v2277_v53, %v2169_v20 }
  0xbf   :  { %v447_v61 = vsel %vm427_vm2, %v446_v31, %v445_v35  ;;  %v2349_v29 = vadd.f32 %v2280_v21, %v2181_v47  ;;  %v171_v33 = vadd.f32 %v170_v37, %v169_v48  ;;  %v2354_v52 = vadd.f32 %v2283_v58, %v2229_v56 }
  0xc0   :  { %v449_v43 = vsel %vm430_vm3, %v448_v60, %v447_v61  ;;  %v2358_v26 = vadd.f32 %v2286_v63, %v2213_v59  ;;  %v2362_v20 = vadd.f32 %v2289_v23, %v157_v42  ;;  %v2365_v1 = vadd.f32 %v2292_v0, %v164_v13 }
  0xc1   :  { %v451_v22 = vsel %vm433_vm4, %v450_v14, %v449_v43  ;;  %v423_v47 = vrot.slane %v2345_v28, 7  ;;  %v2370_v10 = vadd.f32 %v2295_v62, %v171_v33  ;;  %v426_v56 = vrot.slane %v2349_v29, 6 }
  0xc2   :  { %v453_v48 = vsel %vm436_vm5, %v452_v16, %v451_v22  ;;  %v429_v59 = vrot.slane %v2354_v52, 5  ;;  %v432_v60 = vrot.slane %v2358_v26, 4  ;;  %v435_v13 = vrot.slane %v2362_v20, 3 }
  0xc3   :  { %v455_v31 = vsel %vm439_vm6, %v454_v36, %v453_v48  ;;  %v425_v42 = vsel %vm424_vm1, %v423_v47, %v2339_v40  ;;  %v438_v35 = vrot.slane %v2365_v1, 2  ;;  %v441_v37 = vrot.slane %v2370_v10, 1 }
  0xc4   :  { %v457_v14 = vsel %vm442_vm7, %v456_v17, %v455_v31  ;;  %v428_v16 = vsel %vm427_vm2, %v426_v56, %v425_v42  ;;  %v383_v36 = vadd.f32 %v382_v15, %v2253_v30  ;;  %v389_v33 = vrot.slane %v2273_v34, 1 }
  0xc5   :  { %v464_v61 = vsel %vm460_vm8, %v457_v14, 0.0  ;;  %v431_v43 = vsel %vm430_vm3, %v429_v59, %v428_v16  ;;  %v2392_v17 = vadd.f32 %v2211_v51, %v2266_v41  ;;  %v2396_v47 = vadd.f32 %v2179_v39, %v2277_v53 }
  0xc6   :  { %465 = vadd.xlane.f32.xlu0 %v464_v61  ;;  %v434_v22 = vsel %vm433_vm4, %v432_v60, %v431_v43  ;;  %v2400_v48 = vadd.f32 %v2195_v12, %v2280_v21  ;;  %v390_v30 = vadd.f32 %v389_v33, %v2273_v34  ;;  %v2406_v15 = vadd.f32 %v2239_v32, %v2283_v58 }
  0xc7   :  { %v437_v56 = vsel %vm436_vm5, %v435_v13, %v434_v22  ;;  %v2410_v51 = vadd.f32 %v2227_v55, %v2286_v63  ;;  %v2415_v39 = vadd.f32 %v2269_v45, %v2289_v23  ;;  %v2418_v12 = vadd.f32 %v383_v36, %v2292_v0 }
  0xc8   :  { %v440_v59 = vsel %vm439_vm6, %v438_v35, %v437_v56  ;;  %v498_v31 = vrot.slane %v2396_v47, 7  ;;  %v326_v34 = vrot.slane %v2251_v19, 1  ;;  %v2424_v42 = vadd.f32 %v390_v30, %v2295_v62 }
  0xc9   :  { %v443_v32 = vsel %vm442_vm7, %v441_v37, %v440_v59  ;;  %v500_v55 = vrot.slane %v2400_v48, 6  ;;  %v320_v60 = vadd.f32 %v319_v44, %v2263_v2  ;;  %v502_v14 = vrot.slane %v2406_v15, 5 }
  0xca   :  { %v461_v45 = vsel %vm460_vm8, %v443_v32, 0.0  ;;  %v499_v13 = vsel %vm424_vm1, %v498_v31, %v2392_v17  ;;  %v504_v35 = vrot.slane %v2410_v51, 4  ;;  %v506_v37 = vrot.slane %v2415_v39, 3 }
  0xcb   :  { %462 = vadd.xlane.f32.xlu1 %v461_v45  ;;  %v501_v16 = vsel %vm427_vm2, %v500_v55, %v499_v13  ;;  %v508_v61 = vrot.slane %v2418_v12, 2  ;;  %v510_v2 = vrot.slane %v2424_v42, 1  ;;  %v333_v44 = vrot.slane %v2271_v49, 1 }
  0xcc   :  { %v503_v43 = vsel %vm430_vm3, %v502_v14, %v501_v16  ;;  %v2443_v36 = vadd.f32 %v2177_v38, %v2277_v53  ;;  %v327_v22 = vadd.f32 %v326_v34, %v2251_v19  ;;  %v2449_v56 = vadd.f32 %v2193_v11, %v2280_v21 }
  0xcd   :  { %v505_v33 = vsel %vm433_vm4, %v504_v35, %v503_v43  ;;  %v2453_v30 = vadd.f32 %v2237_v46, %v2283_v58  ;;  %v334_v31 = vadd.f32 %v333_v44, %v2271_v49  ;;  %v2459_v38 = vadd.f32 %v2209_v50, %v2266_v41 }
  0xce   :  { %v507_v59 = vsel %vm436_vm5, %v506_v37, %v505_v33  ;;  %v2463_v53 = vadd.f32 %v2225_v54, %v2286_v63  ;;  %v2467_v11 = vadd.f32 %v320_v60, %v2289_v23  ;;  %v484_v46 = vrot.slane %v2443_v36, 7 }
  0xcf   :  { %v509_v19 = vsel %vm439_vm6, %v508_v61, %v507_v59  ;;  %v486_v21 = vrot.slane %v2449_v56, 6  ;;  %v2473_v49 = vadd.f32 %v327_v22, %v2292_v0  ;;  %v2477_v41 = vadd.f32 %v334_v31, %v2295_v62 }
  0xd0   :  { %v511_v58 = vsel %vm442_vm7, %v510_v2, %v509_v19  ;;  %v485_v54 = vsel %vm424_vm1, %v484_v46, %v2459_v38  ;;  %v488_v63 = vrot.slane %v2453_v30, 5  ;;  %v490_v34 = vrot.slane %v2463_v53, 4 }
  0xd1   :  { %v517_v50 = vsel %vm460_vm8, %v511_v58, 0.0  ;;  %v487_v23 = vsel %vm427_vm2, %v486_v21, %v485_v54  ;;  %v492_v0 = vrot.slane %v2467_v11, 3  ;;  %v494_v60 = vrot.slane %v2473_v49, 2 }
  0xd2   :  { %518 = vadd.xlane.f32.xlu0 %v517_v50  ;;  %v489_v32 = vsel %vm430_vm3, %v488_v63, %v487_v23  ;;  %v496_v45 = vrot.slane %v2477_v41, 1 }
  0xd3   :  { %v491_v55 = vsel %vm433_vm4, %v490_v34, %v489_v32 }
  0xd4   :  { %v493_v62 = vsel %vm436_vm5, %v492_v0, %v491_v55 }
  0xd5   :  { %v495_v13 = vsel %vm439_vm6, %v494_v60, %v493_v62 }
  0xd6   :  { %v497_v14 = vsel %vm442_vm7, %v496_v45, %v495_v13 }
  0xd7   :  { %v514_v16 = vsel %vm460_vm8, %v497_v14, 0.0 }
  0xd8   :  { %515 = vadd.xlane.f32.xlu1 %v514_v16 }
 0x153   :  { %v466_v35 = vpop.xlane.xlu0 %465 }
 0x158   :  { %v463_v37 = vpop.xlane.xlu1 %462 }
 0x159   :  { %v467_v2 = vadd.f32 %v466_v35, %v463_v37 }
 0x15f   :  { %v519_v61 = vpop.xlane.xlu0 %518 }
 0x165   :  { %v516_v43 = vpop.xlane.xlu1 %515 }
 0x166   :  { %v520_v44 = vadd.f32 %v519_v61, %v516_v43 }
 0x168   :  { %v521_v33 = vadd.f32 %v520_v44, %v467_v2 }
 0x16a   :  { %v2493_v22 = vmul.f32 0.015625, %v521_v33 }
 0x16c   :  { %v2496_v59 = vrot.slane %v2493_v22, 1  ;;  %v2499_v31 = vrot.slane %v2493_v22, 2  ;;  %v2502_v19 = vrot.slane %v2493_v22, 3  ;;  %v2505_v46 = vrot.slane %v2493_v22, 4 }
 0x16d   :  { %v2508_v21 = vrot.slane %v2493_v22, 5  ;;  %v2511_v58 = vrot.slane %v2493_v22, 6  ;;  %v2514_v50 = vrot.slane %v2493_v22, 7  ;;  %v2518_v54 = vsub.f32 %v2299_v18, %v2493_v22 }
 0x16e   :  { %v2522_v63 = vsub.f32 %v2303_v24, %v2496_v59  ;;  %v2526_v23 = vsub.f32 %v2307_v3, %v2499_v31  ;;  %v2530_v34 = vsub.f32 %v2311_v8, %v2502_v19  ;;  %v2534_v32 = vsub.f32 %v2315_v9, %v2505_v46 }
 0x16f   :  { %v2538_v18 = vsub.f32 %v2318_v27, %v2508_v21  ;;  %v2542_v24 = vsub.f32 %v2321_v25, %v2511_v58  ;;  %v2546_v3 = vsub.f32 %v2329_v57, %v2514_v50  ;;  %v564_v25 = vmul.f32 %v2518_v54, %v2518_v54 }
 0x170   :  { %v565_v8 = vmul.f32 %v2522_v63, %v2522_v63  ;;  %v566_v0 = vmul.f32 %v2526_v23, %v2526_v23  ;;  %v567_v9 = vmul.f32 %v2530_v34, %v2530_v34  ;;  %v568_v27 = vmul.f32 %v2534_v32, %v2534_v32 }
 0x171   :  { %3799 = vst [vmem:[#allocation2_spill] sm:$0xff] %v2542_v24  ;;  %3800 = vst [vmem:[#allocation3_spill] sm:$0xff] %v2546_v3  ;;  %v569_v55 = vmul.f32 %v2538_v18, %v2538_v18  ;;  %v570_v57 = vmul.f32 %v2542_v24, %v2542_v24  ;;  %v571_v60 = vmul.f32 %v2546_v3, %v2546_v3 }
 0x172   :  { %v602_v62 = vrot.slane %v565_v8, 7  ;;  %v604_v45 = vrot.slane %v566_v0, 6  ;;  %v606_v13 = vrot.slane %v567_v9, 5  ;;  %v2566_v14 = vsub.f32 %v2339_v40, %v2493_v22 }
 0x173   :  { %v608_v16 = vrot.slane %v568_v27, 4  ;;  %v610_v35 = vrot.slane %v569_v55, 3  ;;  %v612_v37 = vrot.slane %v570_v57, 2  ;;  %v2570_v61 = vsub.f32 %v2345_v28, %v2496_v59 }
 0x174   :  { %v603_v43 = vsel %vm424_vm1, %v602_v62, %v564_v25  ;;  %v2575_v2 = vsub.f32 %v2349_v29, %v2499_v31  ;;  %v2579_v44 = vsub.f32 %v2354_v52, %v2502_v19  ;;  %v2583_v40 = vsub.f32 %v2358_v26, %v2505_v46 }
 0x175   :  { %v605_v33 = vsel %vm427_vm2, %v604_v45, %v603_v43  ;;  %v2588_v28 = vsub.f32 %v2362_v20, %v2508_v21  ;;  %v2592_v8 = vsub.f32 %v2365_v1, %v2511_v58  ;;  %v2596_v29 = vsub.f32 %v2370_v10, %v2514_v50 }
 0x176   :  { %v607_v52 = vsel %vm430_vm3, %v606_v13, %v605_v33  ;;  %v614_v0 = vrot.slane %v571_v60, 1  ;;  %v557_v26 = vmul.f32 %v2570_v61, %v2570_v61  ;;  %v558_v9 = vmul.f32 %v2575_v2, %v2575_v2 }
 0x177   :  { %v609_v20 = vsel %vm433_vm4, %v608_v16, %v607_v52  ;;  %v559_v27 = vmul.f32 %v2579_v44, %v2579_v44  ;;  %v560_v1 = vmul.f32 %v2583_v40, %v2583_v40  ;;  %v561_v10 = vmul.f32 %v2588_v28, %v2588_v28 }
 0x178   :  { %v611_v25 = vsel %vm436_vm5, %v610_v35, %v609_v20  ;;  %v556_v55 = vmul.f32 %v2566_v14, %v2566_v14  ;;  %v562_v57 = vmul.f32 %v2592_v8, %v2592_v8  ;;  %v588_v60 = vrot.slane %v557_v26, 7 }
 0x179   :  { %v613_v62 = vsel %vm439_vm6, %v612_v37, %v611_v25  ;;  %v563_v45 = vmul.f32 %v2596_v29, %v2596_v29  ;;  %v590_v13 = vrot.slane %v558_v9, 6  ;;  %v592_v16 = vrot.slane %v559_v27, 5 }
 0x17a   :  { %v615_v43 = vsel %vm442_vm7, %v614_v0, %v613_v62  ;;  %v589_v33 = vsel %vm424_vm1, %v588_v60, %v556_v55  ;;  %v594_v52 = vrot.slane %v560_v1, 4  ;;  %v596_v35 = vrot.slane %v561_v10, 3 }
 0x17b   :  { %v621_v20 = vsel %vm460_vm8, %v615_v43, 0.0  ;;  %v591_v3 = vsel %vm427_vm2, %v590_v13, %v589_v33  ;;  %v598_v24 = vrot.slane %v562_v57, 2  ;;  %v2624_v26 = vsub.f32 %v2392_v17, %v2493_v22 }
 0x17c   :  { %622 = vadd.xlane.f32.xlu0 %v621_v20  ;;  %v593_v37 = vsel %vm430_vm3, %v592_v16, %v591_v3  ;;  %v2629_v9 = vsub.f32 %v2396_v47, %v2496_v59  ;;  %v2633_v0 = vsub.f32 %v2400_v48, %v2499_v31  ;;  %v2637_v27 = vsub.f32 %v2406_v15, %v2502_v19 }
 0x17d   :  { %v595_v1 = vsel %vm433_vm4, %v594_v52, %v593_v37  ;;  %v2642_v17 = vsub.f32 %v2410_v51, %v2505_v46  ;;  %v2646_v3 = vsub.f32 %v2415_v39, %v2508_v21  ;;  %v2650_v47 = vsub.f32 %v2418_v12, %v2511_v58 }
 0x17e   :  { %3801 = vst [vmem:[#allocation4_spill] sm:$0xff] %v2629_v9  ;;  %3802 = vst [vmem:[#allocation5_spill] sm:$0xff] %v2633_v0  ;;  %v597_v48 = vsel %vm436_vm5, %v596_v35, %v595_v1  ;;  %v600_v10 = vrot.slane %v563_v45, 1  ;;  %v2655_v15 = vsub.f32 %v2424_v42, %v2514_v50  ;;  %v650_v25 = vmul.f32 %v2629_v9, %v2629_v9 }
 0x17f   :  { %3803 = vst [vmem:[#allocation6_spill] sm:$0xff] %v2637_v27  ;;  %3804 = vst [vmem:[#allocation7_spill] sm:$0xff] %v2642_v17  ;;  %v599_v51 = vsel %vm439_vm6, %v598_v24, %v597_v48  ;;  %v651_v39 = vmul.f32 %v2633_v0, %v2633_v0  ;;  %v652_v55 = vmul.f32 %v2637_v27, %v2637_v27 }
 0x180   :  { %3805 = vst [vmem:[#allocation8_spill] sm:$0xff] %v2646_v3  ;;  %3806 = vst [vmem:[#allocation9_spill] sm:$0xff] %v2650_v47  ;;  %v653_v12 = vmul.f32 %v2642_v17, %v2642_v17  ;;  %v601_v57 = vsel %vm442_vm7, %v600_v10, %v599_v51  ;;  %v649_v42 = vmul.f32 %v2624_v26, %v2624_v26  ;;  %v687_v45 = vrot.slane %v650_v25, 7 }
 0x181   :  { %3807 = vst [vmem:[#allocation10_spill] sm:$0xff] %v2655_v15  ;;  %v654_v60 = vmul.f32 %v2646_v3, %v2646_v3  ;;  %v618_v62 = vsel %vm460_vm8, %v601_v57, 0.0  ;;  %v655_v24 = vmul.f32 %v2650_v47, %v2650_v47  ;;  %v689_v13 = vrot.slane %v651_v39, 6 }
 0x182   :  { %619 = vadd.xlane.f32.xlu1 %v618_v62  ;;  %v656_v16 = vmul.f32 %v2655_v15, %v2655_v15  ;;  %v691_v43 = vrot.slane %v652_v55, 5  ;;  %v693_v33 = vrot.slane %v653_v12, 4  ;;  %v688_v35 = vsel %vm424_vm1, %v687_v45, %v649_v42 }
 0x183   :  { %v695_v52 = vrot.slane %v654_v60, 3  ;;  %v2679_v20 = vsub.f32 %v2459_v38, %v2493_v22  ;;  %v2683_v37 = vsub.f32 %v2443_v36, %v2496_v59  ;;  %v2687_v1 = vsub.f32 %v2449_v56, %v2499_v31 }
 0x184   :  { %v690_v48 = vsel %vm427_vm2, %v689_v13, %v688_v35  ;;  %v2692_v10 = vsub.f32 %v2453_v30, %v2502_v19  ;;  %v2696_v25 = vsub.f32 %v2463_v53, %v2505_v46  ;;  %v2700_v38 = vsub.f32 %v2467_v11, %v2508_v21 }
 0x185   :  { %3808 = vst [vmem:[#allocation11_spill] sm:$0xff] %v2687_v1  ;;  %v692_v36 = vsel %vm430_vm3, %v691_v43, %v690_v48  ;;  %v697_v22 = vrot.slane %v655_v24, 2  ;;  %v2705_v56 = vsub.f32 %v2473_v49, %v2511_v58  ;;  %v2709_v59 = vsub.f32 %v2477_v41, %v2514_v50 }
 0x186   :  { %3809 = vst [vmem:[#allocation12_spill] sm:$0xff] %v2692_v10  ;;  %3810 = vst [vmem:[#allocation13_spill] sm:$0xff] %v2696_v25  ;;  %v694_v30 = vsel %vm433_vm4, %v693_v33, %v692_v36  ;;  %v642_v53 = vmul.f32 %v2683_v37, %v2683_v37  ;;  %v643_v11 = vmul.f32 %v2687_v1, %v2687_v1  ;;  %v699_v46 = vrot.slane %v656_v16, 1 }
 0x187   :  { %3811 = vst [vmem:[#allocation14_spill] sm:$0xff] %v2700_v38  ;;  %3812 = vst [vmem:[#allocation15_spill] sm:$0xff] %v2705_v56  ;;  %v644_v31 = vmul.f32 %v2692_v10, %v2692_v10  ;;  %v696_v19 = vsel %vm436_vm5, %v695_v52, %v694_v30  ;;  %v641_v49 = vmul.f32 %v2679_v20, %v2679_v20  ;;  %v979_v30 = vld [vmem:[%s3737_s6] sm:$0xf] }
 0x188   :  { %3813 = vst [vmem:[#allocation16_spill] sm:$0xff] %v2709_v59  ;;  %v645_v41 = vmul.f32 %v2696_v25, %v2696_v25  ;;  %v698_v21 = vsel %vm439_vm6, %v697_v22, %v696_v19  ;;  %v646_v58 = vmul.f32 %v2700_v38, %v2700_v38  ;;  %v673_v50 = vrot.slane %v642_v53, 7  ;;  %v716_v22 = vld [vmem:[%s3736_s5] sm:$0xff] }
 0x189   :  { %v675_v51 = vrot.slane %v643_v11, 6  ;;  %v700_v39 = vsel %vm442_vm7, %v699_v46, %v698_v21  ;;  %v647_v55 = vmul.f32 %v2705_v56, %v2705_v56  ;;  %v648_v57 = vmul.f32 %v2709_v59, %v2709_v59  ;;  %v980_v46 = vld [vmem:[%s3739_s7] sm:$0xf] }
 0x18a   :  { %v706_v12 = vsel %vm460_vm8, %v700_v39, 0.0  ;;  %v674_v42 = vsel %vm424_vm1, %v673_v50, %v641_v49  ;;  %v677_v60 = vrot.slane %v644_v31, 5  ;;  %v679_v24 = vrot.slane %v645_v41, 4  ;;  %v1468_v31 = vld [vmem:[%s3738_s8] sm:$0xf] }
 0x18b   :  { %707 = vadd.xlane.f32.xlu0 %v706_v12  ;;  %v676_v62 = vsel %vm427_vm2, %v675_v51, %v674_v42  ;;  %v681_v13 = vrot.slane %v646_v58, 3  ;;  %v683_v43 = vrot.slane %v647_v55, 2  ;;  %v685_v52 = vrot.slane %v648_v57, 1 }
 0x18c   :  { %v678_v45 = vsel %vm430_vm3, %v677_v60, %v676_v62  ;;  %v998_v53 = vrot.slane %v979_v30, %v2116_v5  ;;  %v984_v11 = vrot.slane %v979_v30, %v2118_v6  ;;  %v1473_v19 = vrot.slane %v1468_v31, %v2118_v6  ;;  %v712_v6 = vld [vmem:[%s3740_s4] sm:$0xff] }
 0x18d   :  { %v680_v16 = vsel %vm433_vm4, %v679_v24, %v678_v45  ;;  %v991_v60 = vrot.slane %v979_v30, %v2114_v4  ;;  %v1480_v62 = vrot.slane %v1468_v31, %v2114_v4  ;;  %v1487_v24 = vrot.slane %v1468_v31, %v2116_v5 }
 0x18e   :  { %v682_v33 = vsel %vm436_vm5, %v681_v13, %v680_v16  ;;  %v1005_v45 = vrot.slane %v979_v30, %v2120_v7  ;;  %v1494_v13 = vrot.slane %v1468_v31, %v2120_v7  ;;  %v1469_v16 = vld [vmem:[%s3741_s9] sm:$0xf] }
 0x18f   :  { %v684_v35 = vsel %vm439_vm6, %v683_v43, %v682_v33 }
 0x190   :  { %v686_v48 = vsel %vm442_vm7, %v685_v52, %v684_v35 }
 0x191   :  { %v703_v36 = vsel %vm460_vm8, %v686_v48, 0.0 }
 0x192   :  { %704 = vadd.xlane.f32.xlu1 %v703_v36 }
 0x1a1   :  { %754 = vperm.xlu0 %1982, %v716_v22  }
 0x1a5   :  { %1000 = vbcast.lane.b32.xlu0 %v998_v53, 256 }
 0x1a9   :  { %986 = vbcast.lane.b32.xlu0 %v984_v11, 256 }
 0x1ad   :  { %1475 = vbcast.lane.b32.xlu0 %v1473_v19, 256 }
 0x1b1   :  { %1379 = vperm.xlu0 %1982, %v980_v46  }
 0x209   :  { %v623_v49 = vpop.xlane.xlu0 %622 }
 0x20f   :  { %v620_v41 = vpop.xlane.xlu1 %619 }
 0x210   :  { %v624_v50 = vadd.f32 %v623_v49, %v620_v41 }
 0x218   :  { %v708_v21 = vpop.xlane.xlu0 %707 }
 0x21f   :  { %v705_v58 = vpop.xlane.xlu1 %704 }
 0x220   :  { %v709_v51 = vadd.f32 %v708_v21, %v705_v58  ;;  %v2766_v43 = vpop.permute.xlu0 %754 }
 0x221   :  { %3814 = vst [vmem:[#allocation17_spill] sm:$0xff] %v2766_v43  ;;  %v2775_v5 = vrot.slane %v2766_v43, 1  ;;  %v2778_v35 = vrot.slane %v2766_v43, 2  ;;  %v2781_v7 = vrot.slane %v2766_v43, 3  ;;  %v2784_v48 = vrot.slane %v2766_v43, 4 }
 0x222   :  { %v710_v39 = vadd.f32 %v709_v51, %v624_v50  ;;  %v2787_v36 = vrot.slane %v2766_v43, 5  ;;  %v2790_v22 = vrot.slane %v2766_v43, 6  ;;  %v2793_v30 = vrot.slane %v2766_v43, 7 }
 0x223   :  { %3816 = vst [vmem:[#allocation19_spill] sm:$0xff] %v2775_v5  ;;  %3817 = vst [vmem:[#allocation20_spill] sm:$0xff] %v2778_v35 }
 0x224   :  { %v711_v55 = vmul.f32 0.015625, %v710_v39  ;;  %v2768_v33 = vpop.permute.xlu0 %1000  ;;  %3818 = vst [vmem:[#allocation21_spill] sm:$0xff] %v2781_v7  ;;  %3819 = vst [vmem:[#allocation22_spill] sm:$0xff] %v2784_v48 }
 0x225   :  { %3820 = vst [vmem:[#allocation23_spill] sm:$0xff] %v2787_v36  ;;  %3821 = vst [vmem:[#allocation24_spill] sm:$0xff] %v2790_v22 }
 0x226   :  { %v713_v12 = vadd.f32 1e-05, %v711_v55  ;;  %3822 = vst [vmem:[#allocation25_spill] sm:$0xff] %v2793_v30 }
 0x228   :  { %1984 = vrsqrt.f32 %v713_v12  ;;  %v2770_v4 = vpop.permute.xlu0 %986 }
 0x22c   :  { %v2772_v52 = vpop.permute.xlu0 %1475 }
 0x22d   :  { %3815 = vst [vmem:[#allocation18_spill] sm:$0xff] %v2772_v52 }
 0x230   :  { %v2805_v51 = vpop.permute.xlu0 %1379 }
 0x231   :  { %3823 = vst [vmem:[#allocation26_spill] sm:$0xff] %v2805_v51 }
 0x232   :  { %v1985_v57 = vpop.eup %1984 }
 0x233   :  { %v715_v42 = vmul.f32 %v1985_v57, %v712_v6  ;;  %v3834_v6 = vld [vmem:[#allocation3_spill] sm:$0xff] }
 0x235   :  { %719 = vperm.xlu1 %1983, %v715_v42  }
 0x239   :  { %993 = vbcast.lane.b32.xlu1 %v991_v60, 256 }
 0x23d   :  { %1482 = vbcast.lane.b32.xlu1 %v1480_v62, 256 }
 0x241   :  { %1489 = vbcast.lane.b32.xlu1 %v1487_v24, 256 }
 0x245   :  { %1007 = vbcast.lane.b32.xlu1 %v1005_v45, 256 }
 0x249   :  { %1496 = vbcast.lane.b32.xlu1 %v1494_v13, 256 }
 0x24d   :  { %1868 = vperm.xlu1 %1983, %v1469_v16  }
 0x2b4   :  { %v720_v41 = vpop.permute.xlu1 %719 }
 0x2b5   :  { %v2819_v49 = vrot.slane %v720_v41, 1  ;;  %v2821_v46 = vrot.slane %v720_v41, 2  ;;  %v2823_v57 = vrot.slane %v720_v41, 3  ;;  %v2825_v42 = vrot.slane %v720_v41, 4 }
 0x2b6   :  { %v2827_v60 = vrot.slane %v720_v41, 5  ;;  %v2829_v62 = vrot.slane %v720_v41, 6  ;;  %v2831_v24 = vrot.slane %v720_v41, 7  ;;  %v736_v45 = vmul.f32 %v720_v41, %v2566_v14 }
 0x2b7   :  { %3824 = vst [vmem:[#allocation27_spill] sm:$0xff] %v2819_v49  ;;  %3825 = vst [vmem:[#allocation28_spill] sm:$0xff] %v2821_v46  ;;  %v744_v13 = vmul.f32 %v720_v41, %v2518_v54  ;;  %v2836_v16 = vmul.f32 %v720_v41, %v2679_v20  ;;  %v2839_v19 = vmul.f32 %v720_v41, %v2624_v26  ;;  %v3833_v41 = vld [vmem:[#allocation2_spill] sm:$0xff] }
 0x2b8   :  { %3826 = vst [vmem:[#allocation29_spill] sm:$0xff] %v2823_v57  ;;  %3827 = vst [vmem:[#allocation30_spill] sm:$0xff] %v2825_v42  ;;  %v737_v31 = vmul.f32 %v2819_v49, %v2570_v61  ;;  %v738_v11 = vmul.f32 %v2821_v46, %v2575_v2  ;;  %v739_v53 = vmul.f32 %v2823_v57, %v2579_v44 }
 0x2b9   :  { %3828 = vst [vmem:[#allocation31_spill] sm:$0xff] %v2827_v60  ;;  %3829 = vst [vmem:[#allocation32_spill] sm:$0xff] %v2829_v62  ;;  %v740_v14 = vmul.f32 %v2825_v42, %v2583_v40  ;;  %v741_v54 = vmul.f32 %v2827_v60, %v2588_v28  ;;  %v742_v20 = vmul.f32 %v2829_v62, %v2592_v8 }
 0x2ba   :  { %3830 = vst [vmem:[#allocation33_spill] sm:$0xff] %v2831_v24  ;;  %3831 = vst [vmem:[#allocation34_spill] sm:$0xff] %v2836_v16  ;;  %v743_v26 = vmul.f32 %v2831_v24, %v2596_v29  ;;  %v745_v61 = vmul.f32 %v2819_v49, %v2522_v63  ;;  %v746_v2 = vmul.f32 %v2821_v46, %v2526_v23 }
 0x2bb   :  { %3832 = vst [vmem:[#allocation35_spill] sm:$0xff] %v2839_v19  ;;  %v747_v44 = vmul.f32 %v2823_v57, %v2530_v34  ;;  %v748_v40 = vmul.f32 %v2825_v42, %v2534_v32  ;;  %v749_v28 = vmul.f32 %v2827_v60, %v2538_v18  ;;  %v750_v8 = vmul.f32 %v2829_v62, %v3833_v41 }
 0x2bc   :  { %v751_v29 = vmul.f32 %v2831_v24, %v3834_v6  ;;  %v2870_v63 = vadd.f32 %v2766_v43, %v736_v45  ;;  %v2873_v23 = vadd.f32 %v2775_v5, %v737_v31  ;;  %v2876_v34 = vadd.f32 %v2778_v35, %v738_v11 }
 0x2bd   :  { %v2879_v32 = vadd.f32 %v2781_v7, %v739_v53  ;;  %v2882_v18 = vadd.f32 %v2784_v48, %v740_v14  ;;  %v2885_v41 = vadd.f32 %v2787_v36, %v741_v54  ;;  %v2888_v6 = vadd.f32 %v2790_v22, %v742_v20 }
 0x2be   :  { %v2891_v45 = vadd.f32 %v2793_v30, %v743_v26  ;;  %v2894_v31 = vadd.f32 %v2766_v43, %v744_v13  ;;  %v2897_v11 = vadd.f32 %v2775_v5, %v745_v61  ;;  %v2900_v53 = vadd.f32 %v2778_v35, %v746_v2 }
 0x2bf   :  { %v2903_v14 = vadd.f32 %v2781_v7, %v747_v44  ;;  %v2906_v54 = vadd.f32 %v2784_v48, %v748_v40  ;;  %v2909_v20 = vadd.f32 %v2787_v36, %v749_v28  ;;  %v2912_v26 = vadd.f32 %v2790_v22, %v750_v8 }
 0x2c0   :  { %v2915_v13 = vadd.f32 %v2793_v30, %v751_v29  ;;  %v819_v61 = vadd.f32 3.0, %v2870_v63  ;;  %v820_v2 = vadd.f32 3.0, %v2873_v23  ;;  %v821_v12 = vadd.f32 3.0, %v2876_v34 }
 0x2c1   :  { %v822_v44 = vadd.f32 3.0, %v2879_v32  ;;  %v823_v40 = vadd.f32 3.0, %v2882_v18  ;;  %v824_v55 = vadd.f32 3.0, %v2885_v41  ;;  %v825_v28 = vadd.f32 3.0, %v2888_v6 }
 0x2c2   :  { %v826_v8 = vadd.f32 3.0, %v2891_v45  ;;  %v827_v39 = vadd.f32 3.0, %v2894_v31  ;;  %v828_v29 = vadd.f32 3.0, %v2897_v11  ;;  %v829_v50 = vadd.f32 3.0, %v2900_v53 }
 0x2c3   :  { %v830_v58 = vadd.f32 3.0, %v2903_v14  ;;  %v831_v21 = vadd.f32 3.0, %v2906_v54  ;;  %v832_v52 = vadd.f32 3.0, %v2909_v20  ;;  %v833_v30 = vadd.f32 3.0, %v2912_v26 }
 0x2c4   :  { %v834_v22 = vadd.f32 3.0, %v2915_v13  ;;  %v835_v36 = vmax.f32 %v819_v61, 0.0  ;;  %v836_v15 = vmax.f32 %v820_v2, 0.0  ;;  %v837_v47 = vmax.f32 %v821_v12, 0.0 }
 0x2c5   :  { %v838_v3 = vmax.f32 %v822_v44, 0.0  ;;  %v839_v24 = vmax.f32 %v823_v40, 0.0  ;;  %v840_v59 = vmax.f32 %v824_v55, 0.0  ;;  %v841_v62 = vmax.f32 %v825_v28, 0.0  ;;  %v2933_v44 = vpop.permute.xlu1 %993 }
 0x2c6   :  { %v842_v56 = vmax.f32 %v826_v8, 0.0  ;;  %v843_v60 = vmax.f32 %v827_v39, 0.0  ;;  %v844_v38 = vmax.f32 %v828_v29, 0.0  ;;  %v845_v19 = vmax.f32 %v829_v50, 0.0 }
 0x2c7   :  { %v846_v48 = vmax.f32 %v830_v58, 0.0  ;;  %v847_v7 = vmax.f32 %v831_v21, 0.0  ;;  %v848_v35 = vmax.f32 %v832_v52, 0.0  ;;  %v849_v5 = vmax.f32 %v833_v30, 0.0 }
 0x2c8   :  { %v850_v16 = vmax.f32 %v834_v22, 0.0  ;;  %v851_v43 = vmin.f32 %v835_v36, 6.0  ;;  %v852_v17 = vmin.f32 %v836_v15, 6.0  ;;  %v853_v27 = vmin.f32 %v837_v47, 6.0 }
 0x2c9   :  { %v854_v0 = vmin.f32 %v838_v3, 6.0  ;;  %v855_v61 = vmin.f32 %v839_v24, 6.0  ;;  %v856_v2 = vmin.f32 %v840_v59, 6.0  ;;  %v857_v12 = vmin.f32 %v841_v62, 6.0 }
 0x2ca   :  { %v858_v55 = vmin.f32 %v842_v56, 6.0  ;;  %v859_v40 = vmin.f32 %v843_v60, 6.0  ;;  %v860_v28 = vmin.f32 %v844_v38, 6.0  ;;  %v861_v39 = vmin.f32 %v845_v19, 6.0 }
 0x2cb   :  { %v862_v8 = vmin.f32 %v846_v48, 6.0  ;;  %v863_v50 = vmin.f32 %v847_v7, 6.0  ;;  %v864_v58 = vmin.f32 %v848_v35, 6.0  ;;  %v865_v21 = vmin.f32 %v849_v5, 6.0 }
 0x2cc   :  { %v866_v52 = vmin.f32 %v850_v16, 6.0  ;;  %v867_v30 = vmul.f32 0.16666667, %v851_v43  ;;  %v868_v22 = vmul.f32 0.16666667, %v852_v17  ;;  %v2938_v59 = vmul.f32 %v2819_v49, %v2683_v37 }
 0x2cd   :  { %v869_v47 = vmul.f32 0.16666667, %v853_v27  ;;  %v870_v3 = vmul.f32 0.16666667, %v854_v0  ;;  %v871_v36 = vmul.f32 0.16666667, %v855_v61 }
 0x2ce   :  { %3835 = vst [vmem:[#allocation2_spill] sm:$0xff] %v2938_v59  ;;  %v872_v56 = vmul.f32 0.16666667, %v856_v2  ;;  %v873_v60 = vmul.f32 0.16666667, %v857_v12  ;;  %v2941_v48 = vmul.f32 %v867_v30, %v2870_v63  ;;  %v2944_v17 = vmul.f32 %v868_v22, %v2873_v23 }
 0x2cf   :  { %v874_v38 = vmul.f32 0.16666667, %v858_v55  ;;  %v875_v35 = vmul.f32 0.16666667, %v859_v40  ;;  %v876_v5 = vmul.f32 0.16666667, %v860_v28  ;;  %v2947_v19 = vmul.f32 %v869_v47, %v2876_v34 }
 0x2d0   :  { %v877_v7 = vmul.f32 0.16666667, %v861_v39  ;;  %v878_v43 = vmul.f32 0.16666667, %v862_v8  ;;  %v879_v27 = vmul.f32 0.16666667, %v863_v50  ;;  %v2950_v24 = vmul.f32 %v870_v3, %v2879_v32 }
 0x2d1   :  { %v880_v0 = vmul.f32 0.16666667, %v864_v58  ;;  %v881_v37 = vmul.f32 0.16666667, %v865_v21  ;;  %v882_v62 = vmul.f32 0.16666667, %v866_v52  ;;  %v2953_v16 = vmul.f32 %v871_v36, %v2882_v18 }
 0x2d2   :  { %v2956_v63 = vmul.f32 %v872_v56, %v2885_v41  ;;  %v2959_v23 = vmul.f32 %v873_v60, %v2888_v6  ;;  %v2962_v29 = vmul.f32 %v874_v38, %v2891_v45  ;;  %v2965_v34 = vmul.f32 %v875_v35, %v2894_v31 }
 0x2d3   :  { %v2968_v61 = vmul.f32 %v876_v5, %v2897_v11  ;;  %v2971_v32 = vmul.f32 %v877_v7, %v2900_v53  ;;  %v2974_v18 = vmul.f32 %v878_v43, %v2903_v14  ;;  %v2977_v41 = vmul.f32 %v879_v27, %v2906_v54 }
 0x2d4   :  { %v2980_v6 = vmul.f32 %v880_v0, %v2909_v20  ;;  %v2983_v45 = vmul.f32 %v881_v37, %v2912_v26  ;;  %v2986_v31 = vmul.f32 %v882_v62, %v2915_v13  ;;  %v1073_v11 = vmul.f32 %v2770_v4, %v2941_v48 }
 0x2d5   :  { %v3837_v53 = vrot.slane %v2770_v4, 1  ;;  %v3838_v54 = vrot.slane %v2770_v4, 2  ;;  %v3839_v20 = vrot.slane %v2770_v4, 3  ;;  %v3840_v26 = vrot.slane %v2770_v4, 4 }
 0x2d6   :  { %3836 = vst [vmem:[#allocation3_spill] sm:$0xff] %v2983_v45  ;;  %v3841_v55 = vrot.slane %v2770_v4, 5  ;;  %v3842_v28 = vrot.slane %v2770_v4, 6  ;;  %v3843_v8 = vrot.slane %v2770_v4, 7  ;;  %v1089_v58 = vmul.f32 %v2768_v33, %v2941_v48 }
 0x2d7   :  { %v1074_v14 = vmul.f32 %v3837_v53, %v2944_v17  ;;  %v1075_v2 = vmul.f32 %v3838_v54, %v2947_v19  ;;  %v1076_v12 = vmul.f32 %v3839_v20, %v2950_v24  ;;  %v1077_v13 = vmul.f32 %v3840_v26, %v2953_v16 }
 0x2d8   :  { %v1078_v40 = vmul.f32 %v3841_v55, %v2956_v63  ;;  %v1079_v39 = vmul.f32 %v3842_v28, %v2959_v23  ;;  %v1080_v50 = vmul.f32 %v3843_v8, %v2962_v29  ;;  %v3844_v21 = vrot.slane %v2768_v33, 1 }
 0x2d9   :  { %v3845_v30 = vrot.slane %v2768_v33, 2  ;;  %v3846_v47 = vrot.slane %v2768_v33, 3  ;;  %v3847_v36 = vrot.slane %v2768_v33, 4  ;;  %v3848_v60 = vrot.slane %v2768_v33, 5 }
 0x2da   :  { %v1090_v52 = vmul.f32 %v3844_v21, %v2944_v17  ;;  %v3849_v35 = vrot.slane %v2768_v33, 6  ;;  %v3850_v7 = vrot.slane %v2768_v33, 7  ;;  %v1105_v27 = vmul.f32 %v2770_v4, %v2965_v34 }
 0x2db   :  { %v1091_v22 = vmul.f32 %v3845_v30, %v2947_v19  ;;  %v1092_v3 = vmul.f32 %v3846_v47, %v2950_v24  ;;  %v1093_v56 = vmul.f32 %v3847_v36, %v2953_v16  ;;  %v1094_v38 = vmul.f32 %v3848_v60, %v2956_v63 }
 0x2dc   :  { %v1095_v5 = vmul.f32 %v3849_v35, %v2959_v23  ;;  %v1096_v43 = vmul.f32 %v3850_v7, %v2962_v29  ;;  %v3851_v0 = vmov %v3837_v53  ;;  %v3852_v62 = vmov %v3838_v54 }
 0x2dd   :  { %v1106_v37 = vmul.f32 %v3851_v0, %v2968_v61  ;;  %v1107_v53 = vmul.f32 %v3852_v62, %v2971_v32  ;;  %v3853_v54 = vmov %v3839_v20  ;;  %v1109_v55 = vmul.f32 %v3840_v26, %v2977_v41 }
 0x2de   :  { %v1108_v20 = vmul.f32 %v3853_v54, %v2974_v18  ;;  %v3854_v28 = vrot.slane %v2770_v4, 5  ;;  %v3855_v21 = vrot.slane %v2770_v4, 6  ;;  %v3856_v47 = vrot.slane %v2770_v4, 7 }
 0x2df   :  { %v1121_v60 = vmul.f32 %v2768_v33, %v2965_v34  ;;  %v3857_v35 = vrot.slane %v2768_v33, 1  ;;  %v3858_v0 = vrot.slane %v2768_v33, 2  ;;  %v3859_v54 = vrot.slane %v2768_v33, 3 }
 0x2e0   :  { %v1110_v8 = vmul.f32 %v3854_v28, %v2980_v6  ;;  %v1111_v30 = vmul.f32 %v3855_v21, %v2983_v45  ;;  %v1112_v36 = vmul.f32 %v3856_v47, %v2986_v31  ;;  %v3860_v28 = vrot.slane %v2768_v33, 4 }
 0x2e1   :  { %v1122_v7 = vmul.f32 %v3857_v35, %v2968_v61  ;;  %v1123_v62 = vmul.f32 %v3858_v0, %v2971_v32  ;;  %v1124_v26 = vmul.f32 %v3859_v54, %v2974_v18  ;;  %v3861_v21 = vrot.slane %v2768_v33, 5 }
 0x2e2   :  { %v3071_v4 = vmul.f32 %v3860_v28, %v2977_v41  ;;  %v3862_v35 = vrot.slane %v2768_v33, 6  ;;  %v3863_v0 = vrot.slane %v2768_v33, 7  ;;  %v1201_v54 = vrot.slane %v1074_v14, 7 }
 0x2e3   :  { %v3076_v47 = vmul.f32 %v3861_v21, %v2980_v6  ;;  %v1203_v49 = vrot.slane %v1075_v2, 6  ;;  %v1205_v9 = vrot.slane %v1076_v12, 5  ;;  %v1207_v28 = vrot.slane %v1077_v13, 4 }
 0x2e4   :  { %v3081_v15 = vmul.f32 %v3862_v35, %v2983_v45  ;;  %v3086_v59 = vmul.f32 %v3863_v0, %v2986_v31  ;;  %v1209_v42 = vrot.slane %v1078_v40, 3  ;;  %v1202_v25 = vsel %vm424_vm1, %v1201_v54, %v1073_v11 }
 0x2e5   :  { %v1211_v57 = vrot.slane %v1079_v39, 2  ;;  %v1213_v21 = vrot.slane %v1080_v50, 1  ;;  %v1229_v10 = vrot.slane %v1090_v52, 7  ;;  %v1204_v46 = vsel %vm427_vm2, %v1203_v49, %v1202_v25 }
 0x2e6   :  { %v1231_v1 = vrot.slane %v1091_v22, 6  ;;  %v1233_v35 = vrot.slane %v1092_v3, 5  ;;  %v1235_v45 = vrot.slane %v1093_v56, 4  ;;  %v1206_v51 = vsel %vm430_vm3, %v1205_v9, %v1204_v46 }
 0x2e7   :  { %v1230_v33 = vsel %vm424_vm1, %v1229_v10, %v1089_v58  ;;  %v1237_v0 = vrot.slane %v1094_v38, 3  ;;  %v1239_v14 = vrot.slane %v1095_v5, 2  ;;  %v1208_v2 = vsel %vm433_vm4, %v1207_v28, %v1206_v51 }
 0x2e8   :  { %v1232_v12 = vsel %vm427_vm2, %v1231_v1, %v1230_v33  ;;  %v1241_v13 = vrot.slane %v1096_v43, 1  ;;  %v1257_v11 = vrot.slane %v1106_v37, 7  ;;  %v1210_v40 = vsel %vm436_vm5, %v1209_v42, %v1208_v2 }
 0x2e9   :  { %v1234_v39 = vsel %vm430_vm3, %v1233_v35, %v1232_v12  ;;  %v1259_v25 = vrot.slane %v1107_v53, 6  ;;  %v1261_v49 = vrot.slane %v1108_v20, 5  ;;  %v1212_v50 = vsel %vm439_vm6, %v1211_v57, %v1210_v40 }
 0x2ea   :  { %v1236_v9 = vsel %vm433_vm4, %v1235_v45, %v1234_v39  ;;  %v1258_v10 = vsel %vm424_vm1, %v1257_v11, %v1105_v27  ;;  %v1263_v46 = vrot.slane %v1109_v55, 4  ;;  %v1214_v58 = vsel %vm442_vm7, %v1213_v21, %v1212_v50 }
 0x2eb   :  { %v1238_v51 = vsel %vm436_vm5, %v1237_v0, %v1236_v9  ;;  %v1260_v1 = vsel %vm427_vm2, %v1259_v25, %v1258_v10  ;;  %v1265_v52 = vrot.slane %v1110_v8, 3  ;;  %v1267_v3 = vrot.slane %v1111_v30, 2 }
 0x2ec   :  { %v1240_v42 = vsel %vm439_vm6, %v1239_v14, %v1238_v51  ;;  %v1262_v22 = vsel %vm430_vm3, %v1261_v49, %v1260_v1  ;;  %v1269_v56 = vrot.slane %v1112_v36, 1  ;;  %v1285_v38 = vrot.slane %v1122_v7, 7 }
 0x2ed   :  { %v1242_v57 = vsel %vm442_vm7, %v1241_v13, %v1240_v42  ;;  %v1264_v45 = vsel %vm433_vm4, %v1263_v46, %v1262_v22  ;;  %v1287_v5 = vrot.slane %v1123_v62, 6  ;;  %v1289_v27 = vrot.slane %v1124_v26, 5 }
 0x2ee   :  { %v1266_v43 = vsel %vm436_vm5, %v1265_v52, %v1264_v45  ;;  %v1291_v37 = vrot.slane %v3071_v4, 4  ;;  %v1293_v53 = vrot.slane %v3076_v47, 3  ;;  %v1286_v55 = vsel %vm424_vm1, %v1285_v38, %v1121_v60 }
 0x2ef   :  { %v1268_v20 = vsel %vm439_vm6, %v1267_v3, %v1266_v43  ;;  %v1295_v8 = vrot.slane %v3081_v15, 2  ;;  %v1297_v30 = vrot.slane %v3086_v59, 1  ;;  %v1288_v7 = vsel %vm427_vm2, %v1287_v5, %v1286_v55 }
 0x2f0   :  { %v1270_v36 = vsel %vm442_vm7, %v1269_v56, %v1268_v20  ;;  %v1321_v62 = vsel %vm460_vm8, %v1214_v58, 0.0  ;;  %v1335_v26 = vsel %vm460_vm8, %v1242_v57, 0.0  ;;  %v1290_v4 = vsel %vm430_vm3, %v1289_v27, %v1288_v7 }
 0x2f1   :  { %v1322_v54 = vrot.slane %v1321_v62, 4  ;;  %v1336_v47 = vrot.slane %v1335_v26, 4  ;;  %v1349_v28 = vsel %vm460_vm8, %v1270_v36, 0.0  ;;  %v1292_v60 = vsel %vm433_vm4, %v1291_v37, %v1290_v4 }
 0x2f2   :  { %v1350_v21 = vrot.slane %v1349_v28, 4  ;;  %v1021_v15 = vrot.slane %v2933_v44, 2  ;;  %v1022_v59 = vrot.slane %v2933_v44, 3  ;;  %v1294_v35 = vsel %vm436_vm5, %v1293_v53, %v1292_v60 }
 0x2f3   :  { %v1323_v33 = vadd.f32 %v1322_v54, %v1321_v62  ;;  %v1337_v0 = vadd.f32 %v1336_v47, %v1335_v26  ;;  %v1023_v14 = vrot.slane %v2933_v44, 4  ;;  %v1296_v2 = vsel %vm439_vm6, %v1295_v8, %v1294_v35 }
 0x2f4   :  { %v1351_v12 = vadd.f32 %v1350_v21, %v1349_v28  ;;  %v1024_v13 = vrot.slane %v2933_v44, 5  ;;  %v1025_v11 = vrot.slane %v2933_v44, 6  ;;  %v1298_v40 = vsel %vm442_vm7, %v1297_v30, %v1296_v2  ;;  %v3866_v28 = vld [vmem:[#allocation26_spill] sm:$0xff] }
 0x2f5   :  { %v1324_v39 = vrot.slane %v1323_v33, 2  ;;  %v1338_v25 = vrot.slane %v1337_v0, 2  ;;  %v1026_v49 = vrot.slane %v2933_v44, 7  ;;  %v1363_v9 = vsel %vm460_vm8, %v1298_v40, 0.0 }
 0x2f6   :  { %v1352_v50 = vrot.slane %v1351_v12, 2  ;;  %v1081_v10 = vmul.f32 %v2933_v44, %v2941_v48  ;;  %v3864_v46 = vrot.slane %v2933_v44, 1  ;;  %v1364_v52 = vrot.slane %v1363_v9, 4 }
 0x2f7   :  { %v1325_v51 = vadd.f32 %v1324_v39, %v1323_v33  ;;  %v1339_v1 = vadd.f32 %v1338_v25, %v1337_v0  ;;  %v1083_v42 = vmul.f32 %v1021_v15, %v2947_v19  ;;  %v1084_v3 = vmul.f32 %v1022_v59, %v2950_v24 }
 0x2f8   :  { %v1082_v58 = vmul.f32 %v3864_v46, %v2944_v17  ;;  %v1353_v22 = vadd.f32 %v1352_v50, %v1351_v12  ;;  %v1085_v56 = vmul.f32 %v1023_v14, %v2953_v16  ;;  %v1086_v57 = vmul.f32 %v1024_v13, %v2956_v63 }
 0x2f9   :  { %v1326_v45 = vrot.slane %v1325_v51, 1  ;;  %v1340_v38 = vrot.slane %v1339_v1, 1  ;;  %v1365_v5 = vadd.f32 %v1364_v52, %v1363_v9  ;;  %v1087_v43 = vmul.f32 %v1025_v11, %v2959_v23 }
 0x2fa   :  { %v1354_v27 = vrot.slane %v1353_v22, 1  ;;  %v1088_v37 = vmul.f32 %v1026_v49, %v2962_v29  ;;  %v1113_v53 = vmul.f32 %v2933_v44, %v2965_v34  ;;  %v3865_v20 = vmov %v3864_v46  ;;  %v3868_v44 = vld [vmem:[#allocation3_spill] sm:$0xff] }
 0x2fb   :  { %v1114_v55 = vmul.f32 %v3865_v20, %v2968_v61  ;;  %v1327_v8 = vadd.f32 %v1326_v45, %v1325_v51  ;;  %v1341_v30 = vadd.f32 %v1340_v38, %v1339_v1  ;;  %v1366_v36 = vrot.slane %v1365_v5, 2 }
 0x2fc   :  { %v1115_v7 = vmul.f32 %v1021_v15, %v2971_v32  ;;  %v1355_v62 = vadd.f32 %v1354_v27, %v1353_v22  ;;  %v1116_v26 = vmul.f32 %v1022_v59, %v2974_v18  ;;  %v1117_v4 = vmul.f32 %v1023_v14, %v2977_v41 }
 0x2fd   :  { %v1118_v54 = vmul.f32 %v1024_v13, %v2980_v6  ;;  %v1367_v47 = vadd.f32 %v1366_v36, %v1365_v5  ;;  %v1388_v60 = vadd.f32 %v3866_v28, %v1327_v8  ;;  %v3867_v21 = vrot.slane %v3866_v28, 2 }
 0x2fe   :  { %v1119_v33 = vmul.f32 %v1025_v11, %v3868_v44  ;;  %v1392_v0 = vadd.f32 %v3866_v28, %v1355_v62  ;;  %v1120_v2 = vmul.f32 %v1026_v49, %v2986_v31  ;;  %v1215_v15 = vrot.slane %v1082_v58, 7 }
 0x2ff   :  { %v1390_v35 = vadd.f32 %v3867_v21, %v1341_v30  ;;  %v1217_v12 = vrot.slane %v1083_v42, 6  ;;  %v1368_v40 = vrot.slane %v1367_v47, 1  ;;  %v1965_v59 = vmul.f32 -1.442695, %v1388_v60  ;;  %v3873_v60 = vld [vmem:[#allocation29_spill] sm:$0xff] }
 0x300   :  { %v1219_v14 = vrot.slane %v1084_v3, 5  ;;  %v1969_v25 = vmul.f32 -1.442695, %v1392_v0  ;;  %v1216_v13 = vsel %vm424_vm1, %v1215_v15, %v1081_v10  ;;  %v1221_v50 = vrot.slane %v1085_v56, 4  ;;  %v3877_v15 = vld [vmem:[#allocation27_spill] sm:$0xff] }
 0x301   :  { %v1967_v39 = vmul.f32 -1.442695, %v1390_v35  ;;  %v1223_v9 = vrot.slane %v1086_v57, 3  ;;  %v1369_v46 = vadd.f32 %v1368_v40, %v1367_v47  ;;  %1986 = vpow2.f32 %v1965_v59  ;;  %v3872_v47 = vld [vmem:[#allocation12_spill] sm:$0xff]  ;;  %v3875_v35 = vld [vmem:[#allocation30_spill] sm:$0xff]  ;;  %v3878_v40 = vld [vmem:[#allocation5_spill] sm:$0xff] }
 0x302   :  { %v1218_v51 = vsel %vm427_vm2, %v1217_v12, %v1216_v13  ;;  %v1225_v11 = vrot.slane %v1087_v43, 2  ;;  %v1227_v49 = vrot.slane %v1088_v37, 1  ;;  %v1271_v58 = vrot.slane %v1114_v55, 7 }
 0x303   :  { %1988 = vpow2.f32 %v1967_v39  ;;  %v1220_v1 = vsel %vm430_vm3, %v1219_v14, %v1218_v51  ;;  %v3869_v52 = vmov %v3867_v21  ;;  %v1273_v3 = vrot.slane %v1115_v7, 6  ;;  %v3871_v7 = vld [vmem:[#allocation28_spill] sm:$0xff]  ;;  %v3874_v21 = vld [vmem:[#allocation13_spill] sm:$0xff]  ;;  %v3879_v39 = vld [vmem:[#allocation6_spill] sm:$0xff] }
 0x304   :  { %v1394_v42 = vadd.f32 %v3869_v52, %v1369_v46  ;;  %1990 = vpow2.f32 %v1969_v25  ;;  %v1222_v22 = vsel %vm433_vm4, %v1221_v50, %v1220_v1  ;;  %v1272_v56 = vsel %vm424_vm1, %v1271_v58, %v1113_v53  ;;  %v3870_v53 = vld [vmem:[#allocation11_spill] sm:$0xff]  ;;  %v3881_v46 = vld [vmem:[#allocation17_spill] sm:$0xff]  ;;  %v3882_v51 = vld [vmem:[#allocation34_spill] sm:$0xff] }
 0x305   :  { %v1224_v10 = vsel %vm436_vm5, %v1223_v9, %v1222_v22  ;;  %v1275_v57 = vrot.slane %v1116_v26, 5  ;;  %v1277_v45 = vrot.slane %v1117_v4, 4  ;;  %v1274_v43 = vsel %vm427_vm2, %v1273_v3, %v1272_v56  ;;  %v3880_v50 = vld [vmem:[#allocation7_spill] sm:$0xff]  ;;  %v3884_v52 = vld [vmem:[#allocation2_spill] sm:$0xff]  ;;  %v3885_v22 = vld [vmem:[#allocation20_spill] sm:$0xff] }
 0x306   :  { %v1971_v38 = vmul.f32 -1.442695, %v1394_v42  ;;  %v1226_v5 = vsel %vm439_vm6, %v1225_v11, %v1224_v10  ;;  %v1279_v27 = vrot.slane %v1118_v54, 3  ;;  %v1281_v55 = vrot.slane %v1119_v33, 2  ;;  %v3883_v58 = vld [vmem:[#allocation19_spill] sm:$0xff]  ;;  %v3886_v10 = vld [vmem:[#allocation21_spill] sm:$0xff] }
 0x307   :  { %v1228_v37 = vsel %vm442_vm7, %v1227_v49, %v1226_v5  ;;  %v1276_v20 = vsel %vm430_vm3, %v1275_v57, %v1274_v43  ;;  %v1283_v8 = vrot.slane %v1120_v2, 1  ;;  %v789_v62 = vmul.f32 %v3871_v7, %v3870_v53  ;;  %v3876_v2 = vld [vmem:[#allocation4_spill] sm:$0xff]  ;;  %v3887_v43 = vld [vmem:[#allocation22_spill] sm:$0xff] }
 0x308   :  { %1992 = vpow2.f32 %v1971_v38  ;;  %v1278_v30 = vsel %vm433_vm4, %v1277_v45, %v1276_v20  ;;  %v1328_v36 = vsel %vm460_vm8, %v1228_v37, 0.0  ;;  %v790_v54 = vmul.f32 %v3873_v60, %v3872_v47  ;;  %v3205_v37 = vpop.permute.xlu1 %1482 }
 0x309   :  { %v1280_v26 = vsel %vm436_vm5, %v1279_v27, %v1278_v30  ;;  %v1329_v4 = vrot.slane %v1328_v36, 4  ;;  %v791_v0 = vmul.f32 %v3875_v35, %v3874_v21  ;;  %v796_v12 = vmul.f32 %v3877_v15, %v3876_v2 }
 0x30a   :  { %v1282_v33 = vsel %vm439_vm6, %v1281_v55, %v1280_v26  ;;  %v797_v59 = vmul.f32 %v3871_v7, %v3878_v40  ;;  %v798_v14 = vmul.f32 %v3873_v60, %v3879_v39  ;;  %v799_v9 = vmul.f32 %v3875_v35, %v3880_v50 }
 0x30b   :  { %v1284_v25 = vsel %vm442_vm7, %v1283_v8, %v1282_v33  ;;  %v1330_v13 = vadd.f32 %v1329_v4, %v1328_v36  ;;  %v3189_v11 = vadd.f32 %v3882_v51, %v3881_v46  ;;  %v1987_v1 = vpop.eup %1986  ;;  %v3194_v42 = vadd.f32 %v3884_v52, %v3883_v58  ;;  %v3888_v8 = vld [vmem:[#allocation35_spill] sm:$0xff] }
 0x30c   :  { %v1356_v49 = vsel %vm460_vm8, %v1284_v25, 0.0  ;;  %v3197_v3 = vadd.f32 %v789_v62, %v3885_v22  ;;  %v3200_v56 = vadd.f32 %v790_v54, %v3886_v10  ;;  %v1420_v45 = vadd.f32 1.0, %v1987_v1  ;;  %v3230_v25 = vpop.permute.xlu1 %1489 }
 0x30d   :  { %v1989_v57 = vpop.eup %1988  ;;  %v1331_v38 = vrot.slane %v1330_v13, 2  ;;  %v1357_v5 = vrot.slane %v1356_v49, 4  ;;  %v3203_v27 = vadd.f32 %v791_v0, %v3887_v43  ;;  %v3209_v30 = vadd.f32 %v3888_v8, %v3881_v46 }
 0x30e   :  { %v1991_v20 = vpop.eup %1990  ;;  %v1422_v55 = vadd.f32 1.0, %v1989_v57  ;;  %v3212_v36 = vadd.f32 %v796_v12, %v3883_v58  ;;  %v3215_v53 = vadd.f32 %v797_v59, %v3885_v22  ;;  %1994 = vrcp.f32 %v1420_v45 }
 0x30f   :  { %v1424_v7 = vadd.f32 1.0, %v1991_v20  ;;  %v1332_v62 = vadd.f32 %v1331_v38, %v1330_v13  ;;  %v1358_v26 = vadd.f32 %v1357_v5, %v1356_v49  ;;  %v3218_v4 = vadd.f32 %v798_v14, %v3886_v10 }
 0x310   :  { %1996 = vrcp.f32 %v1422_v55  ;;  %v3221_v47 = vadd.f32 %v799_v9, %v3887_v43  ;;  %v899_v60 = vadd.f32 3.0, %v3189_v11  ;;  %v900_v35 = vadd.f32 3.0, %v3194_v42 }
 0x311   :  { %1998 = vrcp.f32 %v1424_v7  ;;  %v1333_v54 = vrot.slane %v1332_v62, 1  ;;  %v1359_v21 = vrot.slane %v1358_v26, 2  ;;  %v901_v33 = vadd.f32 3.0, %v3197_v3 }
 0x312   :  { %v1993_v0 = vpop.eup %1992  ;;  %v902_v2 = vadd.f32 3.0, %v3200_v56  ;;  %v903_v15 = vadd.f32 3.0, %v3203_v27  ;;  %v907_v12 = vadd.f32 3.0, %v3209_v30  ;;  %v908_v14 = vadd.f32 3.0, %v3212_v36 }
 0x313   :  { %v1426_v40 = vadd.f32 1.0, %v1993_v0  ;;  %v1334_v59 = vadd.f32 %v1333_v54, %v1332_v62  ;;  %v1360_v39 = vadd.f32 %v1359_v21, %v1358_v26  ;;  %v909_v13 = vadd.f32 3.0, %v3215_v53 }
 0x314   :  { %v910_v50 = vadd.f32 3.0, %v3218_v4  ;;  %v911_v9 = vadd.f32 3.0, %v3221_v47  ;;  %v915_v46 = vmax.f32 %v899_v60, 0.0  ;;  %v3889_v1 = vrot.slane %v3866_v28, 1 }
 0x315   :  { %2000 = vrcp.f32 %v1426_v40  ;;  %v1361_v51 = vrot.slane %v1360_v39, 1  ;;  %v916_v58 = vmax.f32 %v900_v35, 0.0  ;;  %v917_v52 = vmax.f32 %v901_v33, 0.0  ;;  %v3241_v35 = vpop.permute.xlu1 %1007 }
 0x316   :  { %v1389_v49 = vadd.f32 %v3889_v1, %v1334_v59  ;;  %v918_v22 = vmax.f32 %v902_v2, 0.0  ;;  %v919_v10 = vmax.f32 %v903_v15, 0.0  ;;  %v923_v57 = vmax.f32 %v907_v12, 0.0 }
 0x317   :  { %v1362_v45 = vadd.f32 %v1361_v51, %v1360_v39  ;;  %v924_v5 = vmax.f32 %v908_v14, 0.0  ;;  %v925_v43 = vmax.f32 %v909_v13, 0.0  ;;  %v926_v20 = vmax.f32 %v910_v50, 0.0 }
 0x318   :  { %v1966_v38 = vmul.f32 -1.442695, %v1389_v49  ;;  %v927_v55 = vmax.f32 %v911_v9, 0.0  ;;  %v931_v8 = vmin.f32 %v915_v46, 6.0  ;;  %v932_v7 = vmin.f32 %v916_v58, 6.0  ;;  %v3237_v62 = vpop.eup %1994 }
 0x319   :  { %v3890_v26 = vmov %v3889_v1  ;;  %v933_v54 = vmin.f32 %v917_v52, 6.0  ;;  %v934_v21 = vmin.f32 %v918_v22, 6.0  ;;  %v935_v33 = vmin.f32 %v919_v10, 6.0 }
 0x31a   :  { %v1393_v60 = vadd.f32 %v3890_v26, %v1362_v45  ;;  %2002 = vpow2.f32 %v1966_v38  ;;  %v3243_v0 = vpop.eup %1996  ;;  %v939_v2 = vmin.f32 %v923_v57, 6.0  ;;  %v940_v15 = vmin.f32 %v924_v5, 6.0 }
 0x31b   :  { %v941_v12 = vmin.f32 %v925_v43, 6.0  ;;  %v3245_v40 = vpop.eup %1998  ;;  %v942_v39 = vmin.f32 %v926_v20, 6.0  ;;  %v943_v14 = vmin.f32 %v927_v55, 6.0  ;;  %v947_v13 = vmul.f32 0.16666667, %v931_v8 }
 0x31c   :  { %v1970_v59 = vmul.f32 -1.442695, %v1393_v60  ;;  %v948_v50 = vmul.f32 0.16666667, %v932_v7  ;;  %v949_v9 = vmul.f32 0.16666667, %v933_v54  ;;  %v3249_v51 = vmul.f32 %v3241_v35, %v2941_v48 }
 0x31d   :  { %v950_v46 = vmul.f32 0.16666667, %v934_v21  ;;  %v951_v1 = vmul.f32 0.16666667, %v935_v33  ;;  %v955_v49 = vmul.f32 0.16666667, %v939_v2  ;;  %v3252_v57 = vmul.f32 %v947_v13, %v3189_v11 }
 0x31e   :  { %2004 = vpow2.f32 %v1970_v59  ;;  %v956_v58 = vmul.f32 0.16666667, %v940_v15  ;;  %v957_v52 = vmul.f32 0.16666667, %v941_v12  ;;  %v958_v22 = vmul.f32 0.16666667, %v942_v39 }
 0x31f   :  { %v959_v10 = vmul.f32 0.16666667, %v943_v14  ;;  %v3254_v45 = vpop.eup %2000  ;;  %v3257_v38 = vmul.f32 %v948_v50, %v3194_v42  ;;  %v3260_v5 = vmul.f32 %v949_v9, %v3197_v3  ;;  %v3263_v48 = vmul.f32 %v950_v46, %v3200_v56 }
 0x320   :  { %v3266_v43 = vmul.f32 %v951_v1, %v3203_v27  ;;  %v3269_v20 = vmul.f32 %v955_v49, %v3209_v30  ;;  %v3272_v11 = vmul.f32 %v956_v58, %v3212_v36  ;;  %v3275_v55 = vmul.f32 %v957_v52, %v3215_v53 }
 0x321   :  { %v3278_v42 = vmul.f32 %v958_v22, %v3218_v4  ;;  %v3281_v3 = vmul.f32 %v959_v10, %v3221_v47  ;;  %v1509_v56 = vrot.slane %v3205_v37, 1  ;;  %v1510_v27 = vrot.slane %v3205_v37, 2 }
 0x322   :  { %v1511_v8 = vrot.slane %v3205_v37, 3  ;;  %v1512_v30 = vrot.slane %v3205_v37, 4  ;;  %v1570_v53 = vmul.f32 %v3205_v37, %v3252_v57  ;;  %v1602_v54 = vmul.f32 %v3205_v37, %v3269_v20 }
 0x323   :  { %v1571_v26 = vmul.f32 %v1509_v56, %v3257_v38  ;;  %v3293_v47 = vmul.f32 %v1510_v27, %v3260_v5  ;;  %v1603_v2 = vmul.f32 %v1509_v56, %v3272_v11  ;;  %v3305_v15 = vmul.f32 %v1510_v27, %v3275_v55 }
 0x324   :  { %v2003_v4 = vpop.eup %2002  ;;  %v3296_v60 = vmul.f32 %v1511_v8, %v3263_v48  ;;  %v3301_v33 = vmul.f32 %v1512_v30, %v3266_v43  ;;  %v3308_v12 = vmul.f32 %v1511_v8, %v3278_v42  ;;  %v3311_v59 = vmul.f32 %v1512_v30, %v3281_v3 }
 0x325   :  { %v1421_v21 = vadd.f32 1.0, %v2003_v4  ;;  %v1704_v39 = vrot.slane %v1571_v26, 7  ;;  %v1760_v50 = vrot.slane %v1603_v2, 7  ;;  %v1516_v58 = vrot.slane %v3230_v25, 1 }
 0x326   :  { %3891 = vst [vmem:[#allocation26_spill] sm:$0xff] %v3308_v12  ;;  %v1517_v52 = vrot.slane %v3230_v25, 2  ;;  %v1518_v56 = vrot.slane %v3230_v25, 3  ;;  %v1519_v27 = vrot.slane %v3230_v25, 4  ;;  %v1610_v2 = vmul.f32 %v3230_v25, %v3269_v20 }
 0x327   :  { %2006 = vrcp.f32 %v1421_v21  ;;  %v3317_v1 = vsel %vm424_vm1, %v1704_v39, %v1570_v53  ;;  %v3323_v10 = vsel %vm424_vm1, %v1760_v50, %v1602_v54  ;;  %v1578_v53 = vmul.f32 %v3230_v25, %v3252_v57 }
 0x328   :  { %v2005_v46 = vpop.eup %2004  ;;  %v1579_v4 = vmul.f32 %v1516_v58, %v3257_v38  ;;  %v3333_v26 = vmul.f32 %v1517_v52, %v3260_v5  ;;  %v3336_v54 = vmul.f32 %v1518_v56, %v3263_v48  ;;  %v3339_v21 = vmul.f32 %v1519_v27, %v3266_v43 }
 0x329   :  { %v1425_v22 = vadd.f32 1.0, %v2005_v46  ;;  %v1611_v39 = vmul.f32 %v1516_v58, %v3272_v11  ;;  %v3345_v50 = vmul.f32 %v1517_v52, %v3275_v55  ;;  %v3348_v46 = vmul.f32 %v1518_v56, %v3278_v42 }
 0x32a   :  { %v1718_v49 = vrot.slane %v1579_v4, 7  ;;  %v1454_v58 = vrot.slane %v3243_v0, 6  ;;  %v1460_v56 = vrot.slane %v3254_v45, 6  ;;  %v1035_v4 = vrot.slane %v3241_v35, 2 }
 0x32b   :  { %2008 = vrcp.f32 %v1425_v22  ;;  %3892 = vst [vmem:[#allocation3_spill] sm:$0xff] %v3345_v50  ;;  %3893 = vst [vmem:[#allocation11_spill] sm:$0xff] %v3348_v46  ;;  %v3351_v22 = vmul.f32 %v1519_v27, %v3281_v3  ;;  %v1774_v14 = vrot.slane %v1611_v39, 7  ;;  %v1034_v27 = vrot.slane %v3241_v35, 1 }
 0x32c   :  { %v3359_v52 = vsel %vm424_vm1, %v1718_v49, %v1578_v53  ;;  %v1036_v39 = vrot.slane %v3241_v35, 3  ;;  %v1037_v30 = vrot.slane %v3241_v35, 4  ;;  %v1038_v8 = vrot.slane %v3241_v35, 5 }
 0x32d   :  { %3894 = vst [vmem:[#allocation28_spill] sm:$0xff] %v3351_v22  ;;  %v3365_v9 = vsel %vm424_vm1, %v1774_v14, %v1610_v2  ;;  %v1039_v0 = vrot.slane %v3241_v35, 6  ;;  %v1040_v49 = vrot.slane %v3241_v35, 7  ;;  %v1098_v45 = vmul.f32 %v1034_v27, %v2944_v17 }
 0x32e   :  { %3895 = vst [vmem:[#allocation12_spill] sm:$0xff] %v3365_v9  ;;  %v1099_v53 = vmul.f32 %v1035_v4, %v2947_v19  ;;  %v1100_v36 = vmul.f32 %v1036_v39, %v2950_v24  ;;  %v1101_v14 = vmul.f32 %v1037_v30, %v2953_v16  ;;  %v1102_v2 = vmul.f32 %v1038_v8, %v2956_v63 }
 0x32f   :  { %v1103_v22 = vmul.f32 %v1039_v0, %v2959_v23  ;;  %v1104_v46 = vmul.f32 %v1040_v49, %v2962_v29  ;;  %v1129_v50 = vmul.f32 %v3241_v35, %v2965_v34  ;;  %v1130_v9 = vmul.f32 %v1034_v27, %v2968_v61 }
 0x330   :  { %v1131_v19 = vmul.f32 %v1035_v4, %v2971_v32  ;;  %v1132_v24 = vmul.f32 %v1036_v39, %v2974_v18  ;;  %v1133_v16 = vmul.f32 %v1037_v30, %v2977_v41  ;;  %v1134_v23 = vmul.f32 %v1038_v8, %v2980_v6  ;;  %v3397_v8 = vpop.permute.xlu1 %1496 }
 0x331   :  { %v2007_v13 = vpop.eup %2006  ;;  %v1135_v29 = vmul.f32 %v1039_v0, %v3868_v44  ;;  %v1136_v34 = vmul.f32 %v1040_v49, %v2986_v31  ;;  %v1243_v35 = vrot.slane %v1098_v45, 7  ;;  %v1245_v27 = vrot.slane %v1099_v53, 6 }
 0x332   :  { %v1452_v7 = vrot.slane %v2007_v13, 7  ;;  %v1251_v32 = vrot.slane %v1102_v2, 3  ;;  %v1253_v4 = vrot.slane %v1103_v22, 2  ;;  %v1255_v18 = vrot.slane %v1104_v46, 1 }
 0x333   :  { %v1244_v30 = vsel %vm424_vm1, %v1243_v35, %v3249_v51  ;;  %v1301_v6 = vrot.slane %v1131_v19, 6  ;;  %v1305_v39 = vrot.slane %v1133_v16, 4  ;;  %v1307_v0 = vrot.slane %v1134_v23, 3 }
 0x334   :  { %v1453_v17 = vsel %vm424_vm1, %v1452_v7, %v3237_v62  ;;  %v1247_v62 = vrot.slane %v1100_v36, 5  ;;  %v1249_v7 = vrot.slane %v1101_v14, 4  ;;  %v1246_v44 = vsel %vm427_vm2, %v1245_v27, %v1244_v30 }
 0x335   :  { %v2009_v13 = vpop.eup %2008  ;;  %v3388_v63 = vsel %vm427_vm2, %v1454_v58, %v1453_v17  ;;  %v1299_v58 = vrot.slane %v1130_v9, 7  ;;  %v1303_v36 = vrot.slane %v1132_v24, 5  ;;  %v1311_v9 = vrot.slane %v1136_v34, 1 }
 0x336   :  { %v1458_v61 = vrot.slane %v2009_v13, 7  ;;  %v1248_v22 = vsel %vm430_vm3, %v1247_v62, %v1246_v44  ;;  %v1523_v45 = vrot.slane %v3397_v8, 1  ;;  %v1524_v14 = vrot.slane %v3397_v8, 2 }
 0x337   :  { %v1300_v46 = vsel %vm424_vm1, %v1299_v58, %v1129_v50  ;;  %v1250_v49 = vsel %vm433_vm4, %v1249_v7, %v1248_v22  ;;  %v1525_v2 = vrot.slane %v3397_v8, 3  ;;  %v1526_v19 = vrot.slane %v3397_v8, 4 }
 0x338   :  { %v1459_v41 = vsel %vm424_vm1, %v1458_v61, %v3245_v40  ;;  %v1309_v40 = vrot.slane %v1135_v29, 2  ;;  %v1302_v51 = vsel %vm427_vm2, %v1301_v6, %v1300_v46  ;;  %v1586_v29 = vmul.f32 %v3397_v8, %v3252_v57 }
 0x339   :  { %v3400_v31 = vsel %vm427_vm2, %v1460_v56, %v1459_v41  ;;  %v1252_v56 = vsel %vm436_vm5, %v1251_v32, %v1250_v49  ;;  %v1304_v53 = vsel %vm430_vm3, %v1303_v36, %v1302_v51  ;;  %v1587_v35 = vmul.f32 %v1523_v45, %v3257_v38 }
 0x33a   :  { %v1254_v17 = vsel %vm439_vm6, %v1253_v4, %v1252_v56  ;;  %v1306_v50 = vsel %vm433_vm4, %v1305_v39, %v1304_v53  ;;  %v3425_v27 = vmul.f32 %v1524_v14, %v3260_v5  ;;  %v3429_v32 = vmul.f32 %v1525_v2, %v3263_v48 }
 0x33b   :  { %v1256_v16 = vsel %vm442_vm7, %v1255_v18, %v1254_v17  ;;  %v1308_v13 = vsel %vm436_vm5, %v1307_v0, %v1306_v50  ;;  %v3432_v4 = vmul.f32 %v1526_v19, %v3266_v43  ;;  %v1618_v41 = vmul.f32 %v3397_v8, %v3269_v20  ;;  %v3902_v50 = vld [vmem:[#allocation15_spill] sm:$0xff] }
 0x33c   :  { %v1310_v34 = vsel %vm439_vm6, %v1309_v40, %v1308_v13  ;;  %v1342_v61 = vsel %vm460_vm8, %v1256_v16, 0.0  ;;  %v1619_v30 = vmul.f32 %v1523_v45, %v3272_v11  ;;  %v3439_v58 = vmul.f32 %v1524_v14, %v3275_v55  ;;  %v3900_v14 = vld [vmem:[#allocation14_spill] sm:$0xff] }
 0x33d   :  { %v1312_v62 = vsel %vm442_vm7, %v1311_v9, %v1310_v34  ;;  %v1343_v7 = vrot.slane %v1342_v61, 4  ;;  %v3442_v36 = vmul.f32 %v1525_v2, %v3278_v42  ;;  %v3445_v39 = vmul.f32 %v1526_v19, %v3281_v3  ;;  %v3901_v2 = vld [vmem:[#allocation31_spill] sm:$0xff]  ;;  %v3903_v19 = vld [vmem:[#allocation32_spill] sm:$0xff] }
 0x33e   :  { %v1370_v18 = vsel %vm460_vm8, %v1312_v62, 0.0  ;;  %3896 = vst [vmem:[#allocation29_spill] sm:$0xff] %v3439_v58  ;;  %v1732_v22 = vrot.slane %v1587_v35, 7  ;;  %v1788_v40 = vrot.slane %v1619_v30, 7  ;;  %v792_v17 = vmul.f32 %v3901_v2, %v3900_v14  ;;  %v3905_v35 = vld [vmem:[#allocation33_spill] sm:$0xff]  ;;  %v3910_v14 = vld [vmem:[#allocation24_spill] sm:$0xff] }
 0x33f   :  { %v1344_v6 = vadd.f32 %v1343_v7, %v1342_v61  ;;  %v1371_v44 = vrot.slane %v1370_v18, 4  ;;  %3897 = vst [vmem:[#allocation13_spill] sm:$0xff] %v3442_v36  ;;  %3898 = vst [vmem:[#allocation30_spill] sm:$0xff] %v3445_v39  ;;  %v793_v16 = vmul.f32 %v3903_v19, %v3902_v50  ;;  %v3904_v61 = vld [vmem:[#allocation16_spill] sm:$0xff]  ;;  %v3907_v30 = vld [vmem:[#allocation9_spill] sm:$0xff] }
 0x340   :  { %v3452_v56 = vsel %vm424_vm1, %v1732_v22, %v1586_v29  ;;  %v3455_v53 = vsel %vm424_vm1, %v1788_v40, %v1618_v41  ;;  %v794_v62 = vmul.f32 %v3905_v35, %v3904_v61  ;;  %v3906_v7 = vld [vmem:[#allocation8_spill] sm:$0xff]  ;;  %v801_v29 = vmul.f32 %v3903_v19, %v3907_v30  ;;  %v3909_v22 = vld [vmem:[#allocation23_spill] sm:$0xff] }
 0x341   :  { %v1345_v49 = vrot.slane %v1344_v6, 2  ;;  %v1372_v51 = vadd.f32 %v1371_v44, %v1370_v18  ;;  %3899 = vst [vmem:[#allocation4_spill] sm:$0xff] %v3455_v53  ;;  %v800_v18 = vmul.f32 %v3901_v2, %v3906_v7  ;;  %v3908_v44 = vld [vmem:[#allocation10_spill] sm:$0xff]  ;;  %v808_v40 = vadd.f32 %v792_v17, %v3909_v22 }
 0x342   :  { %v802_v41 = vmul.f32 %v3905_v35, %v3908_v44  ;;  %v809_v45 = vadd.f32 %v793_v16, %v3910_v14  ;;  %v817_v61 = vadd.f32 %v801_v29, %v3910_v14 }
 0x343   :  { %v1346_v13 = vadd.f32 %v1345_v49, %v1344_v6  ;;  %v1373_v34 = vrot.slane %v1372_v51, 2  ;;  %v3911_v6 = vld [vmem:[#allocation25_spill] sm:$0xff]  ;;  %v816_v0 = vadd.f32 %v800_v18, %v3909_v22  ;;  %v904_v7 = vadd.f32 3.0, %v808_v40 }
 0x344   :  { %v810_v49 = vadd.f32 %v794_v62, %v3911_v6  ;;  %v818_v2 = vadd.f32 %v802_v41, %v3911_v6  ;;  %v905_v46 = vadd.f32 3.0, %v809_v45  ;;  %v913_v44 = vadd.f32 3.0, %v817_v61 }
 0x345   :  { %v1347_v9 = vrot.slane %v1346_v13, 1  ;;  %v1374_v50 = vadd.f32 %v1373_v34, %v1372_v51  ;;  %v912_v35 = vadd.f32 3.0, %v816_v0  ;;  %v920_v24 = vmax.f32 %v904_v7, 0.0 }
 0x346   :  { %v906_v23 = vadd.f32 3.0, %v810_v49  ;;  %v914_v17 = vadd.f32 3.0, %v818_v2  ;;  %v921_v16 = vmax.f32 %v905_v46, 0.0  ;;  %v3912_v51 = vrot.slane %v3866_v28, 3  ;;  %v3914_v28 = vld [vmem:[#allocation18_spill] sm:$0xff] }
 0x347   :  { %v1348_v19 = vadd.f32 %v1347_v9, %v1346_v13  ;;  %v1375_v30 = vrot.slane %v1374_v50, 1  ;;  %v928_v18 = vmax.f32 %v912_v35, 0.0  ;;  %v929_v22 = vmax.f32 %v913_v44, 0.0 }
 0x348   :  { %v922_v62 = vmax.f32 %v906_v23, 0.0  ;;  %v930_v29 = vmax.f32 %v914_v17, 0.0  ;;  %v936_v14 = vmin.f32 %v920_v24, 6.0  ;;  %v937_v41 = vmin.f32 %v921_v16, 6.0 }
 0x349   :  { %v1376_v39 = vadd.f32 %v1375_v30, %v1374_v50  ;;  %v1391_v34 = vadd.f32 %v3912_v51, %v1348_v19  ;;  %v3913_v6 = vmov %v3912_v51  ;;  %v944_v58 = vmin.f32 %v928_v18, 6.0 }
 0x34a   :  { %v938_v36 = vmin.f32 %v922_v62, 6.0  ;;  %v945_v53 = vmin.f32 %v929_v22, 6.0  ;;  %v946_v12 = vmin.f32 %v930_v29, 6.0  ;;  %v952_v7 = vmul.f32 0.16666667, %v936_v14 }
 0x34b   :  { %v1395_v9 = vadd.f32 %v3913_v6, %v1376_v39  ;;  %v1968_v13 = vmul.f32 -1.442695, %v1391_v34  ;;  %v953_v46 = vmul.f32 0.16666667, %v937_v41  ;;  %v960_v19 = vmul.f32 0.16666667, %v944_v58 }
 0x34c   :  { %v954_v30 = vmul.f32 0.16666667, %v938_v36  ;;  %v961_v23 = vmul.f32 0.16666667, %v945_v53  ;;  %v962_v35 = vmul.f32 0.16666667, %v946_v12  ;;  %v968_v44 = vmul.f32 %v952_v7, %v808_v40 }
 0x34d   :  { %2010 = vpow2.f32 %v1968_v13  ;;  %v1972_v50 = vmul.f32 -1.442695, %v1395_v9  ;;  %v969_v17 = vmul.f32 %v953_v46, %v809_v45  ;;  %v976_v16 = vmul.f32 %v960_v19, %v816_v0 }
 0x34e   :  { %v970_v24 = vmul.f32 %v954_v30, %v810_v49  ;;  %v1507_v39 = vrot.slane %v3914_v28, 6  ;;  %v977_v51 = vmul.f32 %v961_v23, %v817_v61  ;;  %v978_v34 = vmul.f32 %v962_v35, %v818_v2 }
 0x34f   :  { %2012 = vpow2.f32 %v1972_v50  ;;  %v1508_v62 = vrot.slane %v3914_v28, 7  ;;  %v1515_v18 = vrot.slane %v3205_v37, 7  ;;  %v1522_v22 = vrot.slane %v3230_v25, 7 }
 0x350   :  { %v1529_v36 = vrot.slane %v3397_v8, 7  ;;  %v1562_v12 = vmul.f32 %v3914_v28, %v3252_v57  ;;  %v3915_v58 = vrot.slane %v3914_v28, 1  ;;  %v3916_v0 = vrot.slane %v3914_v28, 2 }
 0x351   :  { %v3917_v40 = vrot.slane %v3914_v28, 3  ;;  %v3918_v61 = vrot.slane %v3914_v28, 4  ;;  %v3919_v29 = vrot.slane %v3914_v28, 5  ;;  %v1568_v57 = vmul.f32 %v1507_v39, %v969_v17 }
 0x352   :  { %v1563_v45 = vmul.f32 %v3915_v58, %v3257_v38  ;;  %v1564_v53 = vmul.f32 %v3916_v0, %v3260_v5  ;;  %v3500_v41 = vmul.f32 %v1508_v62, %v970_v24  ;;  %v3920_v38 = vrot.slane %v3205_v37, 5 }
 0x353   :  { %v1565_v49 = vmul.f32 %v3917_v40, %v3263_v48  ;;  %v1566_v2 = vmul.f32 %v3918_v61, %v3266_v43  ;;  %v1567_v14 = vmul.f32 %v3919_v29, %v968_v44  ;;  %v3921_v9 = vrot.slane %v3205_v37, 6 }
 0x354   :  { %v1575_v6 = vmul.f32 %v3920_v38, %v968_v44  ;;  %v1577_v13 = vmul.f32 %v1515_v18, %v970_v24  ;;  %v3922_v7 = vrot.slane %v3230_v25, 5  ;;  %v3923_v46 = vrot.slane %v3230_v25, 6 }
 0x355   :  { %v1576_v5 = vmul.f32 %v3921_v9, %v969_v17  ;;  %v3510_v43 = vmul.f32 %v1522_v22, %v970_v24  ;;  %v3924_v30 = vrot.slane %v3397_v8, 5  ;;  %v3925_v23 = vrot.slane %v3397_v8, 6 }
 0x356   :  { %v1583_v48 = vmul.f32 %v3922_v7, %v968_v44  ;;  %v1584_v50 = vmul.f32 %v3923_v46, %v969_v17  ;;  %v3520_v58 = vmul.f32 %v1529_v36, %v970_v24  ;;  %v3524_v0 = vmul.f32 %v3914_v28, %v3269_v20 }
 0x357   :  { %v3514_v19 = vmul.f32 %v3924_v30, %v968_v44  ;;  %v3518_v35 = vmul.f32 %v3925_v23, %v969_v17  ;;  %v3926_v40 = vrot.slane %v3914_v28, 1  ;;  %v3927_v29 = vrot.slane %v3914_v28, 2  ;;  %v2011_v9 = vpop.eup %2010 }
 0x358   :  { %v3928_v17 = vrot.slane %v3914_v28, 3  ;;  %v3929_v24 = vrot.slane %v3914_v28, 4  ;;  %v3930_v7 = vrot.slane %v3914_v28, 5  ;;  %v3550_v46 = vmul.f32 %v1507_v39, %v977_v51 }
 0x359   :  { %v3529_v61 = vmul.f32 %v3926_v40, %v3272_v11  ;;  %v3534_v44 = vmul.f32 %v3927_v29, %v3275_v55  ;;  %v3552_v30 = vmul.f32 %v1508_v62, %v978_v34  ;;  %v3931_v55 = vrot.slane %v3205_v37, 5 }
 0x35a   :  { %v3539_v38 = vmul.f32 %v3928_v17, %v3278_v42  ;;  %v3544_v20 = vmul.f32 %v3929_v24, %v3281_v3  ;;  %v3548_v11 = vmul.f32 %v3930_v7, %v976_v16  ;;  %v1423_v42 = vadd.f32 1.0, %v2011_v9  ;;  %v2013_v24 = vpop.eup %2012 }
 0x35b   :  { %v3556_v23 = vmul.f32 %v3931_v55, %v976_v16  ;;  %v3932_v40 = vrot.slane %v3205_v37, 6  ;;  %v3562_v3 = vmul.f32 %v1515_v18, %v978_v34  ;;  %v3935_v17 = vrot.slane %v3230_v25, 5 }
 0x35c   :  { %v3937_v39 = vrot.slane %v3230_v25, 6  ;;  %v3572_v7 = vmul.f32 %v1522_v22, %v978_v34  ;;  %v3939_v55 = vrot.slane %v3397_v8, 5  ;;  %v3940_v37 = vrot.slane %v3397_v8, 6 }
 0x35d   :  { %v3560_v29 = vmul.f32 %v3932_v40, %v977_v51  ;;  %3934 = vst [vmem:[#allocation5_spill] sm:$0xff] %v3562_v3  ;;  %v3566_v28 = vmul.f32 %v3935_v17, %v976_v16  ;;  %v1427_v18 = vadd.f32 1.0, %v2013_v24  ;;  %2014 = vrcp.f32 %v1423_v42 }
 0x35e   :  { %v3570_v62 = vmul.f32 %v3937_v39, %v977_v51  ;;  %3938 = vst [vmem:[#allocation7_spill] sm:$0xff] %v3572_v7  ;;  %v3576_v9 = vmul.f32 %v3939_v55, %v976_v16  ;;  %v3580_v40 = vmul.f32 %v3940_v37, %v977_v51  ;;  %v3582_v3 = vmul.f32 %v1529_v36, %v978_v34 }
 0x35f   :  { %3933 = vst [vmem:[#allocation27_spill] sm:$0xff] %v3560_v29  ;;  %3936 = vst [vmem:[#allocation6_spill] sm:$0xff] %v3566_v28  ;;  %v1690_v17 = vrot.slane %v1563_v45, 7  ;;  %v1692_v28 = vrot.slane %v1564_v53, 6  ;;  %v1694_v29 = vrot.slane %v1565_v49, 5  ;;  %v1696_v25 = vrot.slane %v1566_v2, 4 }
 0x360   :  { %v1698_v39 = vrot.slane %v1567_v14, 3  ;;  %2016 = vrcp.f32 %v1427_v18  ;;  %v1700_v7 = vrot.slane %v1568_v57, 2  ;;  %v1702_v16 = vrot.slane %v3500_v41, 1 }
 0x361   :  { %v1691_v22 = vsel %vm424_vm1, %v1690_v17, %v1562_v12  ;;  %v3941_v8 = vrot.slane %v3293_v47, 6  ;;  %v1710_v34 = vrot.slane %v3301_v33, 4  ;;  %v1712_v36 = vrot.slane %v1575_v6, 3 }
 0x362   :  { %v1693_v55 = vsel %vm427_vm2, %v1692_v28, %v1691_v22  ;;  %v3942_v53 = vrot.slane %v3296_v60, 5  ;;  %v1714_v12 = vrot.slane %v1576_v5, 2  ;;  %v1716_v2 = vrot.slane %v1577_v13, 1 }
 0x363   :  { %v1707_v51 = vsel %vm427_vm2, %v3941_v8, %v3317_v1  ;;  %v1695_v45 = vsel %vm430_vm3, %v1694_v29, %v1693_v55  ;;  %v3943_v47 = vrot.slane %v3333_v26, 6  ;;  %v1724_v33 = vrot.slane %v3339_v21, 4 }
 0x364   :  { %v1709_v49 = vsel %vm430_vm3, %v3942_v53, %v1707_v51  ;;  %v1697_v14 = vsel %vm433_vm4, %v1696_v25, %v1695_v45  ;;  %v3944_v60 = vrot.slane %v3336_v54, 5  ;;  %v1726_v13 = vrot.slane %v1583_v48, 3 }
 0x365   :  { %v1711_v57 = vsel %vm433_vm4, %v1710_v34, %v1709_v49  ;;  %v1721_v1 = vsel %vm427_vm2, %v3943_v47, %v3359_v52  ;;  %v1699_v41 = vsel %vm436_vm5, %v1698_v39, %v1697_v14  ;;  %v1728_v26 = vrot.slane %v1584_v50, 2 }
 0x366   :  { %v1713_v6 = vsel %vm436_vm5, %v1712_v36, %v1711_v57  ;;  %v1723_v5 = vsel %vm430_vm3, %v3944_v60, %v1721_v1  ;;  %v1701_v42 = vsel %vm439_vm6, %v1700_v7, %v1699_v41  ;;  %v1730_v54 = vrot.slane %v3510_v43, 1  ;;  %v3950_v14 = vld [vmem:[#allocation27_spill] sm:$0xff]  ;;  %v3952_v1 = vld [vmem:[#allocation12_spill] sm:$0xff] }
 0x367   :  { %v1715_v29 = vsel %vm439_vm6, %v1714_v12, %v1713_v6  ;;  %v1725_v28 = vsel %vm433_vm4, %v1724_v33, %v1723_v5  ;;  %v3612_v52 = vsel %vm442_vm7, %v1702_v16, %v1701_v42  ;;  %v3945_v48 = vrot.slane %v3425_v27, 6  ;;  %v2015_v17 = vpop.eup %2014  ;;  %v3953_v33 = vld [vmem:[#allocation3_spill] sm:$0xff] }
 0x368   :  { %v3615_v21 = vsel %vm442_vm7, %v1716_v2, %v1715_v29  ;;  %v1727_v24 = vsel %vm436_vm5, %v1726_v13, %v1725_v28  ;;  %v1738_v18 = vrot.slane %v3432_v4, 4  ;;  %v1740_v50 = vrot.slane %v3514_v19, 3  ;;  %v3955_v13 = vld [vmem:[#allocation11_spill] sm:$0xff]  ;;  %v3957_v29 = vld [vmem:[#allocation28_spill] sm:$0xff] }
 0x369   :  { %v1729_v37 = vsel %vm439_vm6, %v1728_v26, %v1727_v24  ;;  %v1735_v7 = vsel %vm427_vm2, %v3945_v48, %v3452_v56  ;;  %v3946_v39 = vrot.slane %v3429_v32, 5  ;;  %v1742_v43 = vrot.slane %v3518_v35, 2 }
 0x36a   :  { %v1731_v25 = vsel %vm442_vm7, %v1730_v54, %v1729_v37  ;;  %v1744_v16 = vrot.slane %v3520_v58, 1  ;;  %v1456_v55 = vrot.slane %v2015_v17, 5  ;;  %v1746_v56 = vrot.slane %v3529_v61, 7  ;;  %v2017_v8 = vpop.eup %2016  ;;  %v3958_v54 = vld [vmem:[#allocation6_spill] sm:$0xff] }
 0x36b   :  { %v1737_v22 = vsel %vm430_vm3, %v3946_v39, %v1735_v7  ;;  %v1748_v4 = vrot.slane %v3534_v44, 6  ;;  %v1750_v51 = vrot.slane %v3539_v38, 5  ;;  %v1752_v32 = vrot.slane %v3544_v20, 4  ;;  %v3960_v39 = vld [vmem:[#allocation4_spill] sm:$0xff] }
 0x36c   :  { %v1739_v27 = vsel %vm433_vm4, %v1738_v18, %v1737_v22  ;;  %v1754_v34 = vrot.slane %v3548_v11, 3  ;;  %v1457_v35 = vsel %vm430_vm3, %v1456_v55, %v3388_v63  ;;  %v1462_v58 = vrot.slane %v2017_v8, 5  ;;  %v3961_v22 = vld [vmem:[#allocation29_spill] sm:$0xff]  ;;  %v3965_v8 = vld [vmem:[#allocation30_spill] sm:$0xff] }
 0x36d   :  { %v1741_v19 = vsel %vm436_vm5, %v1740_v50, %v1739_v27  ;;  %v1747_v61 = vsel %vm424_vm1, %v1746_v56, %v3524_v0  ;;  %1466 = vst.msk [vmem:[%s3742_s10] sm:$0xf] %vm115_vm0, %v1457_v35  ;;  %v1756_v20 = vrot.slane %v3550_v46, 2  ;;  %v1758_v11 = vrot.slane %v3552_v30, 1  ;;  %v3948_v30 = vld [vmem:[#allocation26_spill] sm:$0xff]  ;;  %v3959_v50 = vld [vmem:[#allocation7_spill] sm:$0xff] }
 0x36e   :  { %v1743_v36 = vsel %vm439_vm6, %v1742_v43, %v1741_v19  ;;  %v1749_v38 = vsel %vm427_vm2, %v1748_v4, %v1747_v61  ;;  %v1463_v63 = vsel %vm430_vm3, %v1462_v58, %v3400_v31  ;;  %v3947_v0 = vrot.slane %v3305_v15, 6  ;;  %v3963_v27 = vld [vmem:[#allocation13_spill] sm:$0xff] }
 0x36f   :  { %v1745_v44 = vsel %vm442_vm7, %v1744_v16, %v1743_v36  ;;  %v1751_v45 = vsel %vm430_vm3, %v1750_v51, %v1749_v38  ;;  %v1766_v49 = vrot.slane %v3311_v59, 4  ;;  %1467 = vst.msk [vmem:[%s3742_s10 + $0x4] sm:$0xf] %vm115_vm0, %v1463_v63  ;;  %v3949_v12 = vrot.slane %v3948_v30, 5  ;;  %v3951_v59 = vld [vmem:[#allocation5_spill] sm:$0xff] }
 0x370   :  { %v1763_v53 = vsel %vm427_vm2, %v3947_v0, %v3323_v10  ;;  %v1753_v46 = vsel %vm433_vm4, %v1752_v32, %v1751_v45  ;;  %v1768_v2 = vrot.slane %v3556_v23, 3  ;;  %v1770_v57 = vrot.slane %v3950_v14, 2 }
 0x371   :  { %v1765_v31 = vsel %vm430_vm3, %v3949_v12, %v1763_v53  ;;  %v1755_v15 = vsel %vm436_vm5, %v1754_v34, %v1753_v46  ;;  %v1772_v47 = vrot.slane %v3951_v59, 1  ;;  %v3954_v41 = vrot.slane %v3953_v33, 6 }
 0x372   :  { %v1767_v10 = vsel %vm433_vm4, %v1766_v49, %v1765_v31  ;;  %v1757_v60 = vsel %vm439_vm6, %v1756_v20, %v1755_v15  ;;  %v3956_v42 = vrot.slane %v3955_v13, 5  ;;  %v1780_v28 = vrot.slane %v3957_v29, 4 }
 0x373   :  { %v1777_v6 = vsel %vm427_vm2, %v3954_v41, %v3952_v1  ;;  %v1769_v5 = vsel %vm436_vm5, %v1768_v2, %v1767_v10  ;;  %v1759_v26 = vsel %vm442_vm7, %v1758_v11, %v1757_v60  ;;  %v1782_v37 = vrot.slane %v3958_v54, 3 }
 0x374   :  { %v1779_v23 = vsel %vm430_vm3, %v3956_v42, %v1777_v6  ;;  %v1771_v24 = vsel %vm439_vm6, %v1770_v57, %v1769_v5  ;;  %v1784_v48 = vrot.slane %v3570_v62, 2  ;;  %v1786_v17 = vrot.slane %v3959_v50, 1 }
 0x375   :  { %v1773_v7 = vsel %vm442_vm7, %v1772_v47, %v1771_v24  ;;  %v1781_v18 = vsel %vm433_vm4, %v1780_v28, %v1779_v23  ;;  %v3962_v43 = vrot.slane %v3961_v22, 6  ;;  %v3964_v56 = vrot.slane %v3963_v27, 5 }
 0x376   :  { %v1783_v55 = vsel %vm436_vm5, %v1782_v37, %v1781_v18  ;;  %v1794_v19 = vrot.slane %v3965_v8, 4  ;;  %v1796_v62 = vrot.slane %v3576_v9, 3  ;;  %v1798_v32 = vrot.slane %v3580_v40, 2 }
 0x377   :  { %v1791_v16 = vsel %vm427_vm2, %v3962_v43, %v3960_v39  ;;  %v1785_v51 = vsel %vm439_vm6, %v1784_v48, %v1783_v55  ;;  %v1800_v34 = vrot.slane %v3582_v3, 1  ;;  %v1810_v35 = vsel %vm460_vm8, %v3612_v52, 0.0 }
 0x378   :  { %v1793_v4 = vsel %vm430_vm3, %v3964_v56, %v1791_v16  ;;  %v1787_v58 = vsel %vm442_vm7, %v1786_v17, %v1785_v51  ;;  %v1811_v61 = vrot.slane %v1810_v35, 4  ;;  %v1817_v38 = vsel %vm460_vm8, %v3615_v21, 0.0 }
 0x379   :  { %v1795_v36 = vsel %vm433_vm4, %v1794_v19, %v1793_v4  ;;  %v1818_v9 = vrot.slane %v1817_v38, 4  ;;  %v1824_v11 = vsel %vm460_vm8, %v1731_v25, 0.0  ;;  %v1831_v40 = vsel %vm460_vm8, %v1745_v44, 0.0 }
 0x37a   :  { %v1797_v20 = vsel %vm436_vm5, %v1796_v62, %v1795_v36  ;;  %v1812_v63 = vadd.f32 %v1811_v61, %v1810_v35  ;;  %v1825_v45 = vrot.slane %v1824_v11, 4  ;;  %v1832_v52 = vrot.slane %v1831_v40, 4 }
 0x37b   :  { %v1799_v3 = vsel %vm439_vm6, %v1798_v32, %v1797_v20  ;;  %v1819_v53 = vadd.f32 %v1818_v9, %v1817_v38  ;;  %v1838_v49 = vsel %vm460_vm8, %v1759_v26, 0.0  ;;  %v1845_v46 = vsel %vm460_vm8, %v1773_v7, 0.0  ;;  %v1869_v26 = vpop.permute.xlu1 %1868 }
 0x37c   :  { %v1801_v0 = vsel %vm442_vm7, %v1800_v34, %v1799_v3  ;;  %v1813_v21 = vrot.slane %v1812_v63, 2  ;;  %v1826_v30 = vadd.f32 %v1825_v45, %v1824_v11  ;;  %v1833_v12 = vadd.f32 %v1832_v52, %v1831_v40 }
 0x37d   :  { %v1839_v31 = vrot.slane %v1838_v49, 4  ;;  %v1820_v2 = vrot.slane %v1819_v53, 2  ;;  %v1846_v25 = vrot.slane %v1845_v46, 4  ;;  %v1852_v44 = vsel %vm460_vm8, %v1787_v58, 0.0 }
 0x37e   :  { %v1859_v14 = vsel %vm460_vm8, %v1801_v0, 0.0  ;;  %v1814_v57 = vadd.f32 %v1813_v21, %v1812_v63  ;;  %v1827_v15 = vrot.slane %v1826_v30, 2  ;;  %v1834_v10 = vrot.slane %v1833_v12, 2 }
 0x37f   :  { %v1840_v59 = vadd.f32 %v1839_v31, %v1838_v49  ;;  %v1821_v47 = vadd.f32 %v1820_v2, %v1819_v53  ;;  %v1847_v1 = vadd.f32 %v1846_v25, %v1845_v46  ;;  %v1853_v33 = vrot.slane %v1852_v44, 4 }
 0x380   :  { %v1860_v41 = vrot.slane %v1859_v14, 4  ;;  %v1815_v6 = vrot.slane %v1814_v57, 1  ;;  %v1828_v60 = vadd.f32 %v1827_v15, %v1826_v30  ;;  %v1835_v5 = vadd.f32 %v1834_v10, %v1833_v12 }
 0x381   :  { %v1841_v13 = vrot.slane %v1840_v59, 2  ;;  %v1822_v42 = vrot.slane %v1821_v47, 1  ;;  %v1848_v23 = vrot.slane %v1847_v1, 2  ;;  %v1854_v29 = vadd.f32 %v1853_v33, %v1852_v44 }
 0x382   :  { %v1861_v28 = vadd.f32 %v1860_v41, %v1859_v14  ;;  %v1816_v24 = vadd.f32 %v1815_v6, %v1814_v57  ;;  %v1829_v54 = vrot.slane %v1828_v60, 1  ;;  %v1836_v37 = vrot.slane %v1835_v5, 1 }
 0x383   :  { %v1842_v48 = vadd.f32 %v1841_v13, %v1840_v59  ;;  %v1823_v7 = vadd.f32 %v1822_v42, %v1821_v47  ;;  %v1849_v18 = vadd.f32 %v1848_v23, %v1847_v1  ;;  %v1855_v50 = vrot.slane %v1854_v29, 2 }
 0x384   :  { %v1862_v17 = vrot.slane %v1861_v28, 2  ;;  %v1830_v39 = vadd.f32 %v1829_v54, %v1828_v60  ;;  %v1837_v22 = vadd.f32 %v1836_v37, %v1835_v5  ;;  %v1870_v16 = vrot.slane %v1869_v26, 1 }
 0x385   :  { %v1843_v43 = vrot.slane %v1842_v48, 1  ;;  %v1850_v55 = vrot.slane %v1849_v18, 1  ;;  %v1856_v27 = vadd.f32 %v1855_v50, %v1854_v29  ;;  %v1871_v4 = vrot.slane %v1869_v26, 2 }
 0x386   :  { %v1863_v56 = vadd.f32 %v1862_v17, %v1861_v28  ;;  %v1872_v19 = vrot.slane %v1869_v26, 3  ;;  %v1877_v62 = vadd.f32 %v1869_v26, %v1816_v24  ;;  %v1878_v51 = vadd.f32 %v1870_v16, %v1823_v7 }
 0x387   :  { %v1844_v8 = vadd.f32 %v1843_v43, %v1842_v48  ;;  %v1851_v32 = vadd.f32 %v1850_v55, %v1849_v18  ;;  %v1857_v34 = vrot.slane %v1856_v27, 1  ;;  %v1879_v58 = vadd.f32 %v1871_v4, %v1830_v39 }
 0x388   :  { %v1864_v35 = vrot.slane %v1863_v56, 1  ;;  %v1880_v36 = vadd.f32 %v1872_v19, %v1837_v22  ;;  %v1973_v38 = vmul.f32 -1.442695, %v1877_v62  ;;  %v1974_v20 = vmul.f32 -1.442695, %v1878_v51 }
 0x389   :  { %v1881_v61 = vadd.f32 %v1869_v26, %v1844_v8  ;;  %v1858_v9 = vadd.f32 %v1857_v34, %v1856_v27  ;;  %v1882_v40 = vadd.f32 %v1870_v16, %v1851_v32  ;;  %v1975_v3 = vmul.f32 -1.442695, %v1879_v58 }
 0x38a   :  { %v1865_v11 = vadd.f32 %v1864_v35, %v1863_v56  ;;  %2018 = vpow2.f32 %v1973_v38  ;;  %v1976_v63 = vmul.f32 -1.442695, %v1880_v36 }
 0x38b   :  { %v1977_v45 = vmul.f32 -1.442695, %v1881_v61  ;;  %v1883_v52 = vadd.f32 %v1871_v4, %v1858_v9  ;;  %2020 = vpow2.f32 %v1974_v20  ;;  %v1978_v53 = vmul.f32 -1.442695, %v1882_v40 }
 0x38c   :  { %v1884_v0 = vadd.f32 %v1872_v19, %v1865_v11  ;;  %2022 = vpow2.f32 %v1975_v3 }
 0x38d   :  { %2024 = vpow2.f32 %v1976_v63  ;;  %v1979_v49 = vmul.f32 -1.442695, %v1883_v52 }
 0x38e   :  { %v1980_v46 = vmul.f32 -1.442695, %v1884_v0  ;;  %2026 = vpow2.f32 %v1977_v45 }
 0x38f   :  { %2028 = vpow2.f32 %v1978_v53 }
 0x390   :  { %2030 = vpow2.f32 %v1979_v49 }
 0x391   :  { %2032 = vpow2.f32 %v1980_v46 }
 0x394   :  { %v2019_v21 = vpop.eup %2018 }
 0x395   :  { %v2021_v30 = vpop.eup %2020  ;;  %v1909_v12 = vadd.f32 1.0, %v2019_v21 }
 0x396   :  { %v2023_v31 = vpop.eup %2022  ;;  %v1910_v2 = vadd.f32 1.0, %v2021_v30 }
 0x397   :  { %v2025_v25 = vpop.eup %2024  ;;  %v1911_v44 = vadd.f32 1.0, %v2023_v31  ;;  %2034 = vrcp.f32 %v1909_v12 }
 0x398   :  { %v2027_v14 = vpop.eup %2026  ;;  %v1912_v57 = vadd.f32 1.0, %v2025_v25  ;;  %2036 = vrcp.f32 %v1910_v2 }
 0x399   :  { %v2029_v15 = vpop.eup %2028  ;;  %v1913_v10 = vadd.f32 1.0, %v2027_v14  ;;  %2038 = vrcp.f32 %v1911_v44 }
 0x39a   :  { %v2031_v59 = vpop.eup %2030  ;;  %v1914_v47 = vadd.f32 1.0, %v2029_v15  ;;  %2040 = vrcp.f32 %v1912_v57 }
 0x39b   :  { %v2033_v1 = vpop.eup %2032  ;;  %v1915_v33 = vadd.f32 1.0, %v2031_v59  ;;  %2042 = vrcp.f32 %v1913_v10 }
 0x39c   :  { %v1916_v41 = vadd.f32 1.0, %v2033_v1  ;;  %2044 = vrcp.f32 %v1914_v47 }
 0x39d   :  { %2046 = vrcp.f32 %v1915_v33 }
 0x39e   :  { %2048 = vrcp.f32 %v1916_v41 }
 0x3a1   :  { %v2035_v6 = vpop.eup %2034 }
 0x3a2   :  { %v2037_v60 = vpop.eup %2036 }
 0x3a3   :  { %v2039_v5 = vpop.eup %2038  ;;  %v1941_v13 = vrot.slane %v2037_v60, 7 }
 0x3a4   :  { %v2041_v42 = vpop.eup %2040  ;;  %v1943_v23 = vrot.slane %v2039_v5, 6 }
 0x3a5   :  { %v2043_v29 = vpop.eup %2042  ;;  %v1942_v28 = vsel %vm424_vm1, %v1941_v13, %v2035_v6  ;;  %v1945_v26 = vrot.slane %v2041_v42, 5 }
 0x3a6   :  { %v2045_v24 = vpop.eup %2044  ;;  %v1944_v54 = vsel %vm427_vm2, %v1943_v23, %v1942_v28 }
 0x3a7   :  { %v2047_v37 = vpop.eup %2046  ;;  %v1946_v48 = vsel %vm430_vm3, %v1945_v26, %v1944_v54  ;;  %v1947_v7 = vrot.slane %v2045_v24, 7 }
 0x3a8   :  { %v2049_v18 = vpop.eup %2048  ;;  %v1949_v50 = vrot.slane %v2047_v37, 6  ;;  %1955 = vst.msk [vmem:[%s3743_s11] sm:$0xf] %vm115_vm0, %v1946_v48 }
 0x3a9   :  { %v1948_v17 = vsel %vm424_vm1, %v1947_v7, %v2043_v29  ;;  %v1951_v39 = vrot.slane %v2049_v18, 5 }
 0x3aa   :  { %v1950_v22 = vsel %vm427_vm2, %v1949_v50, %v1948_v17 }
 0x3ab   :  { %v1952_v43 = vsel %vm430_vm3, %v1951_v39, %v1950_v22 }
 0x3ac   :  { %1956 = vst.msk [vmem:[%s3743_s11 + $0x4] sm:$0xf] %vm115_vm0, %v1952_v43 }

</bundles_post_ra>
